<compile_context>
chip_gen: v6e
topology: v6e:2x2x1
jax: 0.10.0
libtpu: 0.0.40
codegen_flags: <defaults>
</compile_context>

<pallas_src>
import functools
import math

import jax
import jax.numpy as jnp
from jax import lax
from jax.experimental import pallas as pl
from jax.experimental.pallas import tpu as pltpu


def _round_up(a: int, b: int) -> int:
    return ((a + b - 1) // b) * b


def _pe_kernel(x_ref, out_ref, *, C, ll, k):
    stride = 1 + 2 * ll          # per-channel width: [identity, ll sin, ll cos]
    kC = k * C                   # input lanes per grouped row
    kD = kC * stride             # output lanes per grouped row

    x = x_ref[...]               # (TM, kC) float32
    tm = x.shape[0]

    # ---- per-lane metadata from iota (tiny (1, kD) vectors, no DMA) -------
    lane = lax.broadcasted_iota(jnp.int32, (1, kD), 1)
    # chan = lane // stride, via compares only (kC is small and static).
    chan = jnp.zeros((1, kD), jnp.int32)
    for c in range(1, kC):
        chan = chan + (lane >= c * stride).astype(jnp.int32)
    j = lane - chan * stride     # lane % stride: 0=id, 1..ll=sin, ll+1..2ll=cos
    is_id = j == 0
    is_cos = j > ll
    freq = jnp.where(is_cos, j - 1 - ll, j - 1)      # frequency index (id lanes: -1)
    scale = jnp.zeros((1, kD), jnp.float32)
    for f in range(ll):
        scale = jnp.where(freq == f, jnp.float32(math.pi * (2.0 ** f)), scale)
    offset = jnp.where(is_cos, jnp.float32(math.pi / 2.0),
                       jnp.float32(0.0))             # cos(z) = sin(z + pi/2)

    # ---- replicate each input lane `stride` times: pure-VPU select chain ---
    # Lanes are channel-monotone, so overwriting in ascending channel order
    # leaves rep[:, d] == x[:, d // stride].  Exact f32 copies, no MXU.
    rep = jnp.broadcast_to(x[:, 0:1], (tm, kD))
    for c in range(1, kC):
        rep = jnp.where(lane >= c * stride, x[:, c:c + 1], rep)

    # ---- one transcendental pass + one lane select, single wide store -----
    phase = rep * scale + offset
    out_ref[...] = jnp.where(is_id, rep, jnp.sin(phase)).astype(out_ref.dtype)


def fixed_positional_encoding(x, proj_dims: int, *, target_block_bytes: int = 1 << 20):
    """Pallas TPU equivalent of FixedPositionalEncoding(proj_dims)(x)."""
    ll = proj_dims // 2
    stride = 1 + 2 * ll
    x = jnp.asarray(x, jnp.float32)
    lead_shape = x.shape[:-1]
    C = x.shape[-1]
    D = C * stride

    x_flat = x.reshape(-1, C)
    M = x_flat.shape[0]

    # Group k original rows per kernel row so the output lane width k*D >= 128
    # (lane-dense stores). Free: (M, D) row-major == (M/k, k*D). k is kept
    # minimal so the in-kernel replication chain stays short.
    k = max(1, pl.cdiv(128, D))
    kC, kD = k * C, k * D

    # Grouped rows per grid step: ~target_block_bytes of f32 output per tile,
    # 8-sublane aligned; shrunk for small inputs.
    rows_g = pl.cdiv(M, k)
    tm = max(8, _round_up(max(1, target_block_bytes // (kD * 4)), 8))
    if rows_g <= tm:
        tm = _round_up(rows_g, 8)
    rows_g = _round_up(rows_g, tm)          # pad instead of asserting divisibility
    m_pad = rows_g * k

    if m_pad != M:
        x_flat = jnp.pad(x_flat, ((0, m_pad - M), (0, 0)))
    x_g = x_flat.reshape(rows_g, kC)

    kernel = functools.partial(_pe_kernel, C=C, ll=ll, k=k)
    out_g = pl.pallas_call(
        kernel,
        out_shape=jax.ShapeDtypeStruct((rows_g, kD), jnp.float32),
        grid_spec=pl.GridSpec(
            grid=(rows_g // tm,),
            in_specs=[pl.BlockSpec((tm, kC), lambda i: (i, 0))],
            out_specs=pl.BlockSpec((tm, kD), lambda i: (i, 0)),
        ),
        compiler_params=pltpu.CompilerParams(
            dimension_semantics=("parallel",)),
    )(x_g)

    out = out_g.reshape(m_pad, D)
    if m_pad != M:
        out = out[:M]
    return out.reshape(lead_shape + (D,))


def _reference(x, proj_dims):
    ll = proj_dims // 2
    exb = jnp.linspace(0.0, float(ll - 1), ll, dtype=jnp.float32)
    sigma = (math.pi * jnp.power(2.0, exb)).reshape(1, -1).astype(jnp.float32)
    x = jnp.asarray(x, jnp.float32)
    lead = x.shape[:-1]
    xe = x if x.shape[-1] == 1 else x[..., None]
    out = jnp.concatenate([xe, jnp.sin(xe * sigma), jnp.cos(xe * sigma)], axis=-1)
    return out.reshape(lead + (-1,))


if __name__ == "__main__":
    key = jax.random.PRNGKey(0)
    k1, k2, k3 = jax.random.split(key, 3)

    # NeRF-like: batch=2, points=128, coord channels C=3, proj_dims=10 -> D=33.
    x1 = jax.random.uniform(k1, (2, 128, 3), jnp.float32, minval=-1.0, maxval=1.0)
    y1 = jax.block_until_ready(fixed_positional_encoding(x1, 10))
    r1 = _reference(x1, 10)
    assert y1.shape == r1.shape, (y1.shape, r1.shape)
    assert jnp.allclose(y1, r1, atol=5e-5, rtol=1e-5), float(jnp.max(jnp.abs(y1 - r1)))

    # Ragged row count -> exercises the padding / slicing path.
    x2 = jax.random.uniform(k2, (5, 7, 3), jnp.float32, minval=-1.0, maxval=1.0)
    y2 = jax.block_until_ready(fixed_positional_encoding(x2, 10))
    r2 = _reference(x2, 10)
    assert y2.shape == r2.shape, (y2.shape, r2.shape)
    assert jnp.allclose(y2, r2, atol=5e-5, rtol=1e-5), float(jnp.max(jnp.abs(y2 - r2)))

    # C == 1 channel case (torch's "no unsqueeze" branch), proj_dims=8.
    x3 = jax.random.uniform(k3, (3, 17, 1), jnp.float32, minval=-1.0, maxval=1.0)
    y3 = jax.block_until_ready(fixed_positional_encoding(x3, 8))
    r3 = _reference(x3, 8)
    assert y3.shape == r3.shape, (y3.shape, r3.shape)
    assert jnp.allclose(y3, r3, atol=5e-5, rtol=1e-5), float(jnp.max(jnp.abs(y3 - r3)))

    print("KERNEL_OK")
</pallas_src>

<mosaic_0001>
module attributes {stable_mosaic.version = 11 : i64} {
  func.func @_pe_kernel(%arg0: i32, %arg1: memref<64x12xf32, #tpu.memory_space<vmem>>, %arg2: memref<64x132xf32, #tpu.memory_space<vmem>>) attributes {dimension_semantics = [#tpu.dimension_semantics<parallel>], iteration_bounds = array<i64: 1>, scalar_prefetch = 0 : i64, scratch_operands = 0 : i64, tpu.core_type = #tpu.core_type<tc>, window_params = [{transform_indices = @transform_0, window_bounds = array<i64: 64, 12>}, {transform_indices = @transform_1, window_bounds = array<i64: 64, 132>}]} {
    %c0 = arith.constant 0 : index
    %c0_0 = arith.constant 0 : index
    %0 = vector.load %arg1[%c0, %c0_0] : memref<64x12xf32, #tpu.memory_space<vmem>>, vector<64x12xf32>
    %1 = tpu.iota {dimensions = array<i32: 1>} : vector<1x132xi32>
    %c0_i32 = arith.constant 0 : i32
    %2 = vector.broadcast %c0_i32 : i32 to vector<1x132xi32>
    %c11_i32 = arith.constant 11 : i32
    %3 = vector.broadcast %c11_i32 : i32 to vector<1x132xi32>
    %4 = arith.cmpi sge, %1, %3 : vector<1x132xi32>
    %5 = arith.extui %4 : vector<1x132xi1> to vector<1x132xi32>
    %6 = arith.addi %2, %5 : vector<1x132xi32>
    %c22_i32 = arith.constant 22 : i32
    %7 = vector.broadcast %c22_i32 : i32 to vector<1x132xi32>
    %8 = arith.cmpi sge, %1, %7 : vector<1x132xi32>
    %9 = arith.extui %8 : vector<1x132xi1> to vector<1x132xi32>
    %10 = arith.addi %6, %9 : vector<1x132xi32>
    %c33_i32 = arith.constant 33 : i32
    %11 = vector.broadcast %c33_i32 : i32 to vector<1x132xi32>
    %12 = arith.cmpi sge, %1, %11 : vector<1x132xi32>
    %13 = arith.extui %12 : vector<1x132xi1> to vector<1x132xi32>
    %14 = arith.addi %10, %13 : vector<1x132xi32>
    %c44_i32 = arith.constant 44 : i32
    %15 = vector.broadcast %c44_i32 : i32 to vector<1x132xi32>
    %16 = arith.cmpi sge, %1, %15 : vector<1x132xi32>
    %17 = arith.extui %16 : vector<1x132xi1> to vector<1x132xi32>
    %18 = arith.addi %14, %17 : vector<1x132xi32>
    %c55_i32 = arith.constant 55 : i32
    %19 = vector.broadcast %c55_i32 : i32 to vector<1x132xi32>
    %20 = arith.cmpi sge, %1, %19 : vector<1x132xi32>
    %21 = arith.extui %20 : vector<1x132xi1> to vector<1x132xi32>
    %22 = arith.addi %18, %21 : vector<1x132xi32>
    %c66_i32 = arith.constant 66 : i32
    %23 = vector.broadcast %c66_i32 : i32 to vector<1x132xi32>
    %24 = arith.cmpi sge, %1, %23 : vector<1x132xi32>
    %25 = arith.extui %24 : vector<1x132xi1> to vector<1x132xi32>
    %26 = arith.addi %22, %25 : vector<1x132xi32>
    %c77_i32 = arith.constant 77 : i32
    %27 = vector.broadcast %c77_i32 : i32 to vector<1x132xi32>
    %28 = arith.cmpi sge, %1, %27 : vector<1x132xi32>
    %29 = arith.extui %28 : vector<1x132xi1> to vector<1x132xi32>
    %30 = arith.addi %26, %29 : vector<1x132xi32>
    %c88_i32 = arith.constant 88 : i32
    %31 = vector.broadcast %c88_i32 : i32 to vector<1x132xi32>
    %32 = arith.cmpi sge, %1, %31 : vector<1x132xi32>
    %33 = arith.extui %32 : vector<1x132xi1> to vector<1x132xi32>
    %34 = arith.addi %30, %33 : vector<1x132xi32>
    %c99_i32 = arith.constant 99 : i32
    %35 = vector.broadcast %c99_i32 : i32 to vector<1x132xi32>
    %36 = arith.cmpi sge, %1, %35 : vector<1x132xi32>
    %37 = arith.extui %36 : vector<1x132xi1> to vector<1x132xi32>
    %38 = arith.addi %34, %37 : vector<1x132xi32>
    %c110_i32 = arith.constant 110 : i32
    %39 = vector.broadcast %c110_i32 : i32 to vector<1x132xi32>
    %40 = arith.cmpi sge, %1, %39 : vector<1x132xi32>
    %41 = arith.extui %40 : vector<1x132xi1> to vector<1x132xi32>
    %42 = arith.addi %38, %41 : vector<1x132xi32>
    %c121_i32 = arith.constant 121 : i32
    %43 = vector.broadcast %c121_i32 : i32 to vector<1x132xi32>
    %44 = arith.cmpi sge, %1, %43 : vector<1x132xi32>
    %45 = arith.extui %44 : vector<1x132xi1> to vector<1x132xi32>
    %46 = arith.addi %42, %45 : vector<1x132xi32>
    %c11_i32_1 = arith.constant 11 : i32
    %47 = vector.broadcast %c11_i32_1 : i32 to vector<1x132xi32>
    %48 = arith.muli %46, %47 : vector<1x132xi32>
    %49 = arith.subi %1, %48 : vector<1x132xi32>
    %c0_i32_2 = arith.constant 0 : i32
    %50 = vector.broadcast %c0_i32_2 : i32 to vector<1x132xi32>
    %51 = arith.cmpi eq, %49, %50 : vector<1x132xi32>
    %c5_i32 = arith.constant 5 : i32
    %52 = vector.broadcast %c5_i32 : i32 to vector<1x132xi32>
    %53 = arith.cmpi sgt, %49, %52 : vector<1x132xi32>
    %c1_i32 = arith.constant 1 : i32
    %54 = vector.broadcast %c1_i32 : i32 to vector<1x132xi32>
    %55 = arith.subi %49, %54 : vector<1x132xi32>
    %c5_i32_3 = arith.constant 5 : i32
    %56 = vector.broadcast %c5_i32_3 : i32 to vector<1x132xi32>
    %57 = arith.subi %55, %56 : vector<1x132xi32>
    %c1_i32_4 = arith.constant 1 : i32
    %58 = vector.broadcast %c1_i32_4 : i32 to vector<1x132xi32>
    %59 = arith.subi %49, %58 : vector<1x132xi32>
    %60 = arith.select %53, %57, %59 : vector<1x132xi1>, vector<1x132xi32>
    %cst = arith.constant 0.000000e+00 : f32
    %61 = vector.broadcast %cst : f32 to vector<1x132xf32>
    %c0_i32_5 = arith.constant 0 : i32
    %62 = vector.broadcast %c0_i32_5 : i32 to vector<1x132xi32>
    %63 = arith.cmpi eq, %60, %62 : vector<1x132xi32>
    %cst_6 = arith.constant 3.14159274 : f32
    %64 = vector.broadcast %cst_6 : f32 to vector<1x132xf32>
    %65 = arith.select %63, %64, %61 : vector<1x132xi1>, vector<1x132xf32>
    %c1_i32_7 = arith.constant 1 : i32
    %66 = vector.broadcast %c1_i32_7 : i32 to vector<1x132xi32>
    %67 = arith.cmpi eq, %60, %66 : vector<1x132xi32>
    %cst_8 = arith.constant 6.28318548 : f32
    %68 = vector.broadcast %cst_8 : f32 to vector<1x132xf32>
    %69 = arith.select %67, %68, %65 : vector<1x132xi1>, vector<1x132xf32>
    %c2_i32 = arith.constant 2 : i32
    %70 = vector.broadcast %c2_i32 : i32 to vector<1x132xi32>
    %71 = arith.cmpi eq, %60, %70 : vector<1x132xi32>
    %cst_9 = arith.constant 12.566371 : f32
    %72 = vector.broadcast %cst_9 : f32 to vector<1x132xf32>
    %73 = arith.select %71, %72, %69 : vector<1x132xi1>, vector<1x132xf32>
    %c3_i32 = arith.constant 3 : i32
    %74 = vector.broadcast %c3_i32 : i32 to vector<1x132xi32>
    %75 = arith.cmpi eq, %60, %74 : vector<1x132xi32>
    %cst_10 = arith.constant 25.1327419 : f32
    %76 = vector.broadcast %cst_10 : f32 to vector<1x132xf32>
    %77 = arith.select %75, %76, %73 : vector<1x132xi1>, vector<1x132xf32>
    %c4_i32 = arith.constant 4 : i32
    %78 = vector.broadcast %c4_i32 : i32 to vector<1x132xi32>
    %79 = arith.cmpi eq, %60, %78 : vector<1x132xi32>
    %cst_11 = arith.constant 50.2654839 : f32
    %80 = vector.broadcast %cst_11 : f32 to vector<1x132xf32>
    %81 = arith.select %79, %80, %77 : vector<1x132xi1>, vector<1x132xf32>
    %cst_12 = arith.constant 1.57079637 : f32
    %cst_13 = arith.constant 0.000000e+00 : f32
    %82 = vector.broadcast %cst_12 : f32 to vector<1x132xf32>
    %83 = vector.broadcast %cst_13 : f32 to vector<1x132xf32>
    %84 = arith.select %53, %82, %83 : vector<1x132xi1>, vector<1x132xf32>
    %85 = vector.extract_strided_slice %0 {offsets = [0, 0], sizes = [64, 1], strides = [1, 1]} : vector<64x12xf32> to vector<64x1xf32>
    %86 = vector.shape_cast %85 : vector<64x1xf32> to vector<64x1xf32>
    %87 = vector.broadcast %86 : vector<64x1xf32> to vector<64x132xf32>
    %c11_i32_14 = arith.constant 11 : i32
    %88 = vector.broadcast %c11_i32_14 : i32 to vector<1x132xi32>
    %89 = arith.cmpi sge, %1, %88 : vector<1x132xi32>
    %90 = vector.extract_strided_slice %0 {offsets = [0, 1], sizes = [64, 1], strides = [1, 1]} : vector<64x12xf32> to vector<64x1xf32>
    %91 = vector.shape_cast %89 : vector<1x132xi1> to vector<1x132xi1>
    %92 = vector.broadcast %91 : vector<1x132xi1> to vector<64x132xi1>
    %93 = vector.shape_cast %90 : vector<64x1xf32> to vector<64x1xf32>
    %94 = vector.broadcast %93 : vector<64x1xf32> to vector<64x132xf32>
    %95 = arith.select %92, %94, %87 : vector<64x132xi1>, vector<64x132xf32>
    %c22_i32_15 = arith.constant 22 : i32
    %96 = vector.broadcast %c22_i32_15 : i32 to vector<1x132xi32>
    %97 = arith.cmpi sge, %1, %96 : vector<1x132xi32>
    %98 = vector.extract_strided_slice %0 {offsets = [0, 2], sizes = [64, 1], strides = [1, 1]} : vector<64x12xf32> to vector<64x1xf32>
    %99 = vector.shape_cast %97 : vector<1x132xi1> to vector<1x132xi1>
    %100 = vector.broadcast %99 : vector<1x132xi1> to vector<64x132xi1>
    %101 = vector.shape_cast %98 : vector<64x1xf32> to vector<64x1xf32>
    %102 = vector.broadcast %101 : vector<64x1xf32> to vector<64x132xf32>
    %103 = arith.select %100, %102, %95 : vector<64x132xi1>, vector<64x132xf32>
    %c33_i32_16 = arith.constant 33 : i32
    %104 = vector.broadcast %c33_i32_16 : i32 to vector<1x132xi32>
    %105 = arith.cmpi sge, %1, %104 : vector<1x132xi32>
    %106 = vector.extract_strided_slice %0 {offsets = [0, 3], sizes = [64, 1], strides = [1, 1]} : vector<64x12xf32> to vector<64x1xf32>
    %107 = vector.shape_cast %105 : vector<1x132xi1> to vector<1x132xi1>
    %108 = vector.broadcast %107 : vector<1x132xi1> to vector<64x132xi1>
    %109 = vector.shape_cast %106 : vector<64x1xf32> to vector<64x1xf32>
    %110 = vector.broadcast %109 : vector<64x1xf32> to vector<64x132xf32>
    %111 = arith.select %108, %110, %103 : vector<64x132xi1>, vector<64x132xf32>
    %c44_i32_17 = arith.constant 44 : i32
    %112 = vector.broadcast %c44_i32_17 : i32 to vector<1x132xi32>
    %113 = arith.cmpi sge, %1, %112 : vector<1x132xi32>
    %114 = vector.extract_strided_slice %0 {offsets = [0, 4], sizes = [64, 1], strides = [1, 1]} : vector<64x12xf32> to vector<64x1xf32>
    %115 = vector.shape_cast %113 : vector<1x132xi1> to vector<1x132xi1>
    %116 = vector.broadcast %115 : vector<1x132xi1> to vector<64x132xi1>
    %117 = vector.shape_cast %114 : vector<64x1xf32> to vector<64x1xf32>
    %118 = vector.broadcast %117 : vector<64x1xf32> to vector<64x132xf32>
    %119 = arith.select %116, %118, %111 : vector<64x132xi1>, vector<64x132xf32>
    %c55_i32_18 = arith.constant 55 : i32
    %120 = vector.broadcast %c55_i32_18 : i32 to vector<1x132xi32>
    %121 = arith.cmpi sge, %1, %120 : vector<1x132xi32>
    %122 = vector.extract_strided_slice %0 {offsets = [0, 5], sizes = [64, 1], strides = [1, 1]} : vector<64x12xf32> to vector<64x1xf32>
    %123 = vector.shape_cast %121 : vector<1x132xi1> to vector<1x132xi1>
    %124 = vector.broadcast %123 : vector<1x132xi1> to vector<64x132xi1>
    %125 = vector.shape_cast %122 : vector<64x1xf32> to vector<64x1xf32>
    %126 = vector.broadcast %125 : vector<64x1xf32> to vector<64x132xf32>
    %127 = arith.select %124, %126, %119 : vector<64x132xi1>, vector<64x132xf32>
    %c66_i32_19 = arith.constant 66 : i32
    %128 = vector.broadcast %c66_i32_19 : i32 to vector<1x132xi32>
    %129 = arith.cmpi sge, %1, %128 : vector<1x132xi32>
    %130 = vector.extract_strided_slice %0 {offsets = [0, 6], sizes = [64, 1], strides = [1, 1]} : vector<64x12xf32> to vector<64x1xf32>
    %131 = vector.shape_cast %129 : vector<1x132xi1> to vector<1x132xi1>
    %132 = vector.broadcast %131 : vector<1x132xi1> to vector<64x132xi1>
    %133 = vector.shape_cast %130 : vector<64x1xf32> to vector<64x1xf32>
    %134 = vector.broadcast %133 : vector<64x1xf32> to vector<64x132xf32>
    %135 = arith.select %132, %134, %127 : vector<64x132xi1>, vector<64x132xf32>
    %c77_i32_20 = arith.constant 77 : i32
    %136 = vector.broadcast %c77_i32_20 : i32 to vector<1x132xi32>
    %137 = arith.cmpi sge, %1, %136 : vector<1x132xi32>
    %138 = vector.extract_strided_slice %0 {offsets = [0, 7], sizes = [64, 1], strides = [1, 1]} : vector<64x12xf32> to vector<64x1xf32>
    %139 = vector.shape_cast %137 : vector<1x132xi1> to vector<1x132xi1>
    %140 = vector.broadcast %139 : vector<1x132xi1> to vector<64x132xi1>
    %141 = vector.shape_cast %138 : vector<64x1xf32> to vector<64x1xf32>
    %142 = vector.broadcast %141 : vector<64x1xf32> to vector<64x132xf32>
    %143 = arith.select %140, %142, %135 : vector<64x132xi1>, vector<64x132xf32>
    %c88_i32_21 = arith.constant 88 : i32
    %144 = vector.broadcast %c88_i32_21 : i32 to vector<1x132xi32>
    %145 = arith.cmpi sge, %1, %144 : vector<1x132xi32>
    %146 = vector.extract_strided_slice %0 {offsets = [0, 8], sizes = [64, 1], strides = [1, 1]} : vector<64x12xf32> to vector<64x1xf32>
    %147 = vector.shape_cast %145 : vector<1x132xi1> to vector<1x132xi1>
    %148 = vector.broadcast %147 : vector<1x132xi1> to vector<64x132xi1>
    %149 = vector.shape_cast %146 : vector<64x1xf32> to vector<64x1xf32>
    %150 = vector.broadcast %149 : vector<64x1xf32> to vector<64x132xf32>
    %151 = arith.select %148, %150, %143 : vector<64x132xi1>, vector<64x132xf32>
    %c99_i32_22 = arith.constant 99 : i32
    %152 = vector.broadcast %c99_i32_22 : i32 to vector<1x132xi32>
    %153 = arith.cmpi sge, %1, %152 : vector<1x132xi32>
    %154 = vector.extract_strided_slice %0 {offsets = [0, 9], sizes = [64, 1], strides = [1, 1]} : vector<64x12xf32> to vector<64x1xf32>
    %155 = vector.shape_cast %153 : vector<1x132xi1> to vector<1x132xi1>
    %156 = vector.broadcast %155 : vector<1x132xi1> to vector<64x132xi1>
    %157 = vector.shape_cast %154 : vector<64x1xf32> to vector<64x1xf32>
    %158 = vector.broadcast %157 : vector<64x1xf32> to vector<64x132xf32>
    %159 = arith.select %156, %158, %151 : vector<64x132xi1>, vector<64x132xf32>
    %c110_i32_23 = arith.constant 110 : i32
    %160 = vector.broadcast %c110_i32_23 : i32 to vector<1x132xi32>
    %161 = arith.cmpi sge, %1, %160 : vector<1x132xi32>
    %162 = vector.extract_strided_slice %0 {offsets = [0, 10], sizes = [64, 1], strides = [1, 1]} : vector<64x12xf32> to vector<64x1xf32>
    %163 = vector.shape_cast %161 : vector<1x132xi1> to vector<1x132xi1>
    %164 = vector.broadcast %163 : vector<1x132xi1> to vector<64x132xi1>
    %165 = vector.shape_cast %162 : vector<64x1xf32> to vector<64x1xf32>
    %166 = vector.broadcast %165 : vector<64x1xf32> to vector<64x132xf32>
    %167 = arith.select %164, %166, %159 : vector<64x132xi1>, vector<64x132xf32>
    %c121_i32_24 = arith.constant 121 : i32
    %168 = vector.broadcast %c121_i32_24 : i32 to vector<1x132xi32>
    %169 = arith.cmpi sge, %1, %168 : vector<1x132xi32>
    %170 = vector.extract_strided_slice %0 {offsets = [0, 11], sizes = [64, 1], strides = [1, 1]} : vector<64x12xf32> to vector<64x1xf32>
    %171 = vector.shape_cast %169 : vector<1x132xi1> to vector<1x132xi1>
    %172 = vector.broadcast %171 : vector<1x132xi1> to vector<64x132xi1>
    %173 = vector.shape_cast %170 : vector<64x1xf32> to vector<64x1xf32>
    %174 = vector.broadcast %173 : vector<64x1xf32> to vector<64x132xf32>
    %175 = arith.select %172, %174, %167 : vector<64x132xi1>, vector<64x132xf32>
    %176 = vector.broadcast %81 : vector<1x132xf32> to vector<64x132xf32>
    %177 = arith.mulf %175, %176 : vector<64x132xf32>
    %178 = vector.broadcast %84 : vector<1x132xf32> to vector<64x132xf32>
    %179 = arith.addf %177, %178 : vector<64x132xf32>
    %180 = math.sin %179 : vector<64x132xf32>
    %181 = vector.shape_cast %51 : vector<1x132xi1> to vector<1x132xi1>
    %182 = vector.broadcast %181 : vector<1x132xi1> to vector<64x132xi1>
    %183 = arith.select %182, %175, %180 : vector<64x132xi1>, vector<64x132xf32>
    %c0_25 = arith.constant 0 : index
    %c0_26 = arith.constant 0 : index
    %184 = vector.load %arg2[%c0_25, %c0_26] : memref<64x132xf32, #tpu.memory_space<vmem>>, vector<64x132xf32>
    tpu.vector_store %arg2[%c0_25, %c0_26], %183 {strides = array<i32>} : memref<64x132xf32, #tpu.memory_space<vmem>>, vector<64x132xf32>,
    return
  }
  func.func @transform_0(%arg0: i32) -> (i32, i32) {
    %c0_i32 = arith.constant 0 : i32
    %c0_i32_0 = arith.constant 0 : i32
    return %arg0, %c0_i32 : i32, i32
  }
  func.func @transform_1(%arg0: i32) -> (i32, i32) {
    %c0_i32 = arith.constant 0 : i32
    %c0_i32_0 = arith.constant 0 : i32
    return %arg0, %c0_i32 : i32, i32
  }
}

</mosaic_0001>

<bundles_post_ra>
// kernel: tpu_custom_call.1
= control target key start
LH: loop header
LB: loop body
LE: loop exit
PB: predicated region body
PF: predicated region fallthrough
CT: control target
= control target key end

     0   :  { %v2724_v2 = vmov 0   ;;  %s4520_s0 = inlined_call_operand.vmem [shape: f32[64,12], index: 0, kind: input, shape index: {}]   ;;  %s4521_s1 = inlined_call_operand.hbm [shape: f32[64,132], index: 1, kind: output, shape index: {}]  }
   0x1   :  { %v2759_v0 = vld [vmem:[%s4520_s0 + $0x10] sm:$0xff]  ;;  %v2764_v1 = vld [vmem:[%s4520_s0] sm:$0xff]  ;;  %2615 = vset.pattern.permute.xlu1 %v2724_v2  ;;  %2614 = vset.pattern.permute.xlu0 %v2724_v2  ;;  %v2773_v3 = vld [vmem:[%s4520_s0 + $0x18] sm:$0xff] }
   0x2   :  { %132 = vperm.xlu1 %2615, %v2759_v0   ;;  %122 = vperm.xlu0 %2614, %v2764_v1   ;;  %v2778_v4 = vld [vmem:[%s4520_s0 + $0x8] sm:$0xff] }
   0x3   :  { %6 = vsyncpa [#allocation3], 0  ;;  %v2785_v5 = vld [vmem:[%s4520_s0 + $0x28] sm:$0xff]  ;;  %v2790_v6 = vld [vmem:[%s4520_s0 + $0x20] sm:$0xff]  ;;  %v2725_v9 = vmov 1   ;;  %v2726_v10 = vmov 2   ;;  %v17_v21 = vlaneseq }
   0x4   :  { %v2797_v7 = vld [vmem:[%s4520_s0 + $0x38] sm:$0xff]  ;;  %v2802_v8 = vld [vmem:[%s4520_s0 + $0x30] sm:$0xff]  ;;  %v2727_v11 = vmov 3   ;;  %v2728_v12 = vmov 4   ;;  %v2729_v13 = vmov 5   ;;  %v2730_v14 = vmov 6  }
   0x5   :  { %v2731_v15 = vmov 7   ;;  %v2732_v17 = vmov 8   ;;  %v2862_v24 = vand.u32 127, %v17_v21  ;;  %v2733_v27 = vmov 9   ;;  %s2743_s0 = smov [#allocation2]  }
   0x6   :  { %137 = vperm.xlu1 %2615, %v2773_v3   ;;  %127 = vperm.xlu0 %2614, %v2778_v4   ;;  %v2734_v43 = vmov 10   ;;  %v2735_v57 = vmov 11   ;;  %s2448_s22 = sshll.u32 %s2743_s0, 4  ;;  %s2449_s22 = int_to_ptr.vmem [resolvable:$true] %s2448_s22 }
   0x7   :  { %vm20_vm0 = vcmp.ge.s32.totalorder %v2862_v24, 11  ;;  %vm24_vm1 = vcmp.ge.s32.totalorder %v2862_v24, 22  ;;  %vm30_vm2 = vcmp.ge.s32.totalorder %v2862_v24, 33  ;;  %vm36_vm3 = vcmp.ge.s32.totalorder %v2862_v24, 44  ;;  %s2702_s23 = scalar_lea.vmem %s2449_s22, 2048  ;;  %p2707_p1 = scmp.lt.s32.totalorder %s2449_s22, %s2449_s22 }
   0x8   :  { %vm42_vm4 = vcmp.ge.s32.totalorder %v2862_v24, 55  ;;  %vm48_vm5 = vcmp.ge.s32.totalorder %v2862_v24, 66  ;;  %vm54_vm6 = vcmp.ge.s32.totalorder %v2862_v24, 77  ;;  %vm60_vm7 = vcmp.ge.s32.totalorder %v2862_v24, 88  ;;  %p2703_p0 = scmp.ne.s32.totalorder %s2449_s22, %s2702_s23  ;;  %p2708_p2 = scmp.lt.s32.totalorder %s2702_s23, %s2702_s23 }
   0x9   :  { %vm66_vm8 = vcmp.ge.s32.totalorder %v2862_v24, 99  ;;  %vm72_vm9 = vcmp.ge.s32.totalorder %v2862_v24, 110  ;;  %vm78_vm11 = vcmp.ge.s32.totalorder %v2862_v24, 121 }
   0xa   :  { %147 = vperm.xlu1 %2615, %v2785_v5   ;;  %142 = vperm.xlu0 %2614, %v2790_v6   ;;  %p2709_p3 = por %p2708_p2, %p2707_p1 }
   0xc   :  { %p2710_p4 = pnand %p2709_p3, %p2703_p0 }
   0xe   :  { %157 = vperm.xlu1 %2615, %v2797_v7   ;;  %152 = vperm.xlu0 %2614, %v2802_v8  }
  0x12   :  { %2617 = vset.pattern.permute.xlu1 %v2725_v9  ;;  %2616 = vset.pattern.permute.xlu0 %v2725_v9 }
  0x13   :  { %167 = vperm.xlu1 %2617, %v2778_v4   ;;  %163 = vperm.xlu0 %2616, %v2764_v1  }
  0x17   :  { %171 = vperm.xlu1 %2617, %v2759_v0   ;;  %175 = vperm.xlu0 %2616, %v2773_v3  }
  0x1b   :  { %179 = vperm.xlu1 %2617, %v2790_v6   ;;  %183 = vperm.xlu0 %2616, %v2785_v5  }
  0x1f   :  { %187 = vperm.xlu1 %2617, %v2802_v8   ;;  %191 = vperm.xlu0 %2616, %v2797_v7  }
  0x23   :  { %2618 = vset.pattern.permute.xlu1 %v2726_v10  ;;  %2619 = vset.pattern.permute.xlu0 %v2726_v10 }
  0x24   :  { %213 = vperm.xlu1 %2618, %v2764_v1   ;;  %217 = vperm.xlu0 %2619, %v2778_v4  }
  0x28   :  { %221 = vperm.xlu1 %2618, %v2759_v0   ;;  %229 = vperm.xlu0 %2619, %v2790_v6  }
  0x2c   :  { %225 = vperm.xlu1 %2618, %v2773_v3   ;;  %237 = vperm.xlu0 %2619, %v2802_v8  }
  0x30   :  { %233 = vperm.xlu1 %2618, %v2785_v5   ;;  %2620 = vset.pattern.permute.xlu0 %v2727_v11 }
  0x31   :  { %263 = vperm.xlu0 %2620, %v2764_v1  }
  0x34   :  { %241 = vperm.xlu1 %2618, %v2797_v7  }
  0x35   :  { %275 = vperm.xlu0 %2620, %v2773_v3  }
  0x38   :  { %2621 = vset.pattern.permute.xlu1 %v2727_v11 }
  0x39   :  { %267 = vperm.xlu1 %2621, %v2778_v4   ;;  %283 = vperm.xlu0 %2620, %v2785_v5  }
  0x3d   :  { %271 = vperm.xlu1 %2621, %v2759_v0   ;;  %291 = vperm.xlu0 %2620, %v2797_v7  }
  0x41   :  { %279 = vperm.xlu1 %2621, %v2790_v6   ;;  %2623 = vset.pattern.permute.xlu0 %v2728_v12 }
  0x42   :  { %317 = vperm.xlu0 %2623, %v2778_v4  }
  0x45   :  { %287 = vperm.xlu1 %2621, %v2802_v8  }
  0x46   :  { %329 = vperm.xlu0 %2623, %v2790_v6  }
  0x49   :  { %2622 = vset.pattern.permute.xlu1 %v2728_v12 }
  0x4a   :  { %313 = vperm.xlu1 %2622, %v2764_v1   ;;  %337 = vperm.xlu0 %2623, %v2802_v8  }
  0x4e   :  { %321 = vperm.xlu1 %2622, %v2759_v0   ;;  %2624 = vset.pattern.permute.xlu0 %v2729_v13 }
  0x4f   :  { %363 = vperm.xlu0 %2624, %v2764_v1  }
  0x52   :  { %325 = vperm.xlu1 %2622, %v2773_v3  }
  0x53   :  { %375 = vperm.xlu0 %2624, %v2773_v3  }
  0x56   :  { %333 = vperm.xlu1 %2622, %v2785_v5  }
  0x57   :  { %383 = vperm.xlu0 %2624, %v2785_v5  }
  0x5a   :  { %341 = vperm.xlu1 %2622, %v2797_v7  }
  0x5b   :  { %391 = vperm.xlu0 %2624, %v2797_v7  }
  0x5e   :  { %2625 = vset.pattern.permute.xlu1 %v2729_v13 }
  0x5f   :  { %367 = vperm.xlu1 %2625, %v2778_v4   ;;  %2627 = vset.pattern.permute.xlu0 %v2730_v14 }
  0x60   :  { %417 = vperm.xlu0 %2627, %v2778_v4  }
  0x63   :  { %371 = vperm.xlu1 %2625, %v2759_v0  }
  0x64   :  { %429 = vperm.xlu0 %2627, %v2790_v6  }
  0x67   :  { %379 = vperm.xlu1 %2625, %v2790_v6  }
  0x68   :  { %437 = vperm.xlu0 %2627, %v2802_v8  }
  0x6b   :  { %387 = vperm.xlu1 %2625, %v2802_v8  }
  0x6c   :  { %2628 = vset.pattern.permute.xlu0 %v2731_v15 }
  0x6d   :  { %463 = vperm.xlu0 %2628, %v2764_v1  }
  0x6f   :  { %2626 = vset.pattern.permute.xlu1 %v2730_v14 }
  0x70   :  { %413 = vperm.xlu1 %2626, %v2764_v1  }
  0x71   :  { %475 = vperm.xlu0 %2628, %v2773_v3  }
  0x74   :  { %421 = vperm.xlu1 %2626, %v2759_v0  }
  0x75   :  { %483 = vperm.xlu0 %2628, %v2785_v5  }
  0x78   :  { %425 = vperm.xlu1 %2626, %v2773_v3  }
  0x79   :  { %491 = vperm.xlu0 %2628, %v2797_v7  }
  0x7c   :  { %433 = vperm.xlu1 %2626, %v2785_v5  }
  0x7d   :  { %v133_v16 = vpop.permute.xlu1 %132  ;;  %2631 = vset.pattern.permute.xlu0 %v2732_v17  ;;  %v123_v18 = vpop.permute.xlu0 %122 }
  0x7e   :  { %517 = vperm.xlu0 %2631, %v2778_v4  }
  0x80   :  { %441 = vperm.xlu1 %2626, %v2797_v7  }
  0x81   :  { %v138_v19 = vpop.permute.xlu1 %137  ;;  %v128_v20 = vpop.permute.xlu0 %127 }
  0x82   :  { %529 = vperm.xlu0 %2631, %v2790_v6  }
  0x84   :  { %2629 = vset.pattern.permute.xlu1 %v2731_v15 }
  0x85   :  { %v148_v22 = vpop.permute.xlu1 %147  ;;  %467 = vperm.xlu1 %2629, %v2778_v4   ;;  %v143_v23 = vpop.permute.xlu0 %142 }
  0x86   :  { %537 = vperm.xlu0 %2631, %v2802_v8  }
  0x89   :  { %v158_v25 = vpop.permute.xlu1 %157  ;;  %471 = vperm.xlu1 %2629, %v2759_v0   ;;  %v153_v26 = vpop.permute.xlu0 %152 }
  0x8a   :  { %2632 = vset.pattern.permute.xlu0 %v2733_v27 }
  0x8b   :  { %563 = vperm.xlu0 %2632, %v2764_v1  }
  0x8d   :  { %479 = vperm.xlu1 %2629, %v2790_v6  }
  0x8e   :  { %v168_v28 = vpop.permute.xlu1 %167  ;;  %v164_v29 = vpop.permute.xlu0 %163 }
  0x8f   :  { %v196_v30 = vsel %vm20_vm0, %v168_v28, %v128_v20  ;;  %v194_v31 = vsel %vm20_vm0, %v164_v29, %v123_v18  ;;  %575 = vperm.xlu0 %2632, %v2773_v3  }
  0x91   :  { %487 = vperm.xlu1 %2629, %v2802_v8  }
  0x92   :  { %v172_v32 = vpop.permute.xlu1 %171  ;;  %v176_v33 = vpop.permute.xlu0 %175 }
  0x93   :  { %v198_v34 = vsel %vm20_vm0, %v172_v32, %v133_v16  ;;  %583 = vperm.xlu0 %2632, %v2785_v5   ;;  %v200_v52 = vsel %vm20_vm0, %v176_v33, %v138_v19 }
  0x95   :  { %2630 = vset.pattern.permute.xlu1 %v2732_v17 }
  0x96   :  { %v180_v35 = vpop.permute.xlu1 %179  ;;  %513 = vperm.xlu1 %2630, %v2764_v1   ;;  %v184_v36 = vpop.permute.xlu0 %183 }
  0x97   :  { %v202_v37 = vsel %vm20_vm0, %v180_v35, %v143_v23  ;;  %v204_v38 = vsel %vm20_vm0, %v184_v36, %v148_v22  ;;  %591 = vperm.xlu0 %2632, %v2797_v7  }
  0x9a   :  { %v188_v39 = vpop.permute.xlu1 %187  ;;  %521 = vperm.xlu1 %2630, %v2759_v0   ;;  %v192_v40 = vpop.permute.xlu0 %191 }
  0x9b   :  { %v206_v41 = vsel %vm20_vm0, %v188_v39, %v153_v26  ;;  %v208_v42 = vsel %vm20_vm0, %v192_v40, %v158_v25  ;;  %2635 = vset.pattern.permute.xlu0 %v2734_v43 }
  0x9c   :  { %617 = vperm.xlu0 %2635, %v2778_v4  }
  0x9e   :  { %525 = vperm.xlu1 %2630, %v2773_v3  }
  0x9f   :  { %v214_v44 = vpop.permute.xlu1 %213  ;;  %v218_v45 = vpop.permute.xlu0 %217 }
  0xa0   :  { %v244_v46 = vsel %vm24_vm1, %v214_v44, %v194_v31  ;;  %v246_v47 = vsel %vm24_vm1, %v218_v45, %v196_v30  ;;  %629 = vperm.xlu0 %2635, %v2790_v6  }
  0xa2   :  { %533 = vperm.xlu1 %2630, %v2785_v5  }
  0xa3   :  { %v222_v48 = vpop.permute.xlu1 %221  ;;  %v230_v49 = vpop.permute.xlu0 %229 }
  0xa4   :  { %v248_v50 = vsel %vm24_vm1, %v222_v48, %v198_v34  ;;  %v252_v51 = vsel %vm24_vm1, %v230_v49, %v202_v37  ;;  %637 = vperm.xlu0 %2635, %v2802_v8  }
  0xa6   :  { %541 = vperm.xlu1 %2630, %v2797_v7  }
  0xa7   :  { %v226_v53 = vpop.permute.xlu1 %225  ;;  %v238_v54 = vpop.permute.xlu0 %237 }
  0xa8   :  { %v250_v55 = vsel %vm24_vm1, %v226_v53, %v200_v52  ;;  %v256_v56 = vsel %vm24_vm1, %v238_v54, %v206_v41  ;;  %2636 = vset.pattern.permute.xlu0 %v2735_v57 }
  0xa9   :  { %663 = vperm.xlu0 %2636, %v2764_v1  }
  0xaa   :  { %2633 = vset.pattern.permute.xlu1 %v2733_v27 }
  0xab   :  { %567 = vperm.xlu1 %2633, %v2778_v4   ;;  %v234_v58 = vpop.permute.xlu1 %233 }
  0xac   :  { %v254_v59 = vsel %vm24_vm1, %v234_v58, %v204_v38  ;;  %v264_v60 = vpop.permute.xlu0 %263 }
  0xad   :  { %v294_v61 = vsel %vm30_vm2, %v264_v60, %v244_v46  ;;  %675 = vperm.xlu0 %2636, %v2773_v3  }
  0xaf   :  { %571 = vperm.xlu1 %2633, %v2759_v0   ;;  %v242_v62 = vpop.permute.xlu1 %241 }
  0xb0   :  { %v258_v63 = vsel %vm24_vm1, %v242_v62, %v208_v42  ;;  %v276_v9 = vpop.permute.xlu0 %275 }
  0xb1   :  { %v300_v10 = vsel %vm30_vm2, %v276_v9, %v250_v55  ;;  %683 = vperm.xlu0 %2636, %v2785_v5   ;;  %v26_v9 = vsel %vm24_vm1, 1, %v2724_v2 }
  0xb3   :  { %579 = vperm.xlu1 %2633, %v2790_v6  }
  0xb4   :  { %v268_v11 = vpop.permute.xlu1 %267  ;;  %v284_v12 = vpop.permute.xlu0 %283 }
  0xb5   :  { %v296_v13 = vsel %vm30_vm2, %v268_v11, %v246_v47  ;;  %v304_v14 = vsel %vm30_vm2, %v284_v12, %v254_v59  ;;  %691 = vperm.xlu0 %2636, %v2797_v7  }
  0xb7   :  { %587 = vperm.xlu1 %2633, %v2802_v8  }
  0xb8   :  { %v272_v15 = vpop.permute.xlu1 %271  ;;  %v292_v16 = vpop.permute.xlu0 %291 }
  0xb9   :  { %v298_v17 = vsel %vm30_vm2, %v272_v15, %v248_v50  ;;  %v308_v18 = vsel %vm30_vm2, %v292_v16, %v258_v63  ;;  %v22_v63 = vsel %vm20_vm0, 1, %v2724_v2  ;;  %v32_v15 = vsel %vm30_vm2, 1, %v2724_v2 }
  0xbb   :  { %2634 = vset.pattern.permute.xlu1 %v2734_v43 }
  0xbc   :  { %613 = vperm.xlu1 %2634, %v2764_v1   ;;  %v280_v19 = vpop.permute.xlu1 %279 }
  0xbd   :  { %v302_v20 = vsel %vm30_vm2, %v280_v19, %v252_v51  ;;  %v318_v21 = vpop.permute.xlu0 %317 }
  0xbe   :  { %v346_v22 = vsel %vm36_vm3, %v318_v21, %v296_v13  ;;  %v28_v13 = vadd.s32 %v26_v9, %v22_v63  ;;  %v38_v21 = vsel %vm36_vm3, 1, %v2724_v2 }
  0xc0   :  { %621 = vperm.xlu1 %2634, %v2759_v0   ;;  %v288_v23 = vpop.permute.xlu1 %287  ;;  %v34_v19 = vadd.s32 %v32_v15, %v28_v13 }
  0xc1   :  { %v306_v25 = vsel %vm30_vm2, %v288_v23, %v256_v56  ;;  %v330_v26 = vpop.permute.xlu0 %329 }
  0xc2   :  { %v352_v27 = vsel %vm36_vm3, %v330_v26, %v302_v20  ;;  %v40_v26 = vadd.s32 %v38_v21, %v34_v19 }
  0xc4   :  { %625 = vperm.xlu1 %2634, %v2773_v3  }
  0xc5   :  { %v314_v1 = vpop.permute.xlu1 %313  ;;  %v338_v28 = vpop.permute.xlu0 %337 }
  0xc6   :  { %v344_v29 = vsel %vm36_vm3, %v314_v1, %v294_v61  ;;  %v356_v30 = vsel %vm36_vm3, %v338_v28, %v306_v25 }
  0xc8   :  { %633 = vperm.xlu1 %2634, %v2785_v5  }
  0xc9   :  { %v322_v31 = vpop.permute.xlu1 %321 }
  0xca   :  { %v348_v32 = vsel %vm36_vm3, %v322_v31, %v298_v17  ;;  %v364_v33 = vpop.permute.xlu0 %363 }
  0xcb   :  { %v394_v3 = vsel %vm42_vm4, %v364_v33, %v344_v29  ;;  %v50_v33 = vsel %vm48_vm5, 1, %v2724_v2 }
  0xcc   :  { %641 = vperm.xlu1 %2634, %v2797_v7  }
  0xcd   :  { %v326_v34 = vpop.permute.xlu1 %325 }
  0xce   :  { %v350_v35 = vsel %vm36_vm3, %v326_v34, %v300_v10  ;;  %v376_v36 = vpop.permute.xlu0 %375 }
  0xcf   :  { %v400_v5 = vsel %vm42_vm4, %v376_v36, %v350_v35 }
  0xd0   :  { %2637 = vset.pattern.permute.xlu1 %v2735_v57 }
  0xd1   :  { %667 = vperm.xlu1 %2637, %v2778_v4   ;;  %v334_v37 = vpop.permute.xlu1 %333 }
  0xd2   :  { %v354_v38 = vsel %vm36_vm3, %v334_v37, %v304_v14  ;;  %v384_v39 = vpop.permute.xlu0 %383  ;;  %v56_v37 = vsel %vm54_vm6, 1, %v2724_v2 }
  0xd3   :  { %v404_v40 = vsel %vm42_vm4, %v384_v39, %v354_v38 }
  0xd5   :  { %671 = vperm.xlu1 %2637, %v2759_v0   ;;  %v342_v7 = vpop.permute.xlu1 %341 }
  0xd6   :  { %v358_v41 = vsel %vm36_vm3, %v342_v7, %v308_v18  ;;  %v392_v42 = vpop.permute.xlu0 %391 }
  0xd7   :  { %v408_v43 = vsel %vm42_vm4, %v392_v42, %v358_v41 }
  0xd9   :  { %679 = vperm.xlu1 %2637, %v2790_v6  }
  0xda   :  { %v368_v4 = vpop.permute.xlu1 %367 }
  0xdb   :  { %v396_v44 = vsel %vm42_vm4, %v368_v4, %v346_v22  ;;  %v418_v45 = vpop.permute.xlu0 %417 }
  0xdc   :  { %v446_v0 = vsel %vm48_vm5, %v418_v45, %v396_v44 }
  0xdd   :  { %687 = vperm.xlu1 %2637, %v2802_v8  }
  0xde   :  { %v372_v46 = vpop.permute.xlu1 %371 }
  0xdf   :  { %v398_v47 = vsel %vm42_vm4, %v372_v46, %v348_v32  ;;  %v430_v48 = vpop.permute.xlu0 %429  ;;  %v19_v32 = vadd.s32 128, %v2862_v24 }
  0xe2   :  { %v380_v49 = vpop.permute.xlu1 %379 }
  0xe3   :  { %v402_v6 = vsel %vm42_vm4, %v380_v49, %v352_v27  ;;  %v438_v50 = vpop.permute.xlu0 %437  ;;  %v44_v27 = vsel %vm42_vm4, 1, %v2724_v2 }
  0xe4   :  { %v452_v51 = vsel %vm48_vm5, %v430_v48, %v402_v6  ;;  %v46_v31 = vadd.s32 %v44_v27, %v40_v26  ;;  %v68_v48 = vsel %vm66_vm8, 1, %v2724_v2 }
  0xe6   :  { %v388_v52 = vpop.permute.xlu1 %387  ;;  %v52_v36 = vadd.s32 %v50_v33, %v46_v31 }
  0xe7   :  { %v406_v53 = vsel %vm42_vm4, %v388_v52, %v356_v30  ;;  %v74_v52 = vsel %vm72_vm9, 1, %v2724_v2 }
  0xe8   :  { %v456_v8 = vsel %vm48_vm5, %v438_v50, %v406_v53  ;;  %v464_v54 = vpop.permute.xlu0 %463  ;;  %v58_v41 = vadd.s32 %v56_v37, %v52_v36 }
  0xeb   :  { %v414_v55 = vpop.permute.xlu1 %413 }
  0xec   :  { %v444_v56 = vsel %vm48_vm5, %v414_v55, %v394_v3  ;;  %v476_v57 = vpop.permute.xlu0 %475  ;;  %v2736_v55 = vmov 0.0  }
  0xed   :  { %v494_v58 = vsel %vm54_vm6, %v464_v54, %v444_v56 }
  0xef   :  { %v422_v59 = vpop.permute.xlu1 %421 }
  0xf0   :  { %v448_v60 = vsel %vm48_vm5, %v422_v59, %v398_v47  ;;  %v484_v61 = vpop.permute.xlu0 %483  ;;  %v80_v59 = vsel %vm78_vm11, 1, %v2724_v2 }
  0xf3   :  { %v426_v62 = vpop.permute.xlu1 %425 }
  0xf4   :  { %v450_v10 = vsel %vm48_vm5, %v426_v62, %v400_v5  ;;  %v492_v11 = vpop.permute.xlu0 %491  ;;  %v2459_v5 = vadd.s32 4294967175, %v19_v32 }
  0xf5   :  { %v3005_v12 = vsel %vm54_vm6, %v476_v57, %v450_v10 }
  0xf6   :  { %v2461_v42 = vadd.s32 4294967295, %v2459_v5 }
  0xf7   :  { %v434_v14 = vpop.permute.xlu1 %433 }
  0xf8   :  { %v454_v16 = vsel %vm48_vm5, %v434_v14, %v404_v40  ;;  %v2463_v47 = vadd.s32 4294967291, %v2461_v42 }
  0xf9   :  { %v518_v17 = vpop.permute.xlu0 %517  ;;  %v3014_v18 = vsel %vm54_vm6, %v484_v61, %v454_v16 }
  0xfa   :  { %vm99_vm10 = vcmp.eq.s32.totalorder %v2463_v47, 0  ;;  %vm103_vm12 = vcmp.eq.s32.totalorder %v2463_v47, 1  ;;  %vm107_vm13 = vcmp.eq.s32.totalorder %v2463_v47, 2  ;;  %vm111_vm14 = vcmp.eq.s32.totalorder %v2463_v47, 3 }
  0xfb   :  { %v442_v20 = vpop.permute.xlu1 %441  ;;  %v101_v56 = vsel %vm99_vm10, 3.1415927, %v2736_v55  ;;  %vm115_vm15 = vcmp.eq.s32.totalorder %v2463_v47, 4 }
  0xfc   :  { %v458_v22 = vsel %vm48_vm5, %v442_v20, %v408_v43  ;;  %v62_v43 = vsel %vm60_vm7, 1, %v2724_v2  ;;  %v105_v61 = vsel %vm103_vm12, 6.2831855, %v101_v56 }
  0xfd   :  { %v530_v23 = vpop.permute.xlu0 %529  ;;  %v3023_v25 = vsel %vm54_vm6, %v492_v11, %v458_v22  ;;  %v64_v46 = vadd.s32 %v62_v43, %v58_v41  ;;  %v109_v11 = vsel %vm107_vm13, 12.566371, %v105_v61 }
  0xfe   :  { %v113_v16 = vsel %vm111_vm14, 25.132742, %v109_v11  ;;  %v2740_v11 = vmov 2102212464  }
  0xff   :  { %v3101_v20 = vsel %vm115_vm15, 50.265484, %v113_v16 }
 0x100   :  { %v468_v1 = vpop.permute.xlu1 %467 }
 0x101   :  { %v496_v28 = vsel %vm54_vm6, %v468_v1, %v446_v0  ;;  %v538_v29 = vpop.permute.xlu0 %537 }
 0x102   :  { %v3033_v30 = vsel %vm60_vm7, %v518_v17, %v496_v28 }
 0x104   :  { %v472_v3 = vpop.permute.xlu1 %471 }
 0x105   :  { %v498_v34 = vsel %vm54_vm6, %v472_v3, %v448_v60 }
 0x106   :  { %v564_v35 = vpop.permute.xlu0 %563 }
 0x108   :  { %v480_v38 = vpop.permute.xlu1 %479 }
 0x109   :  { %v502_v39 = vsel %vm54_vm6, %v480_v38, %v452_v51  ;;  %v70_v51 = vadd.s32 %v68_v48, %v64_v46 }
 0x10a   :  { %v576_v40 = vpop.permute.xlu0 %575  ;;  %v3048_v7 = vsel %vm60_vm7, %v530_v23, %v502_v39 }
 0x10b   :  { %v76_v57 = vadd.s32 %v74_v52, %v70_v51 }
 0x10c   :  { %v488_v4 = vpop.permute.xlu1 %487 }
 0x10d   :  { %v506_v44 = vsel %vm54_vm6, %v488_v4, %v456_v8  ;;  %v82_v63 = vadd.s32 %v80_v59, %v76_v57  ;;  %v2737_v59 = vmov 683565275  }
 0x10e   :  { %v584_v45 = vpop.permute.xlu0 %583  ;;  %v3058_v0 = vsel %vm60_vm7, %v538_v29, %v506_v44 }
 0x10f   :  { %v84_v14 = vmul.u32 11, %v82_v63 }
 0x111   :  { %v514_v49 = vpop.permute.xlu1 %513  ;;  %v3104_v21 = vsub.s32 %v2862_v24, %v84_v14 }
 0x112   :  { %v544_v6 = vsel %vm60_vm7, %v514_v49, %v494_v58  ;;  %v592_v50 = vpop.permute.xlu0 %591 }
 0x113   :  { %v3071_v53 = vsel %vm66_vm8, %v564_v35, %v544_v6  ;;  %v2460_v27 = vadd.s32 4294967295, %v3104_v21  ;;  %vm90_vm0 = vcmp.gt.s32.totalorder %v3104_v21, 5 }
 0x115   :  { %v522_v8 = vpop.permute.xlu1 %521  ;;  %v2462_v3 = vadd.s32 4294967291, %v2460_v27 }
 0x116   :  { %v548_v54 = vsel %vm60_vm7, %v522_v8, %v498_v34 }
 0x117   :  { %v618_v58 = vpop.permute.xlu0 %617  ;;  %v3143_v42 = vsel %vm90_vm0, %v2462_v3, %v2460_v27 }
 0x118   :  { %vm98_vm2 = vcmp.eq.s32.totalorder %v3143_v42, 0 }
 0x119   :  { %v526_v60 = vpop.permute.xlu1 %525  ;;  %v3163_v56 = vsel %vm98_vm2, 3.1415927, %v2736_v55  ;;  %vm102_vm2 = vcmp.eq.s32.totalorder %v3143_v42, 1 }
 0x11a   :  { %v550_v62 = vsel %vm60_vm7, %v526_v60, %v3005_v12  ;;  %v2738_v60 = vmov 2475754826  }
 0x11b   :  { %v3083_v9 = vpop.permute.xlu0 %629  ;;  %v3087_v10 = vsel %vm66_vm8, %v576_v40, %v550_v62  ;;  %v2739_v62 = vmov 2131351028  }
 0x11d   :  { %v534_v13 = vpop.permute.xlu1 %533 }
 0x11e   :  { %v554_v2 = vsel %vm60_vm7, %v534_v13, %v3014_v18 }
 0x11f   :  { %v3092_v15 = vpop.permute.xlu0 %637  ;;  %v3096_v12 = vsel %vm66_vm8, %v584_v45, %v554_v2  ;;  %v2741_v2 = vmov 920167782  }
 0x121   :  { %v542_v17 = vpop.permute.xlu1 %541 }
 0x122   :  { %v558_v19 = vsel %vm60_vm7, %v542_v17, %v3023_v25 }
 0x123   :  { %v3108_v18 = vsel %vm66_vm8, %v592_v50, %v558_v19 }
 0x124   :  { %v3110_v22 = vpop.permute.xlu0 %663 }
 0x125   :  { %v711_v23 = vmul.f32 %v3110_v22, %v3101_v20 }
 0x126   :  { %v568_v26 = vpop.permute.xlu1 %567 }
 0x127   :  { %v3115_v1 = vadd.f32 1.5707964, %v711_v23  ;;  %v596_v25 = vsel %vm66_vm8, %v568_v26, %v3033_v30 }
 0x128   :  { %v3120_v28 = vpop.permute.xlu0 %675  ;;  %v3156_v48 = vsel %vm72_vm9, %v618_v58, %v596_v25  ;;  %v2742_v25 = vmov 1326507024  }
 0x129   :  { %v846_v29 = vand.u32 2147483647, %v3115_v1  ;;  %v849_v31 = vand.u32 2139095040, %v3115_v1  ;;  %v717_v32 = vmul.f32 %v3120_v28, %v3101_v20 }
 0x12a   :  { %v572_v33 = vpop.permute.xlu1 %571 }
 0x12b   :  { %v850_v34 = vshrl.u32 %v849_v31, 23  ;;  %v3128_v35 = vsel %vm66_vm8, %v572_v33, %v548_v54  ;;  %v853_v30 = vand.u32 8388607, %v846_v29  ;;  %v3133_v36 = vadd.f32 1.5707964, %v717_v32 }
 0x12c   :  { %v3135_v5 = vpop.permute.xlu0 %683 }
 0x12d   :  { %v2468_v37 = vadd.s32 4294967169, %v850_v34  ;;  %v721_v38 = vmul.f32 %v3135_v5, %v3101_v20  ;;  %v1470_v39 = vand.u32 2147483647, %v3133_v36  ;;  %v1473_v40 = vand.u32 2139095040, %v3133_v36 }
 0x12e   :  { %v580_v41 = vpop.permute.xlu1 %579  ;;  %v854_v45 = vor.u32 8388608, %v853_v30 }
 0x12f   :  { %v856_v43 = vadd.s32 1, %v2468_v37  ;;  %v3145_v4 = vadd.f32 1.5707964, %v721_v38  ;;  %v3150_v44 = vsel %vm66_vm8, %v580_v41, %v3048_v7  ;;  %v1474_v46 = vshrl.u32 %v1473_v40, 23 }
 0x130   :  { %v1477_v47 = vand.u32 8388607, %v1470_v39  ;;  %v3160_v7 = vshll.u32 %v854_v45, 8 }
 0x131   :  { %vm857_vm1 = vcmp.gt.s32.totalorder %v856_v43, 0  ;;  %v2492_v6 = vadd.s32 4294967169, %v1474_v46  ;;  %v1889_v50 = vand.u32 2139095040, %v3145_v4 }
 0x132   :  { %v858_v49 = vsel %vm857_vm1, %v856_v43, 0  ;;  %v1478_v8 = vor.u32 8388608, %v1477_v47 }
 0x133   :  { %v859_v51 = vshrl.u32 %v858_v49, 5  ;;  %v860_v52 = vand.u32 31, %v858_v49  ;;  %v1480_v54 = vadd.s32 1, %v2492_v6  ;;  %v1890_v16 = vshrl.u32 %v1889_v50, 23 }
 0x134   :  { %v3179_v49 = vshll.u32 %v1478_v8, 8 }
 0x135   :  { %v861_v57 = vsub.s32 32, %v860_v52  ;;  %v863_v58 = vshll.u32 %v2737_v59, %v860_v52  ;;  %v866_v61 = vshll.u32 %v2738_v60, %v860_v52  ;;  %v869_v63 = vshll.u32 %v2739_v62, %v860_v52 }
 0x136   :  { %v872_v13 = vshll.u32 %v2740_v11, %v860_v52  ;;  %v875_v14 = vshll.u32 %v2741_v2, %v860_v52  ;;  %vm878_vm3 = vcmp.lt.s32.totalorder %v859_v51, 1  ;;  %vm879_vm4 = vcmp.lt.s32.totalorder %v859_v51, 2 }
 0x137   :  { %v862_v17 = vshrl.u32 %v2737_v59, %v861_v57  ;;  %v864_v19 = vshrl.u32 %v2738_v60, %v861_v57  ;;  %v867_v23 = vshrl.u32 %v2739_v62, %v861_v57  ;;  %v870_v26 = vshrl.u32 %v2740_v11, %v861_v57 }
 0x138   :  { %v873_v27 = vshrl.u32 %v2741_v2, %v861_v57  ;;  %v876_v31 = vshrl.u32 %v2742_v25, %v861_v57  ;;  %vm881_vm5 = vcmp.lt.s32.totalorder %v859_v51, 4  ;;  %vm1481_vm6 = vcmp.gt.s32.totalorder %v1480_v54, 0 }
 0x139   :  { %v865_v32 = vor.u32 %v864_v19, %v863_v58  ;;  %v868_v33 = vor.u32 %v867_v23, %v866_v61  ;;  %v871_v3 = vor.u32 %v870_v26, %v869_v63  ;;  %vm880_vm7 = vcmp.lt.s32.totalorder %v859_v51, 3 }
 0x13a   :  { %v874_v34 = vor.u32 %v873_v27, %v872_v13  ;;  %v877_v30 = vor.u32 %v876_v31, %v875_v14  ;;  %v1482_v37 = vsel %vm1481_vm6, %v1480_v54, 0  ;;  %v2508_v63 = vadd.s32 4294967169, %v1890_v16 }
 0x13b   :  { %v882_v38 = vsel %vm878_vm3, %v862_v17, %v865_v32  ;;  %v883_v40 = vsel %vm881_vm5, %v871_v3, 2102212464  ;;  %v886_v41 = vsel %vm878_vm3, %v865_v32, %v868_v33  ;;  %v890_v43 = vsel %vm878_vm3, %v868_v33, %v871_v3 }
 0x13c   :  { %v884_v45 = vsel %vm880_vm7, %v868_v33, %v883_v40  ;;  %v887_v46 = vsel %vm881_vm5, %v874_v34, 920167782  ;;  %v891_v47 = vsel %vm881_vm5, %v877_v30, 1326507024  ;;  %v1483_v52 = vshrl.u32 %v1482_v37, 5 }
 0x13d   :  { %v888_v6 = vsel %vm880_vm7, %v871_v3, %v887_v46  ;;  %v892_v50 = vsel %vm880_vm7, %v874_v34, %v891_v47  ;;  %v1484_v57 = vand.u32 31, %v1482_v37  ;;  %v885_v58 = vsel %vm879_vm4, %v882_v38, %v884_v45 }
 0x13e   :  { %v889_v54 = vsel %vm879_vm4, %v886_v41, %v888_v6  ;;  %v893_v61 = vsel %vm879_vm4, %v890_v43, %v892_v50  ;;  %v901_v51 = vmul.u32 %v3160_v7, %v885_v58  ;;  %vm1502_vm10 = vcmp.lt.s32.totalorder %v1483_v52, 1 }
 0x13f   :  { %v3185_v13 = vmul.u32.u64.low %v3160_v7, %v893_v61  ;;  %v3186_v14 = vmul.u32.u64.high %v3160_v7, %v893_v61, %v3185_v13  ;;  %v3189_v17 = vmul.u32.u64.low %v3160_v7, %v889_v54  ;;  %v3190_v19 = vmul.u32.u64.high %v3160_v7, %v889_v54, %v3189_v17 }
 0x140   :  { %v1485_v8 = vsub.s32 32, %v1484_v57  ;;  %v1487_v23 = vshll.u32 %v2737_v59, %v1484_v57  ;;  %v1490_v26 = vshll.u32 %v2738_v60, %v1484_v57  ;;  %v1493_v27 = vshll.u32 %v2739_v62, %v1484_v57 }
 0x141   :  { %v1496_v16 = vshll.u32 %v2740_v11, %v1484_v57  ;;  %v1499_v31 = vshll.u32 %v2741_v2, %v1484_v57  ;;  %vm903_vm12 = vc.u32 %v3186_v14, %v3189_v17  ;;  %v904_v30 = vadd.s32 1, %v3190_v19 }
 0x142   :  { %v1486_v32 = vshrl.u32 %v2737_v59, %v1485_v8  ;;  %v1488_v33 = vshrl.u32 %v2738_v60, %v1485_v8  ;;  %v1491_v3 = vshrl.u32 %v2739_v62, %v1485_v8  ;;  %v1494_v34 = vshrl.u32 %v2740_v11, %v1485_v8 }
 0x143   :  { %v1497_v7 = vshrl.u32 %v2741_v2, %v1485_v8  ;;  %vm1503_vm13 = vcmp.lt.s32.totalorder %v1483_v52, 2  ;;  %v1500_v41 = vshrl.u32 %v2742_v25, %v1485_v8  ;;  %v905_v43 = vsel %vm903_vm12, %v904_v30, %v3190_v19 }
 0x144   :  { %v1489_v37 = vor.u32 %v1488_v33, %v1487_v23  ;;  %v1492_v38 = vor.u32 %v1491_v3, %v1490_v26  ;;  %v1495_v40 = vor.u32 %v1494_v34, %v1493_v27  ;;  %vm1504_vm14 = vcmp.lt.s32.totalorder %v1483_v52, 3  ;;  %v588_v34 = vpop.permute.xlu1 %587 }
 0x145   :  { %v1498_v45 = vor.u32 %v1497_v7, %v1496_v16  ;;  %vm1505_vm15 = vcmp.lt.s32.totalorder %v1483_v52, 4  ;;  %v906_v46 = vadd.s32 %v905_v43, %v901_v51  ;;  %v1501_v47 = vor.u32 %v1500_v41, %v1499_v31 }
 0x146   :  { %v1506_v6 = vsel %vm1502_vm10, %v1486_v32, %v1489_v37  ;;  %v1507_v50 = vsel %vm1505_vm15, %v1495_v40, 2102212464  ;;  %v1510_v58 = vsel %vm1502_vm10, %v1489_v37, %v1492_v38  ;;  %v1514_v61 = vsel %vm1502_vm10, %v1492_v38, %v1495_v40 }
 0x147   :  { %v1508_v57 = vsel %vm1504_vm14, %v1492_v38, %v1507_v50  ;;  %v1511_v54 = vsel %vm1505_vm15, %v1498_v45, 920167782  ;;  %v907_v13 = vadd.s32 536870912, %v906_v46  ;;  %v1515_v23 = vsel %vm1505_vm15, %v1501_v47, 1326507024  ;;  %v3247_v50 = vpop.permute.xlu0 %691 }
 0x148   :  { %v1512_v8 = vsel %vm1504_vm14, %v1495_v40, %v1511_v54  ;;  %v4522_v19 = vand.u32 2147483647, %v3145_v4  ;;  %v1509_v26 = vsel %vm1503_vm13, %v1506_v6, %v1508_v57  ;;  %v1516_v51 = vsel %vm1504_vm14, %v1498_v45, %v1515_v23 }
 0x149   :  { %v1513_v27 = vsel %vm1503_vm13, %v1510_v58, %v1512_v8  ;;  %v1896_v16 = vadd.s32 1, %v2508_v63  ;;  %v3218_v31 = vshrl.u32 %v907_v13, 30  ;;  %v1517_v32 = vsel %vm1503_vm13, %v1514_v61, %v1516_v51 }
 0x14a   :  { %v3222_v33 = vmul.u32.u64.low %v3179_v49, %v1513_v27  ;;  %v3223_v3 = vmul.u32.u64.high %v3179_v49, %v1513_v27, %v3222_v33  ;;  %v3227_v30 = vmul.u32.u64.low %v3179_v49, %v1517_v32  ;;  %v3228_v7 = vmul.u32.u64.high %v3179_v49, %v1517_v32, %v3227_v30 }
 0x14b   :  { %vm1897_vm1 = vcmp.gt.s32.totalorder %v1896_v16, 0  ;;  %v909_v37 = vshll.u32 %v3218_v31, 30  ;;  %v1893_v63 = vand.u32 8388607, %v4522_v19  ;;  %v1525_v38 = vmul.u32 %v3179_v49, %v1509_v26 }
 0x14c   :  { %v1898_v52 = vsel %vm1897_vm1, %v1896_v16, 0  ;;  %v3238_v41 = vsel %vm66_vm8, %v588_v34, %v3058_v0  ;;  %v1528_v45 = vadd.s32 1, %v3223_v3  ;;  %v104_v47 = vsel %vm102_vm2, 6.2831855, %v3163_v56 }
 0x14d   :  { %v1900_v40 = vand.u32 31, %v1898_v52  ;;  %v3240_v43 = vsub.s32 %v906_v46, %v909_v37  ;;  %vm106_vm3 = vcmp.eq.s32.totalorder %v3143_v42, 2  ;;  %vm1527_vm4 = vc.u32 %v3228_v7, %v3222_v33 }
 0x14e   :  { %v1529_v57 = vsel %vm1527_vm4, %v1528_v45, %v3223_v3  ;;  %v1894_v0 = vor.u32 8388608, %v1893_v63  ;;  %v3251_v46 = vsel %vm106_vm3, 12.566371, %v104_v47  ;;  %v902_v54 = vadd.s32 %v3189_v17, %v3186_v14 }
 0x14f   :  { %v1901_v6 = vsub.s32 32, %v1900_v40  ;;  %v912_v49 = vsub.s32 0, %v3240_v43  ;;  %v1530_v58 = vadd.s32 %v1529_v57, %v1525_v38  ;;  %v1903_v61 = vshll.u32 %v2737_v59, %v1900_v40 }
 0x150   :  { %v725_v13 = vmul.f32 %v3247_v50, %v3101_v20  ;;  %vm848_vm8 = vcmp.lt.s32.totalorder %v3115_v1, 0  ;;  %v1906_v26 = vshll.u32 %v2738_v60, %v1900_v40  ;;  %v3263_v16 = vshrl.u32 %v1898_v52, 5 }
 0x151   :  { %v2469_v56 = vmin.u32 %v912_v49, %v3240_v43  ;;  %v1531_v8 = vadd.s32 536870912, %v1530_v58  ;;  %v1904_v23 = vshrl.u32 %v2738_v60, %v1901_v6  ;;  %v1907_v27 = vshrl.u32 %v2739_v62, %v1901_v6 }
 0x152   :  { %v1912_v14 = vshll.u32 %v2740_v11, %v1900_v40  ;;  %v3266_v17 = vshll.u32 %v1894_v0, 8  ;;  %v1909_v3 = vshll.u32 %v2739_v62, %v1900_v40  ;;  %v1910_v34 = vshrl.u32 %v2740_v11, %v1901_v6 }
 0x153   :  { %v914_v51 = vclz %v2469_v56  ;;  %v3268_v32 = vshrl.u32 %v1531_v8, 30  ;;  %v1913_v30 = vshrl.u32 %v2741_v2, %v1901_v6  ;;  %v932_v63 = vsub.s32 4, %v3218_v31 }
 0x154   :  { %v1902_v38 = vshrl.u32 %v2737_v59, %v1901_v6  ;;  %v3275_v45 = vadd.f32 1.5707964, %v725_v13  ;;  %vm3279_vm5 = vcmp.le.f32.partialorder %v846_v29, 0.7853982  ;;  %v1905_v49 = vor.u32 %v1904_v23, %v1903_v61 }
 0x155   :  { %v2470_v37 = vadd.s32 4294967294, %v914_v51  ;;  %v1533_v47 = vshll.u32 %v3268_v32, 30  ;;  %v1908_v57 = vor.u32 %v1907_v27, %v1906_v26  ;;  %v1915_v0 = vshll.u32 %v2741_v2, %v1900_v40 }
 0x156   :  { %v1914_v56 = vor.u32 %v1913_v30, %v1912_v14  ;;  %v1916_v8 = vshrl.u32 %v2742_v25, %v1901_v6  ;;  %vm1918_vm7 = vcmp.lt.s32.totalorder %v3263_v16, 1  ;;  %vm1472_vm10 = vcmp.lt.s32.totalorder %v3133_v36, 0 }
 0x157   :  { %vm2471_vm6 = vcmp.lt.s32.totalorder %v2470_v37, 0  ;;  %v3288_v51 = vsub.s32 %v1530_v58, %v1533_v47  ;;  %v1911_v29 = vor.u32 %v1910_v34, %v1909_v3  ;;  %vm1921_vm12 = vcmp.lt.s32.totalorder %v3263_v16, 4 }
 0x158   :  { %v917_v13 = vsel %vm2471_vm6, 0, %v2470_v37  ;;  %vm1920_vm13 = vcmp.lt.s32.totalorder %v3263_v16, 3  ;;  %vm1919_vm14 = vcmp.lt.s32.totalorder %v3263_v16, 2  ;;  %v1926_v58 = vsel %vm1918_vm7, %v1905_v49, %v1908_v57 }
 0x159   :  { %v918_v19 = vsub.s32 32, %v917_v13  ;;  %v919_v61 = vshll.u32 %v3240_v43, %v917_v13  ;;  %v922_v23 = vsub.s32 4294967266, %v917_v13  ;;  %v1536_v40 = vsub.s32 0, %v3288_v51 }
 0x15a   :  { %v1923_v6 = vsel %vm1921_vm12, %v1911_v29, 2102212464  ;;  %vm110_vm15 = vcmp.eq.s32.totalorder %v3143_v42, 3  ;;  %vm3302_vm1 = vcmp.le.f32.partialorder %v1470_v39, 0.7853982  ;;  %v1917_v14 = vor.u32 %v1916_v8, %v1915_v0 }
 0x15b   :  { %v920_v26 = vshrl.u32 %v902_v54, %v918_v19  ;;  %v923_v27 = vadd.s32 127, %v922_v23  ;;  %v1927_v3 = vsel %vm1921_vm12, %v1914_v56, 920167782  ;;  %v2493_v34 = vmin.u32 %v1536_v40, %v3288_v51 }
 0x15c   :  { %v1922_v30 = vsel %vm1918_vm7, %v1902_v38, %v1905_v49  ;;  %v1924_v37 = vsel %vm1920_vm13, %v1908_v57, %v1923_v6  ;;  %v1928_v19 = vsel %vm1920_vm13, %v1911_v29, %v1927_v3  ;;  %v933_v47 = vsel %vm848_vm8, %v932_v63, %v3218_v31 }
 0x15d   :  { %v921_v54 = vor.u32 %v920_v26, %v919_v61  ;;  %v924_v39 = vshll.u32 %v923_v27, 23  ;;  %v1929_v0 = vsel %vm1919_vm14, %v1926_v58, %v1928_v19  ;;  %v1538_v8 = vclz %v2493_v34  ;;  %v614_v27 = vpop.permute.xlu1 %613 }
 0x15e   :  { %v1556_v13 = vsub.s32 4, %v3268_v32  ;;  %v1930_v38 = vsel %vm1918_vm7, %v1908_v57, %v1911_v29  ;;  %v2302_v49 = vand.u32 2147483647, %v3275_v45  ;;  %v1925_v61 = vsel %vm1919_vm14, %v1922_v30, %v1924_v37 }
 0x15f   :  { %v925_v23 = vor.u32 4788187, %v924_v39  ;;  %v928_v40 = vcvt.s32.f32 %v921_v54  ;;  %v1931_v6 = vsel %vm1921_vm12, %v1917_v14, 1326507024  ;;  %v2494_v31 = vadd.s32 4294967294, %v1538_v8 }
 0x160   :  { %v1932_v63 = vsel %vm1920_vm13, %v1914_v56, %v1931_v6  ;;  %v3331_v58 = vmul.u32.u64.low %v3266_v17, %v1929_v0  ;;  %v3332_v26 = vmul.u32.u64.high %v3266_v17, %v1929_v0, %v3331_v58  ;;  %v935_v29 = vsel %vm3279_vm5, 0, %v933_v47 }
 0x161   :  { %v926_v57 = vand.u32 2147483647, %v925_v23  ;;  %v1526_v3 = vadd.s32 %v3222_v33, %v3228_v7  ;;  %v1933_v34 = vsel %vm1919_vm14, %v1930_v38, %v1932_v63  ;;  %vm2495_vm2 = vcmp.lt.s32.totalorder %v2494_v31, 0 }
 0x162   :  { %v3341_v14 = vmul.u32.u64.low %v3266_v17, %v1933_v34  ;;  %v3342_v30 = vmul.u32.u64.high %v3266_v17, %v1933_v34, %v3341_v14  ;;  %v2305_v56 = vand.u32 2139095040, %v3275_v45  ;;  %v1541_v19 = vsel %vm2495_vm2, 0, %v2494_v31 }
 0x163   :  { %v929_v37 = vmul.f32 %v928_v40, %v926_v57  ;;  %v1557_v54 = vsel %vm1472_vm10, %v1556_v13, %v3268_v32  ;;  %v1941_v39 = vmul.u32 %v3266_v17, %v1925_v61  ;;  %v1542_v47 = vsub.s32 32, %v1541_v19  ;;  %v622_v17 = vpop.permute.xlu1 %621 }
 0x164   :  { %v1543_v33 = vshll.u32 %v3288_v51, %v1541_v19  ;;  %v1546_v7 = vsub.s32 4294967266, %v1541_v19  ;;  %v1944_v16 = vadd.s32 1, %v3332_v26  ;;  %v939_v8 = vadd.s32 3, %v935_v29 }
 0x165   :  { %v930_v0 = vxor.u32 2147483648, %v929_v37  ;;  %v2306_v38 = vshrl.u32 %v2305_v56, 23  ;;  %v112_v23 = vsel %vm110_vm15, 25.132742, %v3251_v46  ;;  %v1544_v40 = vshrl.u32 %v1526_v3, %v1542_v47 }
 0x166   :  { %v1547_v6 = vadd.s32 127, %v1546_v7  ;;  %v1559_v32 = vsel %vm3302_vm1, 0, %v1557_v54  ;;  %vm1943_vm3 = vc.u32 %v3342_v30, %v3331_v58  ;;  %v2309_v31 = vand.u32 8388607, %v2302_v49 }
 0x167   :  { %v931_v51 = vsel %vm848_vm8, %v930_v0, %v929_v37  ;;  %v1945_v13 = vsel %vm1943_vm3, %v1944_v16, %v3332_v26  ;;  %v2524_v61 = vadd.s32 4294967169, %v2306_v38  ;;  %v1545_v63 = vor.u32 %v1544_v40, %v1543_v33  ;;  %v626_v16 = vpop.permute.xlu1 %625 }
 0x168   :  { %v934_v46 = vsel %vm3279_vm5, %v3115_v1, %v931_v51  ;;  %v1548_v57 = vshll.u32 %v1547_v6, 23  ;;  %v1946_v29 = vadd.s32 %v1945_v13, %v1941_v39  ;;  %vm114_vm4 = vcmp.eq.s32.totalorder %v3143_v42, 4 }
 0x169   :  { %2638 = vcosq.f32 %v934_v46  ;;  %v2312_v3 = vadd.s32 1, %v2524_v61  ;;  %v3369_v34 = vsel %vm72_vm9, %v622_v17, %v3128_v35  ;;  %v644_v52 = vsel %vm72_vm9, %v614_v27, %v3071_v53 }
 0x16a   :  { %2640 = vsinq.f32 %v934_v46  ;;  %v1549_v26 = vor.u32 4788187, %v1548_v57  ;;  %v1947_v14 = vadd.s32 536870912, %v1946_v29  ;;  %v3374_v56 = vand.u32 3, %v939_v8 }
 0x16b   :  { %v1563_v37 = vadd.s32 3, %v1559_v32  ;;  %v2310_v19 = vor.u32 8388608, %v2309_v31  ;;  %vm2313_vm8 = vcmp.gt.s32.totalorder %v2312_v3, 0  ;;  %v1552_v39 = vcvt.s32.f32 %v1545_v63 }
 0x16c   :  { %v1550_v54 = vand.u32 2147483647, %v1549_v26  ;;  %v3376_v42 = vshrl.u32 %v1947_v14, 30  ;;  %v2314_v47 = vsel %vm2313_vm8, %v2312_v3, 0  ;;  %v3378_v35 = vsel %vm114_vm4, 50.265484, %v112_v23 }
 0x16d   :  { %v2316_v33 = vand.u32 31, %v2314_v47  ;;  %v3383_v7 = vsel %vm78_vm11, %v3110_v22, %v644_v52  ;;  %v3389_v0 = vsel %vm90_vm0, 1.5707964, %v2736_v55  ;;  %v3391_v8 = vand.u32 3, %v1563_v37 }
 0x16e   :  { %v1553_v53 = vmul.f32 %v1552_v39, %v1550_v54  ;;  %v1949_v27 = vshll.u32 %v3376_v42, 30  ;;  %v3394_v38 = vadd.s32 %v3331_v58, %v3342_v30  ;;  %v3396_v40 = vshll.u32 %v2310_v19, 8 }
 0x16f   :  { %v2317_v23 = vsub.s32 32, %v2316_v33  ;;  %vm945_vm5 = vcmp.eq.s32.totalorder %v3374_v56, 2  ;;  %v710_v32 = vmul.f32 %v3383_v7, %v3378_v35  ;;  %v650_v55 = vsel %vm72_vm9, %v626_v16, %v3087_v10 }
 0x170   :  { %v1554_v22 = vxor.u32 2147483648, %v1553_v53  ;;  %v3399_v6 = vsub.s32 %v1946_v29, %v1949_v27  ;;  %vm942_vm0 = vcmp.eq.s32.totalorder %v3374_v56, 0  ;;  %v3407_v17 = vshrl.u32 %v2314_v47, 5 }
 0x171   :  { %v2319_v58 = vshll.u32 %v2737_v59, %v2316_v33  ;;  %v2322_v30 = vshll.u32 %v2738_v60, %v2316_v33  ;;  %v2328_v51 = vshll.u32 %v2740_v11, %v2316_v33  ;;  %vm2427_vm6 = vcmask 31744  }
 0x172   :  { %vm941_vm7 = vcmp.lt.s32.totalorder %v3374_v56, 2  ;;  %v1555_v13 = vsel %vm1472_vm10, %v1554_v22, %v1553_v53  ;;  %v1952_v61 = vsub.s32 0, %v3399_v6  ;;  %v2320_v10 = vshrl.u32 %v2738_v60, %v2317_v23 }
 0x173   :  { %v2323_v31 = vshrl.u32 %v2739_v62, %v2317_v23  ;;  %vm938_vm12 = vweird.f32 %v3115_v1  ;;  %v1558_v46 = vsel %vm3302_vm1, %v3133_v36, %v1555_v13  ;;  %v2325_v63 = vshll.u32 %v2739_v62, %v2316_v33 }
 0x174   :  { %v2326_v57 = vshrl.u32 %v2740_v11, %v2317_v23  ;;  %v2329_v29 = vshrl.u32 %v2741_v2, %v2317_v23  ;;  %2642 = vcosq.f32 %v1558_v46  ;;  %vm1888_vm10 = vcmp.lt.s32.totalorder %v3145_v4, 0 }
 0x175   :  { %v2509_v3 = vmin.u32 %v1952_v61, %v3399_v6  ;;  %v3428_v26 = vadd.f32 %v710_v32, %v3389_v0  ;;  %v3433_v14 = vsel %vm78_vm11, %v3120_v28, %v650_v55  ;;  %2644 = vsinq.f32 %v1558_v46 }
 0x176   :  { %v1972_v43 = vsub.s32 4, %v3376_v42  ;;  %v2331_v52 = vshll.u32 %v2741_v2, %v2316_v33  ;;  %v2332_v37 = vshrl.u32 %v2742_v25, %v2317_v23  ;;  %v2639_v19 = vpop.eup %2638  ;;  %v2321_v39 = vor.u32 %v2320_v10, %v2319_v58 }
 0x177   :  { %v1954_v54 = vclz %v2509_v3  ;;  %v2324_v47 = vor.u32 %v2323_v31, %v2322_v30  ;;  %v2330_v16 = vor.u32 %v2329_v29, %v2328_v51  ;;  %v2641_v53 = vpop.eup %2640  ;;  %v946_v27 = vxor.u32 2147483648, %v2639_v19 }
 0x178   :  { %v2318_v22 = vshrl.u32 %v2737_v59, %v2317_v23  ;;  %v2327_v32 = vor.u32 %v2326_v57, %v2325_v63  ;;  %vm2334_vm13 = vcmp.lt.s32.totalorder %v3407_v17, 1  ;;  %v943_v28 = vxor.u32 2147483648, %v2641_v53 }
 0x179   :  { %v2510_v55 = vadd.s32 4294967294, %v1954_v54  ;;  %vm2336_vm14 = vcmp.lt.s32.totalorder %v3407_v17, 3  ;;  %vm2337_vm15 = vcmp.lt.s32.totalorder %v3407_v17, 4  ;;  %v947_v33 = vsel %vm945_vm5, %v946_v27, %v2641_v53 }
 0x17a   :  { %v2333_v13 = vor.u32 %v2332_v37, %v2331_v52  ;;  %vm2335_vm1 = vcmp.lt.s32.totalorder %v3407_v17, 2  ;;  %v2339_v58 = vsel %vm2337_vm15, %v2327_v32, 2102212464  ;;  %v944_v23 = vsel %vm942_vm0, %v2639_v19, %v943_v28 }
 0x17b   :  { %v4527_v30 = vand.u32 2147483647, %v3145_v4  ;;  %vm2511_vm3 = vcmp.lt.s32.totalorder %v2510_v55, 0  ;;  %v2342_v61 = vsel %vm2334_vm13, %v2321_v39, %v2324_v47  ;;  %v2343_v10 = vsel %vm2337_vm15, %v2330_v16, 920167782 }
 0x17c   :  { %v948_v31 = vsel %vm941_vm7, %v944_v23, %v947_v33  ;;  %v1957_v46 = vsel %vm2511_vm3, 0, %v2510_v55  ;;  %v2338_v63 = vsel %vm2334_vm13, %v2318_v22, %v2321_v39  ;;  %v2344_v57 = vsel %vm2336_vm14, %v2327_v32, %v2343_v10 }
 0x17d   :  { %vm3451_vm2 = vcmp.le.f32.partialorder %v4527_v30, 0.7853982  ;;  %v949_v29 = vsel %vm938_vm12, nan, %v948_v31  ;;  %v1958_v3 = vsub.s32 32, %v1957_v46  ;;  %v1962_v52 = vsub.s32 4294967266, %v1957_v46 }
 0x17e   :  { %v2340_v37 = vsel %vm2336_vm14, %v2324_v47, %v2339_v58  ;;  %2428 = vst.msk [vmem:[#allocation2 + $0x8] sm:$0xff] %vm2427_vm6, %v949_v29  ;;  %v1973_v56 = vsel %vm1888_vm10, %v1972_v43, %v3376_v42  ;;  %v2345_v19 = vsel %vm2335_vm1, %v2342_v61, %v2344_v57  ;;  %v2346_v54 = vsel %vm2334_vm13, %v2324_v47, %v2327_v32 }
 0x17f   :  { %v2347_v1 = vsel %vm2337_vm15, %v2333_v13, 1326507024  ;;  %vm1562_vm4 = vweird.f32 %v3133_v36  ;;  %v1959_v39 = vshll.u32 %v3399_v6, %v1957_v46  ;;  %v1960_v53 = vshrl.u32 %v3394_v38, %v1958_v3 }
 0x180   :  { %v1963_v27 = vadd.s32 127, %v1962_v52  ;;  %v2348_v22 = vsel %vm2336_vm14, %v2330_v16, %v2347_v1  ;;  %v2341_v42 = vsel %vm2335_vm1, %v2338_v63, %v2340_v37  ;;  %vm1565_vm8 = vcmp.lt.s32.totalorder %v3391_v8, 2 }
 0x181   :  { %v2349_v43 = vsel %vm2335_vm1, %v2346_v54, %v2348_v22  ;;  %v3489_v47 = vmul.u32.u64.low %v3396_v40, %v2345_v19  ;;  %v3490_v32 = vmul.u32.u64.high %v3396_v40, %v2345_v19, %v3489_v47  ;;  %v1961_v28 = vor.u32 %v1960_v53, %v1959_v39  ;;  %v2643_v33 = vpop.eup %2642 }
 0x182   :  { %v1964_v55 = vshll.u32 %v1963_v27, 23  ;;  %v3494_v6 = vmul.u32.u64.low %v3396_v40, %v2349_v43  ;;  %v3495_v38 = vmul.u32.u64.high %v3396_v40, %v2349_v43, %v3494_v6  ;;  %vm1566_vm5 = vcmp.eq.s32.totalorder %v3391_v8, 0  ;;  %v2645_v16 = vpop.eup %2644 }
 0x183   :  { %vm1569_vm0 = vcmp.eq.s32.totalorder %v3391_v8, 2  ;;  %v745_v17 = vand.u32 2139095040, %v3428_v26  ;;  %v1570_v13 = vxor.u32 2147483648, %v2643_v33  ;;  %v2357_v23 = vmul.u32 %v3396_v40, %v2341_v42  ;;  %v634_v8 = vpop.permute.xlu1 %633 }
 0x184   :  { %v1965_v58 = vor.u32 4788187, %v1964_v55  ;;  %v716_v30 = vmul.f32 %v3433_v14, %v3378_v35  ;;  %v1567_v61 = vxor.u32 2147483648, %v2645_v16  ;;  %v1975_v10 = vsel %vm3451_vm2, 0, %v1973_v56 }
 0x185   :  { %v2360_v31 = vadd.s32 1, %v3490_v32  ;;  %v746_v46 = vshrl.u32 %v745_v17, 23  ;;  %v1571_v63 = vsel %vm1569_vm0, %v1570_v13, %v2645_v16  ;;  %v1968_v29 = vcvt.s32.f32 %v1961_v28 }
 0x186   :  { %v1966_v57 = vand.u32 2147483647, %v1965_v58  ;;  %vm2359_vm7 = vc.u32 %v3495_v38, %v3489_v47  ;;  %v1568_v3 = vsel %vm1566_vm5, %v2643_v33, %v1567_v61  ;;  %v742_v52 = vand.u32 2147483647, %v3428_v26 }
 0x187   :  { %v2361_v40 = vsel %vm2359_vm7, %v2360_v31, %v3490_v32  ;;  %v2464_v37 = vadd.s32 4294967169, %v746_v46  ;;  %v1572_v56 = vsel %vm1565_vm8, %v1568_v3, %v1571_v63  ;;  %v3516_v1 = vadd.f32 %v716_v30, %v3389_v0 }
 0x188   :  { %v1969_v19 = vmul.f32 %v1968_v29, %v1966_v57  ;;  %v2362_v54 = vadd.s32 %v2361_v40, %v2357_v23  ;;  %v1573_v39 = vsel %vm1562_vm4, nan, %v1572_v56  ;;  %v1979_v22 = vadd.s32 3, %v1975_v10 }
 0x189   :  { %v752_v53 = vadd.s32 1, %v2464_v37  ;;  %2434 = vst.msk [vmem:[#allocation2 + $0x38] sm:$0xff] %vm2427_vm6, %v1573_v39  ;;  %v749_v43 = vand.u32 8388607, %v742_v52  ;;  %v1369_v36 = vand.u32 2139095040, %v3516_v1  ;;  %v3537_v13 = vsel %vm72_vm9, %v634_v8, %v3096_v12 }
 0x18a   :  { %v1970_v27 = vxor.u32 2147483648, %v1969_v19  ;;  %v2363_v42 = vadd.s32 536870912, %v2362_v54  ;;  %v3531_v17 = vand.u32 3, %v1979_v22  ;;  %v1366_v30 = vand.u32 2147483647, %v3516_v1 }
 0x18b   :  { %vm753_vm12 = vcmp.gt.s32.totalorder %v752_v53, 0  ;;  %v750_v58 = vor.u32 8388608, %v749_v43  ;;  %v1370_v31 = vshrl.u32 %v1369_v36, 23  ;;  %vm2304_vm15 = vcmp.lt.s32.totalorder %v3275_v45, 0 }
 0x18c   :  { %v1971_v32 = vsel %vm1888_vm10, %v1970_v27, %v1969_v19  ;;  %v3525_v28 = vshrl.u32 %v2363_v42, 30  ;;  %v754_v55 = vsel %vm753_vm12, %v752_v53, 0  ;;  %v2358_v53 = vadd.s32 %v3489_v47, %v3495_v38 }
 0x18d   :  { %v1974_v6 = vsel %vm3451_vm2, %v3145_v4, %v1971_v32  ;;  %v756_v33 = vand.u32 31, %v754_v55  ;;  %v755_v51 = vshrl.u32 %v754_v55, 5  ;;  %vm1985_vm10 = vcmp.eq.s32.totalorder %v3531_v17, 2 }
 0x18e   :  { %2646 = vcosq.f32 %v1974_v6  ;;  %v2365_v16 = vshll.u32 %v3525_v28, 30  ;;  %v3557_v8 = vshll.u32 %v750_v58, 8  ;;  %v2488_v32 = vadd.s32 4294967169, %v1370_v31 }
 0x18f   :  { %2648 = vsinq.f32 %v1974_v6  ;;  %v757_v23 = vsub.s32 32, %v756_v33  ;;  %v759_v10 = vshll.u32 %v2737_v59, %v756_v33  ;;  %v762_v63 = vshll.u32 %v2738_v60, %v756_v33 }
 0x190   :  { %v3540_v61 = vsub.s32 %v2362_v54, %v2365_v16  ;;  %v765_v12 = vshll.u32 %v2739_v62, %v756_v33  ;;  %v768_v40 = vshll.u32 %v2740_v11, %v756_v33  ;;  %v771_v54 = vshll.u32 %v2741_v2, %v756_v33 }
 0x191   :  { %v760_v46 = vshrl.u32 %v2738_v60, %v757_v23  ;;  %v763_v57 = vshrl.u32 %v2739_v62, %v757_v23  ;;  %v766_v3 = vshrl.u32 %v2740_v11, %v757_v23  ;;  %v769_v37 = vshrl.u32 %v2741_v2, %v757_v23 }
 0x192   :  { %v2368_v29 = vsub.s32 0, %v3540_v61  ;;  %v772_v39 = vshrl.u32 %v2742_v25, %v757_v23  ;;  %v3561_v55 = vand.u32 8388607, %v1366_v30  ;;  %vm1982_vm13 = vcmp.eq.s32.totalorder %v3531_v17, 0 }
 0x193   :  { %v761_v56 = vor.u32 %v760_v46, %v759_v10  ;;  %v764_v19 = vor.u32 %v763_v57, %v762_v63  ;;  %v767_v22 = vor.u32 %v766_v3, %v765_v12  ;;  %v770_v42 = vor.u32 %v769_v37, %v768_v40 }
 0x194   :  { %v2525_v27 = vmin.u32 %v2368_v29, %v3540_v61  ;;  %v773_v43 = vor.u32 %v772_v39, %v771_v54  ;;  %v2388_v6 = vsub.s32 4, %v3525_v28  ;;  %v758_v47 = vshrl.u32 %v2737_v59, %v757_v23 }
 0x195   :  { %vm774_vm14 = vcmp.lt.s32.totalorder %v755_v51, 1  ;;  %vm775_vm1 = vcmp.lt.s32.totalorder %v755_v51, 2  ;;  %vm776_vm2 = vcmp.lt.s32.totalorder %v755_v51, 3  ;;  %vm777_vm3 = vcmp.lt.s32.totalorder %v755_v51, 4 }
 0x196   :  { %v2370_v36 = vclz %v2525_v27  ;;  %v782_v38 = vsel %vm774_vm14, %v761_v56, %v764_v19  ;;  %vm1978_vm4 = vweird.f32 %v3145_v4  ;;  %v779_v16 = vsel %vm777_vm3, %v767_v22, 2102212464 }
 0x197   :  { %v783_v58 = vsel %vm777_vm3, %v770_v42, 920167782  ;;  %v786_v10 = vsel %vm774_vm14, %v764_v19, %v767_v22  ;;  %v778_v31 = vsel %vm774_vm14, %v758_v47, %v761_v56  ;;  %v780_v46 = vsel %vm776_vm2, %v764_v19, %v779_v16 }
 0x198   :  { %v2526_v33 = vadd.s32 4294967294, %v2370_v36  ;;  %v784_v63 = vsel %vm776_vm2, %v767_v22, %v783_v58  ;;  %v787_v57 = vsel %vm777_vm3, %v773_v43, 1326507024  ;;  %vm3570_vm8 = vcmp.le.f32.partialorder %v2302_v49, 0.7853982 }
 0x199   :  { %v785_v12 = vsel %vm775_vm1, %v782_v38, %v784_v63  ;;  %v788_v29 = vsel %vm776_vm2, %v770_v42, %v787_v57  ;;  %v1376_v3 = vadd.s32 1, %v2488_v32  ;;  %v781_v43 = vsel %vm775_vm1, %v778_v31, %v780_v46 }
 0x19a   :  { %vm2527_vm5 = vcmp.lt.s32.totalorder %v2526_v33, 0  ;;  %v789_v54 = vsel %vm775_vm1, %v786_v10, %v788_v29  ;;  %v3577_v56 = vmul.u32.u64.low %v3557_v8, %v785_v12  ;;  %v3578_v19 = vmul.u32.u64.high %v3557_v8, %v785_v12, %v3577_v56 }
 0x19b   :  { %v2647_v40 = vpop.eup %2646  ;;  %v2373_v37 = vsel %vm2527_vm5, 0, %v2526_v33  ;;  %v3584_v42 = vmul.u32.u64.low %v3557_v8, %v789_v54  ;;  %v3585_v32 = vmul.u32.u64.high %v3557_v8, %v789_v54, %v3584_v42  ;;  %vm1377_vm0 = vcmp.gt.s32.totalorder %v1376_v3, 0 }
 0x19c   :  { %v2649_v39 = vpop.eup %2648  ;;  %v1986_v27 = vxor.u32 2147483648, %v2647_v40  ;;  %v2374_v49 = vsub.s32 32, %v2373_v37  ;;  %v2378_v22 = vsub.s32 4294967266, %v2373_v37  ;;  %v2375_v47 = vshll.u32 %v3540_v61, %v2373_v37 }
 0x19d   :  { %v1983_v36 = vxor.u32 2147483648, %v2649_v39  ;;  %vm1981_vm7 = vcmp.lt.s32.totalorder %v3531_v17, 2  ;;  %v800_v51 = vadd.s32 1, %v3578_v19  ;;  %v1378_v10 = vsel %vm1377_vm0, %v1376_v3, 0 }
 0x19e   :  { %v1987_v38 = vsel %vm1985_vm10, %v1986_v27, %v2649_v39  ;;  %v2376_v33 = vshrl.u32 %v2358_v53, %v2374_v49  ;;  %v2379_v16 = vadd.s32 127, %v2378_v22  ;;  %v2389_v63 = vsel %vm2304_vm15, %v2388_v6, %v3525_v28 }
 0x19f   :  { %v1984_v58 = vsel %vm1982_vm13, %v2647_v40, %v1983_v36  ;;  %v797_v57 = vmul.u32 %v3557_v8, %v781_v43  ;;  %vm799_vm12 = vc.u32 %v3585_v32, %v3577_v56  ;;  %v1380_v17 = vand.u32 31, %v1378_v10 }
 0x1a0   :  { %v1988_v31 = vsel %vm1981_vm7, %v1984_v58, %v1987_v38  ;;  %v2377_v61 = vor.u32 %v2376_v33, %v2375_v47  ;;  %v2380_v46 = vshll.u32 %v2379_v16, 23  ;;  %v801_v29 = vsel %vm799_vm12, %v800_v51, %v3578_v19 }
 0x1a1   :  { %v1989_v53 = vsel %vm1978_vm4, nan, %v1988_v31  ;;  %v1374_v3 = vor.u32 8388608, %v3561_v55  ;;  %v3608_v28 = vsel %vm78_vm11, %v3135_v5, %v3537_v13  ;;  %v2391_v4 = vsel %vm3570_vm8, 0, %v2389_v63 }
 0x1a2   :  { %2438 = vst.msk [vmem:[#allocation2 + $0x58] sm:$0xff] %vm2427_vm6, %v1989_v53  ;;  %v2381_v12 = vor.u32 4788187, %v2380_v46  ;;  %v802_v8 = vadd.s32 %v801_v29, %v797_v57  ;;  %v1379_v6 = vshrl.u32 %v1378_v10, 5  ;;  %v1381_v40 = vsub.s32 32, %v1380_v17 }
 0x1a3   :  { %v2384_v54 = vcvt.s32.f32 %v2377_v61  ;;  %v1383_v39 = vshll.u32 %v2737_v59, %v1380_v17  ;;  %v1386_v19 = vshll.u32 %v2738_v60, %v1380_v17  ;;  %v1392_v5 = vshll.u32 %v2740_v11, %v1380_v17 }
 0x1a4   :  { %v2382_v37 = vand.u32 2147483647, %v2381_v12  ;;  %v803_v27 = vadd.s32 536870912, %v802_v8  ;;  %v1384_v55 = vshrl.u32 %v2738_v60, %v1381_v40  ;;  %v1387_v49 = vshrl.u32 %v2739_v62, %v1381_v40 }
 0x1a5   :  { %v1390_v22 = vshrl.u32 %v2740_v11, %v1381_v40  ;;  %v1393_v43 = vshrl.u32 %v2741_v2, %v1381_v40  ;;  %v1396_v36 = vshrl.u32 %v2742_v25, %v1381_v40  ;;  %v1389_v33 = vshll.u32 %v2739_v62, %v1380_v17 }
 0x1a6   :  { %v2385_v13 = vmul.f32 %v2384_v54, %v2382_v37  ;;  %v804_v47 = vshrl.u32 %v803_v27, 30  ;;  %v1385_v42 = vor.u32 %v1384_v55, %v1383_v39  ;;  %v1388_v38 = vor.u32 %v1387_v49, %v1386_v19 }
 0x1a7   :  { %v1394_v58 = vor.u32 %v1393_v43, %v1392_v5  ;;  %v1395_v51 = vshll.u32 %v2741_v2, %v1380_v17  ;;  %v720_v10 = vmul.f32 %v3608_v28, %v3378_v35  ;;  %v2395_v31 = vadd.s32 3, %v2391_v4 }
 0x1a8   :  { %v2386_v16 = vxor.u32 2147483648, %v2385_v13  ;;  %v805_v61 = vshll.u32 %v804_v47, 30  ;;  %v1391_v46 = vor.u32 %v1390_v22, %v1389_v33  ;;  %v1414_v63 = vshll.u32 %v1374_v3, 8 }
 0x1a9   :  { %v1382_v57 = vshrl.u32 %v2737_v59, %v1381_v40  ;;  %v1397_v12 = vor.u32 %v1396_v36, %v1395_v51  ;;  %vm1398_vm10 = vcmp.lt.s32.totalorder %v1379_v6, 1  ;;  %vm1401_vm13 = vcmp.lt.s32.totalorder %v1379_v6, 4 }
 0x1aa   :  { %v2387_v53 = vsel %vm2304_vm15, %v2386_v16, %v2385_v13  ;;  %v3630_v37 = vsub.s32 %v802_v8, %v805_v61  ;;  %v1406_v17 = vsel %vm1398_vm10, %v1385_v42, %v1388_v38  ;;  %vm1399_vm14 = vcmp.lt.s32.totalorder %v1379_v6, 2 }
 0x1ab   :  { %v2390_v29 = vsel %vm3570_vm8, %v3275_v45, %v2387_v53  ;;  %vm1400_vm1 = vcmp.lt.s32.totalorder %v1379_v6, 3  ;;  %v1407_v3 = vsel %vm1401_vm13, %v1394_v58, 920167782  ;;  %v1403_v54 = vsel %vm1401_vm13, %v1391_v46, 2102212464 }
 0x1ac   :  { %2650 = vcosq.f32 %v2390_v29  ;;  %v808_v4 = vsub.s32 0, %v3630_v37  ;;  %v1408_v40 = vsel %vm1400_vm1, %v1391_v46, %v1407_v3  ;;  %v1410_v19 = vsel %vm1398_vm10, %v1388_v38, %v1391_v46 }
 0x1ad   :  { %2652 = vsinq.f32 %v2390_v29  ;;  %v1409_v39 = vsel %vm1399_vm14, %v1406_v17, %v1408_v40  ;;  %v1411_v23 = vsel %vm1401_vm13, %v1397_v12, 1326507024  ;;  %v3637_v8 = vadd.f32 %v720_v10, %v3389_v0 }
 0x1ae   :  { %v2465_v27 = vmin.u32 %v808_v4, %v3630_v37  ;;  %v1402_v55 = vsel %vm1398_vm10, %v1382_v57, %v1385_v42  ;;  %v1412_v49 = vsel %vm1400_vm1, %v1394_v58, %v1411_v23  ;;  %v1404_v5 = vsel %vm1400_vm1, %v1388_v38, %v1403_v54 }
 0x1af   :  { %v1413_v13 = vsel %vm1399_vm14, %v1410_v19, %v1412_v49  ;;  %v3642_v22 = vmul.u32.u64.low %v1414_v63, %v1409_v39  ;;  %v3643_v43 = vmul.u32.u64.high %v1414_v63, %v1409_v39, %v3642_v22  ;;  %v2396_v36 = vand.u32 3, %v2395_v31  ;;  %v642_v31 = vpop.permute.xlu1 %641 }
 0x1b0   :  { %v810_v33 = vclz %v2465_v27  ;;  %v828_v16 = vsub.s32 4, %v804_v47  ;;  %v3646_v51 = vmul.u32.u64.low %v1414_v63, %v1413_v13  ;;  %v3647_v61 = vmul.u32.u64.high %v1414_v63, %v1413_v13, %v3646_v51 }
 0x1b1   :  { %v1785_v10 = vand.u32 2139095040, %v3637_v8  ;;  %v1405_v53 = vsel %vm1399_vm14, %v1402_v55, %v1404_v5  ;;  %vm3653_vm15 = vcmp.le.f32.partialorder %v742_v52, 0.7853982  ;;  %vm744_vm2 = vcmp.lt.s32.totalorder %v3428_v26, 0 }
 0x1b2   :  { %v2466_v46 = vadd.s32 4294967294, %v810_v33  ;;  %v1424_v38 = vadd.s32 1, %v3643_v43  ;;  %vm2397_vm3 = vcmp.lt.s32.totalorder %v2396_v36, 2  ;;  %v829_v57 = vsel %vm744_vm2, %v828_v16, %v804_v47 }
 0x1b3   :  { %v1786_v58 = vshrl.u32 %v1785_v10, 23  ;;  %v1782_v6 = vand.u32 2147483647, %v3637_v8  ;;  %vm2394_vm8 = vweird.f32 %v3275_v45  ;;  %v1421_v52 = vmul.u32 %v1414_v63, %v1405_v53  ;;  %v3676_v13 = vpop.permute.xlu1 %667 }
 0x1b4   :  { %vm2467_vm4 = vcmp.lt.s32.totalorder %v2466_v46, 0  ;;  %vm1423_vm5 = vc.u32 %v3647_v61, %v3642_v22  ;;  %v798_v17 = vadd.s32 %v3577_v56, %v3585_v32  ;;  %vm2401_vm0 = vcmp.eq.s32.totalorder %v2396_v36, 2 }
 0x1b5   :  { %v813_v12 = vsel %vm2467_vm4, 0, %v2466_v46  ;;  %v2504_v29 = vadd.s32 4294967169, %v1786_v58  ;;  %v1425_v54 = vsel %vm1423_vm5, %v1424_v38, %v3643_v43  ;;  %v831_v47 = vsel %vm3653_vm15, 0, %v829_v57 }
 0x1b6   :  { %v814_v3 = vsub.s32 32, %v813_v12  ;;  %v818_v4 = vsub.s32 4294967266, %v813_v12  ;;  %v1426_v40 = vadd.s32 %v1425_v54, %v1421_v52  ;;  %v815_v63 = vshll.u32 %v3630_v37, %v813_v12 }
 0x1b7   :  { %v1792_v39 = vadd.s32 1, %v2504_v29  ;;  %v1789_v55 = vand.u32 8388607, %v1782_v6  ;;  %v658_v5 = vsel %vm72_vm9, %v642_v31, %v3108_v18  ;;  %vm2398_vm12 = vcmp.eq.s32.totalorder %v2396_v36, 0 }
 0x1b8   :  { %v816_v23 = vshrl.u32 %v798_v17, %v814_v3  ;;  %v819_v27 = vadd.s32 127, %v818_v4  ;;  %v1427_v32 = vadd.s32 536870912, %v1426_v40  ;;  %v3684_v58 = vsel %vm78_vm11, %v3247_v50, %v658_v5 }
 0x1b9   :  { %v2651_v19 = vpop.eup %2650  ;;  %vm1793_vm7 = vcmp.gt.s32.totalorder %v1792_v39, 0  ;;  %v3690_v18 = vsel %vm78_vm11, %v3676_v13, %v3156_v48  ;;  %v3693_v57 = vadd.s32 3, %v831_v47  ;;  %v1790_v50 = vor.u32 8388608, %v1789_v55 }
 0x1ba   :  { %v2653_v49 = vpop.eup %2652  ;;  %v2402_v56 = vxor.u32 2147483648, %v2651_v19  ;;  %v817_v33 = vor.u32 %v816_v23, %v815_v63  ;;  %v820_v16 = vshll.u32 %v819_v27, 23  ;;  %v1794_v51 = vsel %vm1793_vm7, %v1792_v39, 0 }
 0x1bb   :  { %v2399_v43 = vxor.u32 2147483648, %v2653_v49  ;;  %v3679_v10 = vshrl.u32 %v1427_v32, 30  ;;  %v1796_v46 = vand.u32 31, %v1794_v51  ;;  %v724_v36 = vmul.f32 %v3684_v58, %v3378_v35 }
 0x1bc   :  { %v2403_v37 = vsel %vm2401_vm0, %v2402_v56, %v2653_v49  ;;  %v821_v38 = vor.u32 4788187, %v820_v16  ;;  %v824_v3 = vcvt.s32.f32 %v817_v33  ;;  %v3706_v54 = vmul.f32 %v3690_v18, %v3378_v35 }
 0x1bd   :  { %v2400_v53 = vsel %vm2398_vm12, %v2651_v19, %v2399_v43  ;;  %v1429_v12 = vshll.u32 %v3679_v10, 30  ;;  %v1797_v52 = vsub.s32 32, %v1796_v46  ;;  %v1422_v45 = vadd.s32 %v3642_v22, %v3647_v61 }
 0x1be   :  { %v2404_v31 = vsel %vm2397_vm3, %v2400_v53, %v2403_v37  ;;  %v822_v17 = vand.u32 2147483647, %v821_v38  ;;  %v1799_v39 = vshll.u32 %v2737_v59, %v1796_v46  ;;  %v1802_v63 = vshll.u32 %v2738_v60, %v1796_v46 }
 0x1bf   :  { %v2405_v29 = vsel %vm2394_vm8, nan, %v2404_v31  ;;  %v3699_v4 = vsub.s32 %v1426_v40, %v1429_v12  ;;  %v1800_v48 = vshrl.u32 %v2738_v60, %v1797_v52  ;;  %v1803_v19 = vshrl.u32 %v2739_v62, %v1797_v52 }
 0x1c0   :  { %2442 = vst.msk [vmem:[#allocation2 + $0x78] sm:$0xff] %vm2427_vm6, %v2405_v29  ;;  %v825_v47 = vmul.f32 %v824_v3, %v822_v17  ;;  %v1805_v23 = vshll.u32 %v2739_v62, %v1796_v46  ;;  %v1806_v27 = vshrl.u32 %v2740_v11, %v1797_v52  ;;  %v1795_v49 = vshrl.u32 %v1794_v51, 5 }
 0x1c1   :  { %v1432_v40 = vsub.s32 0, %v3699_v4  ;;  %v1808_v56 = vshll.u32 %v2740_v11, %v1796_v46  ;;  %v1809_v32 = vshrl.u32 %v2741_v2, %v1797_v52  ;;  %v1801_v61 = vor.u32 %v1800_v48, %v1799_v39 }
 0x1c2   :  { %v826_v55 = vxor.u32 2147483648, %v825_v47  ;;  %v1804_v5 = vor.u32 %v1803_v19, %v1802_v63  ;;  %v1807_v43 = vor.u32 %v1806_v27, %v1805_v23  ;;  %v1811_v37 = vshll.u32 %v2741_v2, %v1796_v46 }
 0x1c3   :  { %v2489_v22 = vmin.u32 %v1432_v40, %v3699_v4  ;;  %v1810_v16 = vor.u32 %v1809_v32, %v1808_v56  ;;  %v1812_v53 = vshrl.u32 %v2742_v25, %v1797_v52  ;;  %v1830_v31 = vshll.u32 %v1790_v50, 8 }
 0x1c4   :  { %v827_v33 = vsel %vm744_vm2, %v826_v55, %v825_v47  ;;  %v3727_v12 = vadd.f32 %v724_v36, %v3389_v0  ;;  %v1452_v29 = vsub.s32 4, %v3679_v10  ;;  %v1798_v17 = vshrl.u32 %v2737_v59, %v1797_v52 }
 0x1c5   :  { %v830_v51 = vsel %vm3653_vm15, %v3428_v26, %v827_v33  ;;  %v1434_v38 = vclz %v2489_v22  ;;  %v1813_v3 = vor.u32 %v1812_v53, %v1811_v37  ;;  %vm1814_vm10 = vcmp.lt.s32.totalorder %v1795_v49, 1 }
 0x1c6   :  { %2654 = vcosq.f32 %v830_v51  ;;  %vm1817_vm13 = vcmp.lt.s32.totalorder %v1795_v49, 4  ;;  %vm1816_vm14 = vcmp.lt.s32.totalorder %v1795_v49, 3  ;;  %v1822_v47 = vsel %vm1814_vm10, %v1801_v61, %v1804_v5 }
 0x1c7   :  { %2656 = vsinq.f32 %v830_v51  ;;  %v2490_v48 = vadd.s32 4294967294, %v1434_v38  ;;  %v1819_v46 = vsel %vm1817_vm13, %v1807_v43, 2102212464  ;;  %v1823_v42 = vsel %vm1817_vm13, %v1810_v16, 920167782 }
 0x1c8   :  { %vm1815_vm15 = vcmp.lt.s32.totalorder %v1795_v49, 2  ;;  %v1824_v50 = vsel %vm1816_vm14, %v1807_v43, %v1823_v42  ;;  %v1826_v39 = vsel %vm1814_vm10, %v1804_v5, %v1807_v43  ;;  %v1818_v19 = vsel %vm1814_vm10, %v1798_v17, %v1801_v61 }
 0x1c9   :  { %vm2491_vm1 = vcmp.lt.s32.totalorder %v2490_v48, 0  ;;  %v1825_v40 = vsel %vm1815_vm15, %v1822_v47, %v1824_v50  ;;  %v1827_v63 = vsel %vm1817_vm13, %v1813_v3, 1326507024  ;;  %v1820_v27 = vsel %vm1816_vm14, %v1804_v5, %v1819_v46 }
 0x1ca   :  { %v1437_v36 = vsel %vm2491_vm1, 0, %v2490_v48  ;;  %v1828_v55 = vsel %vm1816_vm14, %v1810_v16, %v1827_v63  ;;  %v3734_v22 = vmul.u32.u64.low %v1830_v31, %v1825_v40  ;;  %v3735_v33 = vmul.u32.u64.high %v1830_v31, %v1825_v40, %v3734_v22 }
 0x1cb   :  { %v1438_v23 = vsub.s32 32, %v1437_v36  ;;  %v1442_v52 = vsub.s32 4294967266, %v1437_v36  ;;  %v1439_v56 = vshll.u32 %v3699_v4, %v1437_v36  ;;  %v1829_v32 = vsel %vm1815_vm15, %v1826_v39, %v1828_v55 }
 0x1cc   :  { %v3738_v43 = vmul.u32.u64.low %v1830_v31, %v1829_v32  ;;  %v3739_v51 = vmul.u32.u64.high %v1830_v31, %v1829_v32, %v3738_v43  ;;  %v836_v61 = vand.u32 3, %v3693_v57  ;;  %v1821_v38 = vsel %vm1815_vm15, %v1818_v19, %v1820_v27 }
 0x1cd   :  { %v1440_v37 = vshrl.u32 %v1422_v45, %v1438_v23  ;;  %v1443_v53 = vadd.s32 127, %v1442_v52  ;;  %v2201_v5 = vand.u32 2139095040, %v3727_v12  ;;  %vm88_vm2 = vcmp.eq.s32.totalorder %v3104_v21, 0 }
 0x1ce   :  { %vm1368_vm3 = vcmp.lt.s32.totalorder %v3516_v1, 0  ;;  %v1840_v17 = vadd.s32 1, %v3735_v33  ;;  %v3752_v57 = vadd.f32 %v3706_v54, %v3389_v0  ;;  %vm3756_vm4 = vcmp.le.f32.partialorder %v1366_v30, 0.7853982 }
 0x1cf   :  { %v1441_v4 = vor.u32 %v1440_v37, %v1439_v56  ;;  %v1444_v16 = vshll.u32 %v1443_v53, 23  ;;  %v1453_v45 = vsel %vm1368_vm3, %v1452_v29, %v3679_v10  ;;  %v2202_v3 = vshrl.u32 %v2201_v5, 23 }
 0x1d0   :  { %v1837_v46 = vmul.u32 %v1830_v31, %v1821_v38  ;;  %vm1839_vm8 = vc.u32 %v3739_v51, %v3734_v22  ;;  %vm837_vm5 = vcmp.lt.s32.totalorder %v836_v61, 2  ;;  %v2198_v29 = vand.u32 2147483647, %v3727_v12 }
 0x1d1   :  { %v1445_v48 = vor.u32 4788187, %v1444_v16  ;;  %v1841_v10 = vsel %vm1839_vm8, %v1840_v17, %v3735_v33  ;;  %v2520_v47 = vadd.s32 4294967169, %v2202_v3  ;;  %v1448_v50 = vcvt.s32.f32 %v1441_v4 }
 0x1d2   :  { %v1455_v30 = vsel %vm3756_vm4, 0, %v1453_v45  ;;  %v1842_v39 = vadd.s32 %v1841_v10, %v1837_v46  ;;  %vm838_vm0 = vcmp.eq.s32.totalorder %v836_v61, 0  ;;  %v953_v40 = vand.u32 2139095040, %v3752_v57 }
 0x1d3   :  { %v2655_v42 = vpop.eup %2654  ;;  %v1446_v54 = vand.u32 2147483647, %v1445_v48  ;;  %v2208_v31 = vadd.s32 1, %v2520_v47  ;;  %vm841_vm7 = vcmp.eq.s32.totalorder %v836_v61, 2  ;;  %v1459_v55 = vadd.s32 3, %v1455_v30 }
 0x1d4   :  { %v2657_v36 = vpop.eup %2656  ;;  %v842_v19 = vxor.u32 2147483648, %v2655_v42  ;;  %v1843_v52 = vadd.s32 536870912, %v1842_v39  ;;  %v2205_v56 = vand.u32 8388607, %v2198_v29  ;;  %vm834_vm10 = vweird.f32 %v3428_v26 }
 0x1d5   :  { %v839_v63 = vxor.u32 2147483648, %v2657_v36  ;;  %v1449_v23 = vmul.f32 %v1448_v50, %v1446_v54  ;;  %vm2209_vm12 = vcmp.gt.s32.totalorder %v2208_v31, 0  ;;  %v954_v5 = vshrl.u32 %v953_v40, 23 }
 0x1d6   :  { %v843_v27 = vsel %vm841_vm7, %v842_v19, %v2657_v36  ;;  %v3769_v37 = vshrl.u32 %v1843_v52, 30  ;;  %v2210_v53 = vsel %vm2209_vm12, %v2208_v31, 0  ;;  %v3778_v17 = vmul.f32 %v3676_v13, %v3101_v20 }
 0x1d7   :  { %v840_v32 = vsel %vm838_vm0, %v2655_v42, %v839_v63  ;;  %v1450_v33 = vxor.u32 2147483648, %v1449_v23  ;;  %v2212_v38 = vand.u32 31, %v2210_v53  ;;  %v3786_v61 = vand.u32 3, %v1459_v55 }
 0x1d8   :  { %v844_v43 = vsel %vm837_vm5, %v840_v32, %v843_v27  ;;  %v1845_v45 = vshll.u32 %v3769_v37, 30  ;;  %v2206_v10 = vor.u32 8388608, %v2205_v56  ;;  %v950_v47 = vand.u32 2147483647, %v3752_v57 }
 0x1d9   :  { %v845_v4 = vsel %vm834_vm10, nan, %v844_v43  ;;  %v1451_v16 = vsel %vm1368_vm3, %v1450_v33, %v1449_v23  ;;  %v2213_v48 = vsub.s32 32, %v2212_v38  ;;  %v3791_v13 = vshrl.u32 %v2210_v53, 5 }
 0x1da   :  { %v2410_v3 = vsel %vm88_vm2, %v3383_v7, %v845_v4  ;;  %v1454_v26 = vsel %vm3756_vm4, %v3516_v1, %v1451_v16  ;;  %v3788_v46 = vsub.s32 %v1842_v39, %v1845_v45  ;;  %v2472_v7 = vadd.s32 4294967169, %v954_v5 }
 0x1db   :  { %2426 = vst [vmem:[#allocation2] sm:$0xff] %v2410_v3  ;;  %2658 = vcosq.f32 %v1454_v26  ;;  %v2216_v42 = vshrl.u32 %v2738_v60, %v2213_v48  ;;  %v2215_v49 = vshll.u32 %v2737_v59, %v2212_v38  ;;  %v2218_v50 = vshll.u32 %v2738_v60, %v2212_v38 }
 0x1dc   :  { %2660 = vsinq.f32 %v1454_v26  ;;  %v1848_v54 = vsub.s32 0, %v3788_v46  ;;  %v2219_v30 = vshrl.u32 %v2739_v62, %v2213_v48  ;;  %v2221_v39 = vshll.u32 %v2739_v62, %v2212_v38 }
 0x1dd   :  { %v2222_v36 = vshrl.u32 %v2740_v11, %v2213_v48  ;;  %v2224_v19 = vshll.u32 %v2740_v11, %v2212_v38  ;;  %v2225_v31 = vshrl.u32 %v2741_v2, %v2213_v48  ;;  %v1838_v40 = vadd.s32 %v3734_v22, %v3739_v51 }
 0x1de   :  { %v2505_v63 = vmin.u32 %v1848_v54, %v3788_v46  ;;  %v2217_v23 = vor.u32 %v2216_v42, %v2215_v49  ;;  %v2220_v52 = vor.u32 %v2219_v30, %v2218_v50  ;;  %v2227_v56 = vshll.u32 %v2741_v2, %v2212_v38 }
 0x1df   :  { %v2223_v27 = vor.u32 %v2222_v36, %v2221_v39  ;;  %v2226_v55 = vor.u32 %v2225_v31, %v2224_v19  ;;  %v2228_v32 = vshrl.u32 %v2742_v25, %v2213_v48  ;;  %v1868_v53 = vsub.s32 4, %v3769_v37 }
 0x1e0   :  { %v1850_v33 = vclz %v2505_v63  ;;  %v3808_v43 = vshll.u32 %v2206_v10, 8  ;;  %v960_v5 = vadd.s32 1, %v2472_v7  ;;  %vm1465_vm13 = vcmp.eq.s32.totalorder %v3786_v61, 2 }
 0x1e1   :  { %vm1784_vm14 = vcmp.lt.s32.totalorder %v3637_v8, 0  ;;  %v2214_v22 = vshrl.u32 %v2737_v59, %v2213_v48  ;;  %v2229_v51 = vor.u32 %v2228_v32, %v2227_v56  ;;  %vm2230_vm1 = vcmp.lt.s32.totalorder %v3791_v13, 1 }
 0x1e2   :  { %vm2233_vm15 = vcmp.lt.s32.totalorder %v3791_v13, 4  ;;  %vm1462_vm3 = vcmp.eq.s32.totalorder %v3786_v61, 0  ;;  %v2506_v38 = vadd.s32 4294967294, %v1850_v33  ;;  %vm2231_vm4 = vcmp.lt.s32.totalorder %v3791_v13, 2 }
 0x1e3   :  { %v2235_v4 = vsel %vm2233_vm15, %v2223_v27, 2102212464  ;;  %v2238_v16 = vsel %vm2230_vm1, %v2217_v23, %v2220_v52  ;;  %vm2232_vm8 = vcmp.lt.s32.totalorder %v3791_v13, 3  ;;  %v2239_v45 = vsel %vm2233_vm15, %v2226_v55, 920167782 }
 0x1e4   :  { %v2242_v3 = vsel %vm2230_vm1, %v2220_v52, %v2223_v27  ;;  %v2243_v26 = vsel %vm2233_vm15, %v2229_v51, 1326507024  ;;  %vm1458_vm5 = vweird.f32 %v3516_v1  ;;  %vm3821_vm0 = vcmp.le.f32.partialorder %v1782_v6, 0.7853982 }
 0x1e5   :  { %vm2507_vm7 = vcmp.lt.s32.totalorder %v2506_v38, 0  ;;  %v2234_v10 = vsel %vm2230_vm1, %v2214_v22, %v2217_v23  ;;  %v2240_v42 = vsel %vm2232_vm8, %v2223_v27, %v2239_v45  ;;  %v2244_v7 = vsel %vm2232_vm8, %v2226_v55, %v2243_v26 }
 0x1e6   :  { %v1853_v54 = vsel %vm2507_vm7, 0, %v2506_v38  ;;  %v2236_v49 = vsel %vm2232_vm8, %v2220_v52, %v2235_v4  ;;  %v2241_v50 = vsel %vm2231_vm4, %v2238_v16, %v2240_v42  ;;  %v2245_v30 = vsel %vm2231_vm4, %v2242_v3, %v2244_v7 }
 0x1e7   :  { %v1854_v39 = vsub.s32 32, %v1853_v54  ;;  %v1855_v36 = vshll.u32 %v3788_v46, %v1853_v54  ;;  %v1858_v19 = vsub.s32 4294967266, %v1853_v54  ;;  %vm961_vm12 = vcmp.gt.s32.totalorder %v960_v5, 0 }
 0x1e8   :  { %v2659_v6 = vpop.eup %2658  ;;  %v3831_v31 = vmul.u32.u64.low %v3808_v43, %v2245_v30  ;;  %v3832_v63 = vmul.u32.u64.high %v3808_v43, %v2245_v30, %v3831_v31  ;;  %v3835_v23 = vmul.u32.u64.low %v3808_v43, %v2241_v50  ;;  %v3836_v27 = vmul.u32.u64.high %v3808_v43, %v2241_v50, %v3835_v23 }
 0x1e9   :  { %v2661_v52 = vpop.eup %2660  ;;  %v1466_v55 = vxor.u32 2147483648, %v2659_v6  ;;  %v1856_v56 = vshrl.u32 %v1838_v40, %v1854_v39  ;;  %v1859_v32 = vadd.s32 127, %v1858_v19  ;;  %v962_v33 = vsel %vm961_vm12, %v960_v5, 0 }
 0x1ea   :  { %v1463_v22 = vxor.u32 2147483648, %v2661_v52  ;;  %v2237_v46 = vsel %vm2231_vm4, %v2234_v10, %v2236_v49  ;;  %v957_v51 = vand.u32 8388607, %v950_v47  ;;  %v964_v38 = vand.u32 31, %v962_v33 }
 0x1eb   :  { %v1467_v4 = vsel %vm1465_vm13, %v1466_v55, %v2661_v52  ;;  %v1857_v16 = vor.u32 %v1856_v56, %v1855_v36  ;;  %v1860_v45 = vshll.u32 %v1859_v32, 23  ;;  %v1869_v3 = vsel %vm1784_vm14, %v1868_v53, %v3769_v37 }
 0x1ec   :  { %vm1461_vm10 = vcmp.lt.s32.totalorder %v3786_v61, 2  ;;  %v1464_v40 = vsel %vm1462_vm3, %v2659_v6, %v1463_v22  ;;  %vm2255_vm1 = vc.u32 %v3832_v63, %v3835_v23  ;;  %v2256_v13 = vadd.s32 1, %v3836_v27 }
 0x1ed   :  { %v1468_v5 = vsel %vm1461_vm10, %v1464_v40, %v1467_v4  ;;  %v1861_v26 = vor.u32 4788187, %v1860_v45  ;;  %v2253_v10 = vmul.u32 %v3808_v43, %v2237_v46  ;;  %v965_v42 = vsub.s32 32, %v964_v38 }
 0x1ee   :  { %v1469_v7 = vsel %vm1458_vm5, nan, %v1468_v5  ;;  %v1871_v37 = vsel %vm3821_vm0, 0, %v1869_v3  ;;  %v2257_v53 = vsel %vm2255_vm1, %v2256_v13, %v3836_v27  ;;  %v958_v61 = vor.u32 8388608, %v957_v51 }
 0x1ef   :  { %v2416_v54 = vsel %vm88_vm2, %v3433_v14, %v1469_v7  ;;  %v1862_v49 = vand.u32 2147483647, %v1861_v26  ;;  %v1864_v50 = vcvt.s32.f32 %v1857_v16  ;;  %v2258_v30 = vadd.s32 %v2257_v53, %v2253_v10 }
 0x1f0   :  { %2433 = vst [vmem:[#allocation2 + $0x30] sm:$0xff] %v2416_v54  ;;  %v967_v43 = vshll.u32 %v2737_v59, %v964_v38  ;;  %v968_v39 = vshrl.u32 %v2738_v60, %v965_v42  ;;  %v971_v1 = vshrl.u32 %v2739_v62, %v965_v42  ;;  %v974_v36 = vshrl.u32 %v2740_v11, %v965_v42 }
 0x1f1   :  { %v1865_v19 = vmul.f32 %v1864_v50, %v1862_v49  ;;  %v2259_v6 = vadd.s32 536870912, %v2258_v30  ;;  %v970_v31 = vshll.u32 %v2738_v60, %v964_v38  ;;  %v977_v27 = vshrl.u32 %v2741_v2, %v965_v42 }
 0x1f2   :  { %v963_v52 = vshrl.u32 %v962_v33, 5  ;;  %v969_v14 = vor.u32 %v968_v39, %v967_v43  ;;  %v973_v55 = vshll.u32 %v2739_v62, %v964_v38  ;;  %v976_v56 = vshll.u32 %v2740_v11, %v964_v38 }
 0x1f3   :  { %v1866_v32 = vxor.u32 2147483648, %v1865_v19  ;;  %v2260_v22 = vshrl.u32 %v2259_v6, 30  ;;  %v972_v46 = vor.u32 %v971_v1, %v970_v31  ;;  %v980_v51 = vshrl.u32 %v2742_v25, %v965_v42 }
 0x1f4   :  { %v3873_v4 = vadd.f32 1.5707964, %v3778_v17  ;;  %v975_v16 = vor.u32 %v974_v36, %v973_v55  ;;  %v978_v45 = vor.u32 %v977_v27, %v976_v56  ;;  %v979_v3 = vshll.u32 %v2741_v2, %v964_v38 }
 0x1f5   :  { %v1867_v33 = vsel %vm1784_vm14, %v1866_v32, %v1865_v19  ;;  %v1875_v40 = vadd.s32 3, %v1871_v37  ;;  %v2261_v13 = vshll.u32 %v2260_v22, 30  ;;  %v998_v5 = vshll.u32 %v958_v61, 8 }
 0x1f6   :  { %v1870_v26 = vsel %vm3821_vm0, %v3637_v8, %v1867_v33  ;;  %v966_v10 = vshrl.u32 %v2737_v59, %v965_v42  ;;  %v981_v7 = vor.u32 %v980_v51, %v979_v3  ;;  %vm982_vm13 = vcmp.lt.s32.totalorder %v963_v52, 1 }
 0x1f7   :  { %2662 = vcosq.f32 %v1870_v26  ;;  %v3882_v17 = vsub.s32 %v2258_v30, %v2261_v13  ;;  %vm985_vm15 = vcmp.lt.s32.totalorder %v963_v52, 4  ;;  %v990_v38 = vsel %vm982_vm13, %v969_v14, %v972_v46 }
 0x1f8   :  { %2664 = vsinq.f32 %v1870_v26  ;;  %vm984_vm3 = vcmp.lt.s32.totalorder %v963_v52, 3  ;;  %v987_v53 = vsel %vm985_vm15, %v975_v16, 2102212464  ;;  %v991_v37 = vsel %vm985_vm15, %v978_v45, 920167782 }
 0x1f9   :  { %v2264_v61 = vsub.s32 0, %v3882_v17  ;;  %vm983_vm14 = vcmp.lt.s32.totalorder %v963_v52, 2  ;;  %v992_v54 = vsel %vm984_vm3, %v975_v16, %v991_v37  ;;  %v994_v48 = vsel %vm982_vm13, %v972_v46, %v975_v16 }
 0x1fa   :  { %v2284_v49 = vsub.s32 4, %v2260_v22  ;;  %v993_v42 = vsel %vm983_vm14, %v990_v38, %v992_v54  ;;  %v995_v50 = vsel %vm985_vm15, %v981_v7, 1326507024  ;;  %v1057_v30 = vand.u32 2139095040, %v3873_v4 }
 0x1fb   :  { %v2521_v43 = vmin.u32 %v2264_v61, %v3882_v17  ;;  %v986_v39 = vsel %vm982_vm13, %v966_v10, %v969_v14  ;;  %v988_v1 = vsel %vm984_vm3, %v972_v46, %v987_v53  ;;  %v996_v36 = vsel %vm984_vm3, %v978_v45, %v995_v50 }
 0x1fc   :  { %v997_v19 = vsel %vm983_vm14, %v994_v48, %v996_v36  ;;  %v3892_v6 = vmul.u32.u64.low %v998_v5, %v993_v42  ;;  %v3893_v31 = vmul.u32.u64.high %v998_v5, %v993_v42, %v3892_v6  ;;  %v1058_v27 = vshrl.u32 %v1057_v30, 23 }
 0x1fd   :  { %vm2200_vm4 = vcmp.lt.s32.totalorder %v3727_v12, 0  ;;  %v2266_v55 = vclz %v2521_v43  ;;  %v3899_v32 = vmul.u32.u64.low %v998_v5, %v997_v19  ;;  %v3900_v51 = vmul.u32.u64.high %v998_v5, %v997_v19, %v3899_v32 }
 0x1fe   :  { %v2285_v56 = vsel %vm2200_vm4, %v2284_v49, %v2260_v22  ;;  %v2476_v16 = vadd.s32 4294967169, %v1058_v27  ;;  %v989_v46 = vsel %vm983_vm14, %v986_v39, %v988_v1  ;;  %v1054_v45 = vand.u32 2147483647, %v3873_v4  ;;  %v672_v39 = vpop.permute.xlu1 %671 }
 0x1ff   :  { %v2522_v14 = vadd.s32 4294967294, %v2266_v55  ;;  %v1876_v3 = vand.u32 3, %v1875_v40  ;;  %vm3906_vm8 = vcmp.le.f32.partialorder %v2198_v29, 0.7853982  ;;  %v1008_v13 = vadd.s32 1, %v3893_v31 }
 0x200   :  { %v1064_v26 = vadd.s32 1, %v2476_v16  ;;  %v2254_v22 = vadd.s32 %v3835_v23, %v3832_v63  ;;  %v2287_v52 = vsel %vm3906_vm8, 0, %v2285_v56  ;;  %v1005_v7 = vmul.u32 %v998_v5, %v989_v46 }
 0x201   :  { %vm2523_vm5 = vcmp.lt.s32.totalorder %v2522_v14, 0  ;;  %vm1007_vm0 = vc.u32 %v3900_v51, %v3892_v6  ;;  %v1061_v53 = vand.u32 8388607, %v1054_v45  ;;  %vm1878_vm12 = vcmp.eq.s32.totalorder %v1876_v3, 0 }
 0x202   :  { %v2269_v10 = vsel %vm2523_vm5, 0, %v2522_v14  ;;  %vm1065_vm7 = vcmp.gt.s32.totalorder %v1064_v26, 0  ;;  %v1009_v38 = vsel %vm1007_vm0, %v1008_v13, %v3893_v31  ;;  %vm1881_vm10 = vcmp.eq.s32.totalorder %v1876_v3, 2 }
 0x203   :  { %v2270_v29 = vsub.s32 32, %v2269_v10  ;;  %v2274_v40 = vsub.s32 4294967266, %v2269_v10  ;;  %v1010_v63 = vadd.s32 %v1009_v38, %v1005_v7  ;;  %v1066_v23 = vsel %vm1065_vm7, %v1064_v26, 0 }
 0x204   :  { %v2663_v37 = vpop.eup %2662  ;;  %v2271_v5 = vshll.u32 %v3882_v17, %v2269_v10  ;;  %v2291_v50 = vadd.s32 3, %v2287_v52  ;;  %v1068_v43 = vand.u32 31, %v1066_v23  ;;  %v1062_v31 = vor.u32 8388608, %v1061_v53 }
 0x205   :  { %v2665_v61 = vpop.eup %2664  ;;  %v1882_v54 = vxor.u32 2147483648, %v2663_v37  ;;  %v2272_v48 = vshrl.u32 %v2254_v22, %v2270_v29  ;;  %v2275_v49 = vadd.s32 127, %v2274_v40  ;;  %v1011_v30 = vadd.s32 536870912, %v1010_v63 }
 0x206   :  { %v1879_v42 = vxor.u32 2147483648, %v2665_v61  ;;  %vm1877_vm1 = vcmp.lt.s32.totalorder %v1876_v3, 2  ;;  %v1069_v56 = vsub.s32 32, %v1068_v43  ;;  %vm1874_vm13 = vweird.f32 %v3637_v8 }
 0x207   :  { %v1883_v1 = vsel %vm1881_vm10, %v1882_v54, %v2665_v61  ;;  %v2273_v36 = vor.u32 %v2272_v48, %v2271_v5  ;;  %v2276_v19 = vshll.u32 %v2275_v49, 23  ;;  %v3922_v55 = vshrl.u32 %v1011_v30, 30 }
 0x208   :  { %v1880_v27 = vsel %vm1878_vm12, %v2663_v37, %v1879_v42  ;;  %v3928_v16 = vsel %vm78_vm11, %v672_v39, %v3369_v34  ;;  %v3930_v46 = vand.u32 3, %v2291_v50  ;;  %v715_v3 = vmul.f32 %v672_v39, %v3101_v20 }
 0x209   :  { %v1884_v17 = vsel %vm1877_vm1, %v1880_v27, %v1883_v1  ;;  %v2277_v32 = vor.u32 4788187, %v2276_v19  ;;  %v1013_v13 = vshll.u32 %v3922_v55, 30  ;;  %v2280_v8 = vcvt.s32.f32 %v2273_v36 }
 0x20a   :  { %v1885_v14 = vsel %vm1874_vm13, nan, %v1884_v17  ;;  %v3937_v52 = vshll.u32 %v1062_v31, 8  ;;  %v1072_v34 = vshrl.u32 %v2738_v60, %v1069_v56  ;;  %v1075_v7 = vshrl.u32 %v2739_v62, %v1069_v56 }
 0x20b   :  { %v2420_v26 = vsel %vm88_vm2, %v3608_v28, %v1885_v14  ;;  %v2278_v22 = vand.u32 2147483647, %v2277_v32  ;;  %v3939_v10 = vsub.s32 %v1010_v63, %v1013_v13  ;;  %v714_v29 = vmul.f32 %v3928_v16, %v3378_v35 }
 0x20c   :  { %2437 = vst [vmem:[#allocation2 + $0x50] sm:$0xff] %v2420_v26  ;;  %v1067_v38 = vshrl.u32 %v1066_v23, 5  ;;  %v1071_v53 = vshll.u32 %v2737_v59, %v1068_v43  ;;  %v1078_v28 = vshrl.u32 %v2740_v11, %v1069_v56  ;;  %v1074_v61 = vshll.u32 %v2738_v60, %v1068_v43 }
 0x20d   :  { %v2281_v40 = vmul.f32 %v2280_v8, %v2278_v22  ;;  %v1016_v37 = vsub.s32 0, %v3939_v10  ;;  %v1077_v63 = vshll.u32 %v2739_v62, %v1068_v43  ;;  %v1080_v54 = vshll.u32 %v2740_v11, %v1068_v43 }
 0x20e   :  { %v1081_v48 = vshrl.u32 %v2741_v2, %v1069_v56  ;;  %v1083_v49 = vshll.u32 %v2741_v2, %v1068_v43  ;;  %v1084_v42 = vshrl.u32 %v2742_v25, %v1069_v56  ;;  %v1073_v50 = vor.u32 %v1072_v34, %v1071_v53 }
 0x20f   :  { %v2282_v5 = vxor.u32 2147483648, %v2281_v40  ;;  %v2473_v23 = vmin.u32 %v1016_v37, %v3939_v10  ;;  %v1076_v30 = vor.u32 %v1075_v7, %v1074_v61  ;;  %v3955_v39 = vadd.f32 1.5707964, %v715_v3 }
 0x210   :  { %v1079_v36 = vor.u32 %v1078_v28, %v1077_v63  ;;  %v1082_v19 = vor.u32 %v1081_v48, %v1080_v54  ;;  %v1085_v31 = vor.u32 %v1084_v42, %v1083_v49  ;;  %vm952_vm15 = vcmp.lt.s32.totalorder %v3752_v57, 0 }
 0x211   :  { %v2283_v1 = vsel %vm2200_vm4, %v2282_v5, %v2281_v40  ;;  %v1006_v43 = vadd.s32 %v3892_v6, %v3900_v51  ;;  %v1018_v17 = vclz %v2473_v23  ;;  %v3966_v32 = vadd.f32 %v714_v29, %v3389_v0 }
 0x212   :  { %v2286_v27 = vsel %vm3906_vm8, %v3727_v12, %v2283_v1  ;;  %v1070_v14 = vshrl.u32 %v2737_v59, %v1069_v56  ;;  %vm1086_vm3 = vcmp.lt.s32.totalorder %v1067_v38, 1  ;;  %vm1088_vm14 = vcmp.lt.s32.totalorder %v1067_v38, 3 }
 0x213   :  { %2666 = vcosq.f32 %v2286_v27  ;;  %v2474_v13 = vadd.s32 4294967294, %v1018_v17  ;;  %vm1089_vm4 = vcmp.lt.s32.totalorder %v1067_v38, 4  ;;  %v1094_v33 = vsel %vm1086_vm3, %v1073_v50, %v1076_v30 }
 0x214   :  { %2668 = vsinq.f32 %v2286_v27  ;;  %v1091_v3 = vsel %vm1089_vm4, %v1079_v36, 2102212464  ;;  %v1095_v26 = vsel %vm1089_vm4, %v1082_v19, 920167782  ;;  %v1098_v22 = vsel %vm1086_vm3, %v1076_v30, %v1079_v36 }
 0x215   :  { %v1099_v8 = vsel %vm1089_vm4, %v1085_v31, 1326507024  ;;  %vm2475_vm8 = vcmp.lt.s32.totalorder %v2474_v13, 0  ;;  %vm1087_vm5 = vcmp.lt.s32.totalorder %v1067_v38, 2  ;;  %v1096_v6 = vsel %vm1088_vm14, %v1079_v36, %v1095_v26 }
 0x216   :  { %v1100_v51 = vsel %vm1088_vm14, %v1082_v19, %v1099_v8  ;;  %v1021_v34 = vsel %vm2475_vm8, 0, %v2474_v13  ;;  %v1036_v56 = vsub.s32 4, %v3922_v55  ;;  %v1097_v7 = vsel %vm1087_vm5, %v1094_v33, %v1096_v6 }
 0x217   :  { %v1101_v29 = vsel %vm1087_vm5, %v1098_v22, %v1100_v51  ;;  %v1022_v40 = vsub.s32 32, %v1021_v34  ;;  %v1026_v53 = vsub.s32 4294967266, %v1021_v34  ;;  %v1090_v28 = vsel %vm1086_vm3, %v1070_v14, %v1073_v50 }
 0x218   :  { %v1092_v37 = vsel %vm1088_vm14, %v1076_v30, %v1091_v3  ;;  %v3979_v61 = vmul.u32.u64.low %v3937_v52, %v1101_v29  ;;  %v3980_v63 = vmul.u32.u64.high %v3937_v52, %v1101_v29, %v3979_v61  ;;  %v1023_v48 = vshll.u32 %v3939_v10, %v1021_v34 }
 0x219   :  { %v3983_v54 = vmul.u32.u64.low %v3937_v52, %v1097_v7  ;;  %v3984_v5 = vmul.u32.u64.high %v3937_v52, %v1097_v7, %v3983_v54  ;;  %v1024_v49 = vshrl.u32 %v1006_v43, %v1022_v40  ;;  %v1027_v42 = vadd.s32 127, %v1026_v53 }
 0x21a   :  { %v1161_v23 = vand.u32 2139095040, %v3966_v32  ;;  %v1037_v50 = vsel %vm952_vm15, %v1036_v56, %v3922_v55  ;;  %v1093_v30 = vsel %vm1087_vm5, %v1090_v28, %v1092_v37  ;;  %v1158_v1 = vand.u32 2147483647, %v3966_v32 }
 0x21b   :  { %v1265_v36 = vand.u32 2139095040, %v3955_v39  ;;  %v1025_v19 = vor.u32 %v1024_v49, %v1023_v48  ;;  %v1028_v31 = vshll.u32 %v1027_v42, 23  ;;  %vm2290_vm0 = vweird.f32 %v3727_v12 }
 0x21c   :  { %v1162_v27 = vshrl.u32 %v1161_v23, 23  ;;  %vm3997_vm7 = vcmp.le.f32.partialorder %v950_v47, 0.7853982  ;;  %vm1111_vm12 = vc.u32 %v3980_v63, %v3983_v54  ;;  %v1112_v55 = vadd.s32 1, %v3984_v5 }
 0x21d   :  { %v1266_v38 = vshrl.u32 %v1265_v36, 23  ;;  %v1029_v43 = vor.u32 4788187, %v1028_v31  ;;  %v1039_v17 = vsel %vm3997_vm7, 0, %v1037_v50  ;;  %v1109_v14 = vmul.u32 %v3937_v52, %v1093_v30 }
 0x21e   :  { %v2480_v13 = vadd.s32 4294967169, %v1162_v27  ;;  %vm2293_vm10 = vcmp.lt.s32.totalorder %v3930_v46, 2  ;;  %vm2294_vm1 = vcmp.eq.s32.totalorder %v3930_v46, 0  ;;  %v1113_v47 = vsel %vm1111_vm12, %v1112_v55, %v3984_v5 }
 0x21f   :  { %v1165_v33 = vand.u32 8388607, %v1158_v1  ;;  %v1030_v26 = vand.u32 2147483647, %v1029_v43  ;;  %v1032_v22 = vcvt.s32.f32 %v1025_v19  ;;  %v1114_v8 = vadd.s32 %v1113_v47, %v1109_v14  ;;  %v4025_v19 = vpop.permute.xlu1 %679 }
 0x220   :  { %v2667_v3 = vpop.eup %2666  ;;  %v1168_v6 = vadd.s32 1, %v2480_v13  ;;  %vm2297_vm13 = vcmp.eq.s32.totalorder %v3930_v46, 2  ;;  %v1043_v52 = vadd.s32 3, %v1039_v17  ;;  %v2484_v56 = vadd.s32 4294967169, %v1266_v38 }
 0x221   :  { %v2669_v51 = vpop.eup %2668  ;;  %v2298_v34 = vxor.u32 2147483648, %v2667_v3  ;;  %v1033_v29 = vmul.f32 %v1032_v22, %v1030_v26  ;;  %v1115_v40 = vadd.s32 536870912, %v1114_v8  ;;  %v1166_v28 = vor.u32 8388608, %v1165_v33 }
 0x222   :  { %v2295_v7 = vxor.u32 2147483648, %v2669_v51  ;;  %vm1169_vm3 = vcmp.gt.s32.totalorder %v1168_v6, 0  ;;  %v652_v61 = vsel %vm72_vm9, %v3083_v9, %v3150_v44  ;;  %v1262_v42 = vand.u32 2147483647, %v3955_v39 }
 0x223   :  { %v2299_v53 = vsel %vm2297_vm13, %v2298_v34, %v2669_v51  ;;  %v1170_v37 = vsel %vm1169_vm3, %v1168_v6, 0  ;;  %v1034_v48 = vxor.u32 2147483648, %v1033_v29  ;;  %v4018_v49 = vshrl.u32 %v1115_v40, 30 }
 0x224   :  { %v2296_v5 = vsel %vm2294_vm1, %v2667_v3, %v2295_v7  ;;  %v4023_v50 = vand.u32 3, %v1043_v52  ;;  %v1172_v30 = vand.u32 31, %v1170_v37  ;;  %v1272_v36 = vadd.s32 1, %v2484_v56 }
 0x225   :  { %v2300_v23 = vsel %vm2293_vm10, %v2296_v5, %v2299_v53  ;;  %v1035_v44 = vsel %vm952_vm15, %v1034_v48, %v1033_v29  ;;  %v4032_v31 = vadd.s32 %v3983_v54, %v3980_v63  ;;  %v1117_v27 = vshll.u32 %v4018_v49, 30 }
 0x226   :  { %v2301_v9 = vsel %vm2290_vm0, nan, %v2300_v23  ;;  %v1038_v55 = vsel %vm3997_vm7, %v3752_v57, %v1035_v44  ;;  %v1173_v38 = vsub.s32 32, %v1172_v30  ;;  %v4041_v43 = vshll.u32 %v1166_v28, 8 }
 0x227   :  { %v2424_v46 = vsel %vm88_vm2, %v3684_v58, %v2301_v9  ;;  %2670 = vcosq.f32 %v1038_v55  ;;  %v4043_v12 = vsub.s32 %v1114_v8, %v1117_v27  ;;  %v4047_v63 = vand.u32 8388607, %v1262_v42 }
 0x228   :  { %2441 = vst [vmem:[#allocation2 + $0x70] sm:$0xff] %v2424_v46  ;;  %v4052_v54 = vsel %vm78_vm11, %v4025_v19, %v652_v61  ;;  %2672 = vsinq.f32 %v1038_v55  ;;  %v1171_v58 = vshrl.u32 %v1170_v37, 5  ;;  %v1176_v10 = vshrl.u32 %v2738_v60, %v1173_v38 }
 0x229   :  { %vm1273_vm15 = vcmp.gt.s32.totalorder %v1272_v36, 0  ;;  %v1120_v17 = vsub.s32 0, %v4043_v12  ;;  %v1175_v14 = vshll.u32 %v2737_v59, %v1172_v30  ;;  %v1178_v13 = vshll.u32 %v2738_v60, %v1172_v30 }
 0x22a   :  { %v1179_v47 = vshrl.u32 %v2739_v62, %v1173_v38  ;;  %v1181_v33 = vshll.u32 %v2739_v62, %v1172_v30  ;;  %v1182_v3 = vshrl.u32 %v2740_v11, %v1173_v38  ;;  %v1184_v26 = vshll.u32 %v2740_v11, %v1172_v30 }
 0x22b   :  { %v1185_v22 = vshrl.u32 %v2741_v2, %v1173_v38  ;;  %v2477_v8 = vmin.u32 %v1120_v17, %v4043_v12  ;;  %v1177_v6 = vor.u32 %v1176_v10, %v1175_v14  ;;  %v1270_v34 = vor.u32 8388608, %v4047_v63 }
 0x22c   :  { %v1180_v51 = vor.u32 %v1179_v47, %v1178_v13  ;;  %v1183_v52 = vor.u32 %v1182_v3, %v1181_v33  ;;  %v1187_v7 = vshll.u32 %v2741_v2, %v1172_v30  ;;  %v1188_v29 = vshrl.u32 %v2742_v25, %v1173_v38 }
 0x22d   :  { %v1186_v56 = vor.u32 %v1185_v22, %v1184_v26  ;;  %vm1056_vm14 = vcmp.lt.s32.totalorder %v3873_v4, 0  ;;  %v1122_v40 = vclz %v2477_v8  ;;  %v1174_v53 = vshrl.u32 %v2737_v59, %v1173_v38 }
 0x22e   :  { %v1274_v28 = vsel %vm1273_vm15, %v1272_v36, 0  ;;  %v718_v37 = vmul.f32 %v4052_v54, %v3378_v35  ;;  %vm1049_vm4 = vcmp.eq.s32.totalorder %v4023_v50, 2  ;;  %v1189_v61 = vor.u32 %v1188_v29, %v1187_v7 }
 0x22f   :  { %vm1190_vm8 = vcmp.lt.s32.totalorder %v1171_v58, 1  ;;  %vm1192_vm5 = vcmp.lt.s32.totalorder %v1171_v58, 3  ;;  %vm1193_vm0 = vcmp.lt.s32.totalorder %v1171_v58, 4  ;;  %vm1046_vm7 = vcmp.eq.s32.totalorder %v4023_v50, 0 }
 0x230   :  { %v2478_v5 = vadd.s32 4294967294, %v1122_v40  ;;  %v1194_v48 = vsel %vm1190_vm8, %v1174_v53, %v1177_v6  ;;  %v1195_v23 = vsel %vm1193_vm0, %v1183_v52, 2102212464  ;;  %v1198_v30 = vsel %vm1190_vm8, %v1177_v6, %v1180_v51 }
 0x231   :  { %vm1045_vm12 = vcmp.lt.s32.totalorder %v4023_v50, 2  ;;  %v1196_v9 = vsel %vm1192_vm5, %v1180_v51, %v1195_v23  ;;  %v1199_v36 = vsel %vm1193_vm0, %v1186_v56, 920167782  ;;  %v1202_v44 = vsel %vm1190_vm8, %v1180_v51, %v1183_v52 }
 0x232   :  { %v1203_v27 = vsel %vm1193_vm0, %v1189_v61, 1326507024  ;;  %vm1042_vm10 = vweird.f32 %v3752_v57  ;;  %vm2479_vm1 = vcmp.lt.s32.totalorder %v2478_v5, 0  ;;  %vm1191_vm13 = vcmp.lt.s32.totalorder %v1171_v58, 2 }
 0x233   :  { %v1200_v46 = vsel %vm1192_vm5, %v1183_v52, %v1199_v36  ;;  %v1204_v55 = vsel %vm1192_vm5, %v1186_v56, %v1203_v27  ;;  %v1125_v38 = vsel %vm2479_vm1, 0, %v2478_v5  ;;  %v1140_v63 = vsub.s32 4, %v4018_v49 }
 0x234   :  { %v1201_v10 = vsel %vm1191_vm13, %v1198_v30, %v1200_v46  ;;  %v1205_v17 = vsel %vm1191_vm13, %v1202_v44, %v1204_v55  ;;  %v1126_v14 = vsub.s32 32, %v1125_v38  ;;  %v1127_v13 = vshll.u32 %v4043_v12, %v1125_v38  ;;  %v2671_v3 = vpop.eup %2670 }
 0x235   :  { %v1130_v47 = vsub.s32 4294967266, %v1125_v38  ;;  %v1197_v33 = vsel %vm1191_vm13, %v1194_v48, %v1196_v9  ;;  %v4082_v26 = vmul.u32.u64.low %v4041_v43, %v1205_v17  ;;  %v4083_v22 = vmul.u32.u64.high %v4041_v43, %v1205_v17, %v4082_v26  ;;  %v2673_v58 = vpop.eup %2672 }
 0x236   :  { %v4086_v8 = vmul.u32.u64.low %v4041_v43, %v1201_v10  ;;  %v4087_v6 = vmul.u32.u64.high %v4041_v43, %v1201_v10, %v4086_v8  ;;  %v1050_v51 = vxor.u32 2147483648, %v2671_v3  ;;  %v1128_v52 = vshrl.u32 %v4032_v31, %v1126_v14 }
 0x237   :  { %v1131_v56 = vadd.s32 127, %v1130_v47  ;;  %v1276_v7 = vand.u32 31, %v1274_v28  ;;  %v1047_v29 = vxor.u32 2147483648, %v2673_v58  ;;  %vm4093_vm3 = vcmp.le.f32.partialorder %v1054_v45, 0.7853982 }
 0x238   :  { %v1141_v40 = vsel %vm1056_vm14, %v1140_v63, %v4018_v49  ;;  %v4100_v53 = vshll.u32 %v1270_v34, 8  ;;  %v4103_v61 = vadd.f32 %v718_v37, %v3389_v0  ;;  %v1051_v31 = vsel %vm1049_vm4, %v1050_v51, %v2673_v58 }
 0x239   :  { %v1129_v5 = vor.u32 %v1128_v52, %v1127_v13  ;;  %v1132_v48 = vshll.u32 %v1131_v56, 23  ;;  %v1277_v23 = vsub.s32 32, %v1276_v7  ;;  %v1048_v45 = vsel %vm1046_vm7, %v2671_v3, %v1047_v29 }
 0x23a   :  { %v1213_v30 = vmul.u32 %v4041_v43, %v1197_v33  ;;  %vm1215_vm15 = vc.u32 %v4083_v22, %v4086_v8  ;;  %v1216_v49 = vadd.s32 1, %v4087_v6  ;;  %v1052_v34 = vsel %vm1045_vm12, %v1048_v45, %v1051_v31 }
 0x23b   :  { %v1133_v37 = vor.u32 4788187, %v1132_v48  ;;  %v1136_v9 = vcvt.s32.f32 %v1129_v5  ;;  %v1275_v36 = vshrl.u32 %v1274_v28, 5  ;;  %v1053_v44 = vsel %vm1042_vm10, nan, %v1052_v34 }
 0x23c   :  { %v1217_v27 = vsel %vm1215_vm15, %v1216_v49, %v4087_v6  ;;  %v1279_v46 = vshll.u32 %v2737_v59, %v1276_v7  ;;  %v1280_v43 = vshrl.u32 %v2738_v60, %v1277_v23  ;;  %v2412_v38 = vsel %vm88_vm2, %v3690_v18, %v1053_v44 }
 0x23d   :  { %v1134_v55 = vand.u32 2147483647, %v1133_v37  ;;  %v1218_v63 = vadd.s32 %v1217_v27, %v1213_v30  ;;  %v1282_v50 = vshll.u32 %v2738_v60, %v1276_v7  ;;  %2429 = vst [vmem:[#allocation2 + $0x10] sm:$0xff] %v2412_v38  ;;  %v1283_v28 = vshrl.u32 %v2739_v62, %v1277_v23 }
 0x23e   :  { %v1281_v10 = vor.u32 %v1280_v43, %v1279_v46  ;;  %v1285_v57 = vshll.u32 %v2739_v62, %v1276_v7  ;;  %v1286_v17 = vshrl.u32 %v2740_v11, %v1277_v23  ;;  %v1288_v47 = vshll.u32 %v2740_v11, %v1276_v7 }
 0x23f   :  { %v1137_v14 = vmul.f32 %v1136_v9, %v1134_v55  ;;  %v1219_v13 = vadd.s32 536870912, %v1218_v63  ;;  %v1289_v33 = vshrl.u32 %v2741_v2, %v1277_v23  ;;  %v1284_v3 = vor.u32 %v1283_v28, %v1282_v50 }
 0x240   :  { %v1287_v26 = vor.u32 %v1286_v17, %v1285_v57  ;;  %v1291_v18 = vshll.u32 %v2741_v2, %v1276_v7  ;;  %v1292_v6 = vshrl.u32 %v2742_v25, %v1277_v23  ;;  %v1143_v51 = vsel %vm4093_vm3, 0, %v1141_v40 }
 0x241   :  { %v1138_v58 = vxor.u32 2147483648, %v1137_v14  ;;  %v1220_v52 = vshrl.u32 %v1219_v13, 30  ;;  %v1290_v56 = vor.u32 %v1289_v33, %v1288_v47  ;;  %vm1294_vm4 = vcmp.lt.s32.totalorder %v1275_v36, 1 }
 0x242   :  { %v1293_v29 = vor.u32 %v1292_v6, %v1291_v18  ;;  %vm1295_vm8 = vcmp.lt.s32.totalorder %v1275_v36, 2  ;;  %vm1296_vm5 = vcmp.lt.s32.totalorder %v1275_v36, 3  ;;  %vm1297_vm0 = vcmp.lt.s32.totalorder %v1275_v36, 4 }
 0x243   :  { %v1139_v31 = vsel %vm1056_vm14, %v1138_v58, %v1137_v14  ;;  %v1221_v5 = vshll.u32 %v1220_v52, 30  ;;  %v1302_v48 = vsel %vm1294_vm4, %v1281_v10, %v1284_v3  ;;  %v1278_v45 = vshrl.u32 %v2737_v59, %v1277_v23 }
 0x244   :  { %v1142_v7 = vsel %vm4093_vm3, %v3873_v4, %v1139_v31  ;;  %v1299_v40 = vsel %vm1297_vm0, %v1287_v26, 2102212464  ;;  %v1303_v30 = vsel %vm1297_vm0, %v1290_v56, 920167782  ;;  %v1306_v37 = vsel %vm1294_vm4, %v1284_v3, %v1287_v26 }
 0x245   :  { %2674 = vcosq.f32 %v1142_v7  ;;  %v4140_v49 = vsub.s32 %v1218_v63, %v1221_v5  ;;  %v1304_v34 = vsel %vm1296_vm5, %v1287_v26, %v1303_v30  ;;  %v1147_v9 = vadd.s32 3, %v1143_v51 }
 0x246   :  { %2676 = vsinq.f32 %v1142_v7  ;;  %v1305_v44 = vsel %vm1295_vm8, %v1302_v48, %v1304_v34  ;;  %v1307_v27 = vsel %vm1297_vm0, %v1293_v29, 1326507024  ;;  %v1298_v12 = vsel %vm1294_vm4, %v1278_v45, %v1281_v10 }
 0x247   :  { %v1224_v46 = vsub.s32 0, %v4140_v49  ;;  %v1300_v23 = vsel %vm1296_vm5, %v1284_v3, %v1299_v40  ;;  %v1308_v43 = vsel %vm1296_vm5, %v1290_v56, %v1307_v27  ;;  %v1244_v28 = vsub.s32 4, %v1220_v52 }
 0x248   :  { %v1309_v55 = vsel %vm1295_vm8, %v1306_v37, %v1308_v43  ;;  %v4151_v38 = vmul.u32.u64.low %v4100_v53, %v1305_v44  ;;  %v4152_v63 = vmul.u32.u64.high %v4100_v53, %v1305_v44, %v4151_v38  ;;  %v1301_v10 = vsel %vm1295_vm8, %v1298_v12, %v1300_v23 }
 0x249   :  { %v2481_v50 = vmin.u32 %v1224_v46, %v4140_v49  ;;  %v4157_v57 = vmul.u32.u64.low %v4100_v53, %v1309_v55  ;;  %v4158_v17 = vmul.u32.u64.high %v4100_v53, %v1309_v55, %v4157_v57  ;;  %v719_v14 = vmul.f32 %v4025_v19, %v3101_v20 }
 0x24a   :  { %v1577_v13 = vand.u32 2139095040, %v4103_v61  ;;  %v1148_v47 = vand.u32 3, %v1147_v9  ;;  %vm4166_vm14 = vcmp.le.f32.partialorder %v1158_v1, 0.7853982  ;;  %vm1160_vm7 = vcmp.lt.s32.totalorder %v3966_v32, 0 }
 0x24b   :  { %v1226_v33 = vclz %v2481_v50  ;;  %v1320_v26 = vadd.s32 1, %v4152_v63  ;;  %v1245_v6 = vsel %vm1160_vm7, %v1244_v28, %v1220_v52  ;;  %v1317_v19 = vmul.u32 %v4100_v53, %v1301_v10 }
 0x24c   :  { %v1578_v18 = vshrl.u32 %v1577_v13, 23  ;;  %vm1319_vm12 = vc.u32 %v4158_v17, %v4151_v38  ;;  %v4178_v1 = vadd.f32 1.5707964, %v719_v14  ;;  %v1574_v51 = vand.u32 2147483647, %v4103_v61 }
 0x24d   :  { %v2482_v36 = vadd.s32 4294967294, %v1226_v33  ;;  %v1321_v58 = vsel %vm1319_vm12, %v1320_v26, %v4152_v63  ;;  %vm1146_vm10 = vweird.f32 %v3873_v4  ;;  %vm1149_vm1 = vcmp.lt.s32.totalorder %v1148_v47, 2 }
 0x24e   :  { %v2496_v56 = vadd.s32 4294967169, %v1578_v18  ;;  %vm1150_vm13 = vcmp.eq.s32.totalorder %v1148_v47, 0  ;;  %v1322_v29 = vadd.s32 %v1321_v58, %v1317_v19  ;;  %vm1153_vm15 = vcmp.eq.s32.totalorder %v1148_v47, 2 }
 0x24f   :  { %vm2483_vm3 = vcmp.lt.s32.totalorder %v2482_v36, 0  ;;  %v1214_v53 = vadd.s32 %v4086_v8, %v4083_v22  ;;  %v1247_v7 = vsel %vm4166_vm14, 0, %v1245_v6  ;;  %v1581_v34 = vand.u32 8388607, %v1574_v51 }
 0x250   :  { %v1229_v52 = vsel %vm2483_vm3, 0, %v2482_v36  ;;  %v1584_v31 = vadd.s32 1, %v2496_v56  ;;  %v1323_v45 = vadd.s32 536870912, %v1322_v29  ;;  %v1681_v37 = vand.u32 2139095040, %v4178_v1 }
 0x251   :  { %v1230_v5 = vsub.s32 32, %v1229_v52  ;;  %v1234_v48 = vsub.s32 4294967266, %v1229_v52  ;;  %v1231_v30 = vshll.u32 %v4140_v49, %v1229_v52  ;;  %v1251_v12 = vadd.s32 3, %v1247_v7 }
 0x252   :  { %v2675_v40 = vpop.eup %2674  ;;  %vm1585_vm4 = vcmp.gt.s32.totalorder %v1584_v31, 0  ;;  %v1324_v27 = vshrl.u32 %v1323_v45, 30  ;;  %v1678_v43 = vand.u32 2147483647, %v4178_v1  ;;  %v1582_v57 = vor.u32 8388608, %v1581_v34 }
 0x253   :  { %v2677_v9 = vpop.eup %2676  ;;  %v1154_v44 = vxor.u32 2147483648, %v2675_v40  ;;  %v1232_v22 = vshrl.u32 %v1214_v53, %v1230_v5  ;;  %v1235_v8 = vadd.s32 127, %v1234_v48  ;;  %v1586_v23 = vsel %vm1585_vm4, %v1584_v31, 0 }
 0x254   :  { %v1151_v46 = vxor.u32 2147483648, %v2677_v9  ;;  %v1325_v50 = vshll.u32 %v1324_v27, 30  ;;  %v1588_v10 = vand.u32 31, %v1586_v23  ;;  %v1682_v14 = vshrl.u32 %v1681_v37, 23 }
 0x255   :  { %v1155_v55 = vsel %vm1153_vm15, %v1154_v44, %v2677_v9  ;;  %v1233_v63 = vor.u32 %v1232_v22, %v1231_v30  ;;  %v1236_v49 = vshll.u32 %v1235_v8, 23  ;;  %vm1264_vm8 = vcmp.lt.s32.totalorder %v3955_v39, 0 }
 0x256   :  { %v1152_v28 = vsel %vm1150_vm13, %v2675_v40, %v1151_v46  ;;  %v4195_v26 = vsub.s32 %v1322_v29, %v1325_v50  ;;  %v4199_v36 = vand.u32 3, %v1251_v12  ;;  %v1348_v6 = vsub.s32 4, %v1324_v27 }
 0x257   :  { %v1156_v13 = vsel %vm1149_vm1, %v1152_v28, %v1155_v55  ;;  %v1237_v33 = vor.u32 4788187, %v1236_v49  ;;  %v1589_v19 = vsub.s32 32, %v1588_v10  ;;  %v1240_v56 = vcvt.s32.f32 %v1233_v63 }
 0x258   :  { %v1157_v18 = vsel %vm1146_vm10, nan, %v1156_v13  ;;  %v1318_v47 = vadd.s32 %v4151_v38, %v4158_v17  ;;  %v1328_v53 = vsub.s32 0, %v4195_v26  ;;  %v4206_v29 = vshll.u32 %v1582_v57, 8 }
 0x259   :  { %2430 = vst.msk [vmem:[#allocation2 + $0x18] sm:$0xff] %vm2427_vm6, %v1157_v18  ;;  %v1238_v58 = vand.u32 2147483647, %v1237_v33  ;;  %v1592_v52 = vshrl.u32 %v2738_v60, %v1589_v19  ;;  %v2500_v31 = vadd.s32 4294967169, %v1682_v14  ;;  %v4210_v4 = vand.u32 8388607, %v1678_v43 }
 0x25a   :  { %v2485_v48 = vmin.u32 %v1328_v53, %v4195_v26  ;;  %v1587_v7 = vshrl.u32 %v1586_v23, 5  ;;  %v1598_v45 = vshrl.u32 %v2740_v11, %v1589_v19  ;;  %v1349_v38 = vsel %vm1264_vm8, %v1348_v6, %v1324_v27 }
 0x25b   :  { %v1241_v5 = vmul.f32 %v1240_v56, %v1238_v58  ;;  %v1591_v17 = vshll.u32 %v2737_v59, %v1588_v10  ;;  %v1595_v40 = vshrl.u32 %v2739_v62, %v1589_v19  ;;  %v1597_v30 = vshll.u32 %v2739_v62, %v1588_v10 }
 0x25c   :  { %v1330_v37 = vclz %v2485_v48  ;;  %v1594_v9 = vshll.u32 %v2738_v60, %v1588_v10  ;;  %v1601_v44 = vshrl.u32 %v2741_v2, %v1589_v19  ;;  %vm4223_vm5 = vcmp.le.f32.partialorder %v1262_v42, 0.7853982 }
 0x25d   :  { %v1242_v34 = vxor.u32 2147483648, %v1241_v5  ;;  %v1590_v8 = vshrl.u32 %v2737_v59, %v1589_v19  ;;  %v1593_v27 = vor.u32 %v1592_v52, %v1591_v17  ;;  %v1599_v46 = vor.u32 %v1598_v45, %v1597_v30 }
 0x25e   :  { %v1600_v12 = vshll.u32 %v2740_v11, %v1588_v10  ;;  %v2486_v55 = vadd.s32 4294967294, %v1330_v37  ;;  %v1603_v63 = vshll.u32 %v2741_v2, %v1588_v10  ;;  %v1604_v49 = vshrl.u32 %v2742_v25, %v1589_v19 }
 0x25f   :  { %v1243_v23 = vsel %vm1160_vm7, %v1242_v34, %v1241_v5  ;;  %v1596_v50 = vor.u32 %v1595_v40, %v1594_v9  ;;  %vm1606_vm0 = vcmp.lt.s32.totalorder %v1587_v7, 1  ;;  %vm1607_vm10 = vcmp.lt.s32.totalorder %v1587_v7, 2 }
 0x260   :  { %v1246_v42 = vsel %vm4166_vm14, %v3966_v32, %v1243_v23  ;;  %v1602_v28 = vor.u32 %v1601_v44, %v1600_v12  ;;  %vm2487_vm12 = vcmp.lt.s32.totalorder %v2486_v55, 0  ;;  %v1605_v57 = vor.u32 %v1604_v49, %v1603_v63 }
 0x261   :  { %2678 = vcosq.f32 %v1246_v42  ;;  %v1333_v14 = vsel %vm2487_vm12, 0, %v2486_v55  ;;  %vm1608_vm1 = vcmp.lt.s32.totalorder %v1587_v7, 3  ;;  %vm1609_vm7 = vcmp.lt.s32.totalorder %v1587_v7, 4 }
 0x262   :  { %2680 = vsinq.f32 %v1246_v42  ;;  %v1334_v13 = vsub.s32 32, %v1333_v14  ;;  %v1338_v33 = vsub.s32 4294967266, %v1333_v14  ;;  %v1610_v10 = vsel %vm1606_vm0, %v1590_v8, %v1593_v27 }
 0x263   :  { %v1611_v18 = vsel %vm1609_vm7, %v1599_v46, 2102212464  ;;  %v1335_v6 = vshll.u32 %v4195_v26, %v1333_v14  ;;  %v1614_v3 = vsel %vm1606_vm0, %v1593_v27, %v1596_v50  ;;  %v1615_v19 = vsel %vm1609_vm7, %v1602_v28, 920167782 }
 0x264   :  { %v1618_v58 = vsel %vm1606_vm0, %v1596_v50, %v1599_v46  ;;  %v1336_v56 = vshrl.u32 %v1318_v47, %v1334_v13  ;;  %v1339_v53 = vadd.s32 127, %v1338_v33  ;;  %v1616_v52 = vsel %vm1608_vm1, %v1599_v46, %v1615_v19  ;;  %v688_v46 = vpop.permute.xlu1 %687 }
 0x265   :  { %v1619_v5 = vsel %vm1609_vm7, %v1605_v57, 1326507024  ;;  %v1612_v48 = vsel %vm1608_vm1, %v1596_v50, %v1611_v18  ;;  %v1617_v45 = vsel %vm1607_vm10, %v1614_v3, %v1616_v52  ;;  %v1688_v40 = vadd.s32 1, %v2500_v31 }
 0x266   :  { %v1620_v17 = vsel %vm1608_vm1, %v1602_v28, %v1619_v5  ;;  %v1337_v30 = vor.u32 %v1336_v56, %v1335_v6  ;;  %v1340_v34 = vshll.u32 %v1339_v53, 23  ;;  %v1351_v26 = vsel %vm4223_vm5, 0, %v1349_v38 }
 0x267   :  { %v1621_v37 = vsel %vm1607_vm10, %v1618_v58, %v1620_v17  ;;  %v4252_v44 = vmul.u32.u64.low %v4206_v29, %v1617_v45  ;;  %v4253_v8 = vmul.u32.u64.high %v4206_v29, %v1617_v45, %v4252_v44  ;;  %vm1254_vm14 = vcmp.eq.s32.totalorder %v4199_v36, 0 }
 0x268   :  { %v4248_v47 = vmul.u32.u64.low %v4206_v29, %v1621_v37  ;;  %v4249_v9 = vmul.u32.u64.high %v4206_v29, %v1621_v37, %v4248_v47  ;;  %v1341_v27 = vor.u32 4788187, %v1340_v34  ;;  %v1613_v31 = vsel %vm1607_vm10, %v1610_v10, %v1612_v48 }
 0x269   :  { %vm1689_vm13 = vcmp.gt.s32.totalorder %v1688_v40, 0  ;;  %vm1253_vm3 = vcmp.lt.s32.totalorder %v4199_v36, 2  ;;  %vm1257_vm15 = vcmp.eq.s32.totalorder %v4199_v36, 2  ;;  %v1355_v38 = vadd.s32 3, %v1351_v26 }
 0x26a   :  { %v1686_v12 = vor.u32 8388608, %v4210_v4  ;;  %v1690_v23 = vsel %vm1689_vm13, %v1688_v40, 0  ;;  %vm1250_vm4 = vweird.f32 %v3966_v32  ;;  %v1342_v55 = vand.u32 2147483647, %v1341_v27 }
 0x26b   :  { %v1344_v63 = vcvt.s32.f32 %v1337_v30  ;;  %v1692_v49 = vand.u32 31, %v1690_v23  ;;  %v656_v7 = vsel %vm72_vm9, %v3092_v15, %v3238_v41  ;;  %v1629_v42 = vmul.u32 %v4206_v29, %v1613_v31 }
 0x26c   :  { %vm1631_vm0 = vc.u32 %v4249_v9, %v4252_v44  ;;  %v1632_v50 = vadd.s32 1, %v4253_v8  ;;  %v4272_v4 = vsel %vm78_vm11, %v688_v46, %v656_v7  ;;  %v4274_v57 = vshrl.u32 %v1690_v23, 5 }
 0x26d   :  { %v1345_v28 = vmul.f32 %v1344_v63, %v1342_v55  ;;  %v1693_v14 = vsub.s32 32, %v1692_v49  ;;  %v1695_v13 = vshll.u32 %v2737_v59, %v1692_v49  ;;  %v1698_v41 = vshll.u32 %v2738_v60, %v1692_v49 }
 0x26e   :  { %v2679_v33 = vpop.eup %2678  ;;  %v1633_v15 = vsel %vm1631_vm0, %v1632_v50, %v4253_v8  ;;  %v1701_v29 = vshll.u32 %v2739_v62, %v1692_v49  ;;  %v1704_v10 = vshll.u32 %v2740_v11, %v1692_v49  ;;  %v1707_v19 = vshll.u32 %v2741_v2, %v1692_v49 }
 0x26f   :  { %v2681_v18 = vpop.eup %2680  ;;  %v1258_v6 = vxor.u32 2147483648, %v2679_v33  ;;  %v1346_v24 = vxor.u32 2147483648, %v1345_v28  ;;  %v1634_v3 = vadd.s32 %v1633_v15, %v1629_v42  ;;  %v1696_v56 = vshrl.u32 %v2738_v60, %v1693_v14 }
 0x270   :  { %v1255_v58 = vxor.u32 2147483648, %v2681_v18  ;;  %v1699_v53 = vshrl.u32 %v2739_v62, %v1693_v14  ;;  %v1702_v52 = vshrl.u32 %v2740_v11, %v1693_v14  ;;  %v1705_v17 = vshrl.u32 %v2741_v2, %v1693_v14 }
 0x271   :  { %v1259_v5 = vsel %vm1257_vm15, %v1258_v6, %v2681_v18  ;;  %v1347_v48 = vsel %vm1264_vm8, %v1346_v24, %v1345_v28  ;;  %v1635_v45 = vadd.s32 536870912, %v1634_v3  ;;  %v1697_v34 = vor.u32 %v1696_v56, %v1695_v13 }
 0x272   :  { %v1256_v40 = vsel %vm1254_vm14, %v2679_v33, %v1255_v58  ;;  %v1350_v30 = vsel %vm4223_vm5, %v3955_v39, %v1347_v48  ;;  %v1700_v26 = vor.u32 %v1699_v53, %v1698_v41  ;;  %v1703_v8 = vor.u32 %v1702_v52, %v1701_v29 }
 0x273   :  { %v1260_v37 = vsel %vm1253_vm3, %v1256_v40, %v1259_v5  ;;  %2682 = vcosq.f32 %v1350_v30  ;;  %v1636_v47 = vshrl.u32 %v1635_v45, 30  ;;  %v1706_v31 = vor.u32 %v1705_v17, %v1704_v10 }
 0x274   :  { %v1261_v27 = vsel %vm1250_vm4, nan, %v1260_v37  ;;  %2684 = vsinq.f32 %v1350_v30  ;;  %v1708_v23 = vshrl.u32 %v2742_v25, %v1693_v14  ;;  %v4303_v63 = vshll.u32 %v1686_v12, 8 }
 0x275   :  { %v2414_v22 = vsel %vm88_vm2, %v3928_v16, %v1261_v27  ;;  %v1637_v55 = vshll.u32 %v1636_v47, 30  ;;  %v4305_v49 = vand.u32 3, %v1355_v38  ;;  %v722_v7 = vmul.f32 %v4272_v4, %v3378_v35 }
 0x276   :  { %2431 = vst [vmem:[#allocation2 + $0x20] sm:$0xff] %v2414_v22  ;;  %v1709_v36 = vor.u32 %v1708_v23, %v1707_v19  ;;  %v723_v32 = vmul.f32 %v688_v46, %v3101_v20  ;;  %v1694_v50 = vshrl.u32 %v2737_v59, %v1693_v14  ;;  %vm1710_vm9 = vcmp.lt.s32.totalorder %v4274_v57, 1 }
 0x277   :  { %v4310_v42 = vsub.s32 %v1634_v3, %v1637_v55  ;;  %vm1713_vm11 = vcmp.lt.s32.totalorder %v4274_v57, 4  ;;  %vm1712_vm8 = vcmp.lt.s32.totalorder %v4274_v57, 3  ;;  %v1718_v38 = vsel %vm1710_vm9, %v1697_v34, %v1700_v26 }
 0x278   :  { %v1715_v16 = vsel %vm1713_vm11, %v1703_v8, 2102212464  ;;  %v1719_v12 = vsel %vm1713_vm11, %v1706_v31, 920167782  ;;  %v1660_v13 = vsub.s32 4, %v1636_v47  ;;  %vm1711_vm5 = vcmp.lt.s32.totalorder %v4274_v57, 2 }
 0x279   :  { %v1640_v28 = vsub.s32 0, %v4310_v42  ;;  %v1720_v35 = vsel %vm1712_vm8, %v1703_v8, %v1719_v12  ;;  %v1722_v46 = vsel %vm1710_vm9, %v1700_v26, %v1703_v8  ;;  %v1723_v14 = vsel %vm1713_vm11, %v1709_v36, 1326507024 }
 0x27a   :  { %v1721_v20 = vsel %vm1711_vm5, %v1718_v38, %v1720_v35  ;;  %v4321_v33 = vadd.f32 %v722_v7, %v3389_v0  ;;  %v1714_v41 = vsel %vm1710_vm9, %v1694_v50, %v1697_v34  ;;  %v1716_v29 = vsel %vm1712_vm8, %v1700_v26, %v1715_v16 }
 0x27b   :  { %v2497_v15 = vmin.u32 %v1640_v28, %v4310_v42  ;;  %v1724_v10 = vsel %vm1712_vm8, %v1706_v31, %v1723_v14  ;;  %vm1576_vm12 = vcmp.lt.s32.totalorder %v4103_v61, 0  ;;  %vm1354_vm10 = vweird.f32 %v3955_v39 }
 0x27c   :  { %v1725_v18 = vsel %vm1711_vm5, %v1722_v46, %v1724_v10  ;;  %v4328_v6 = vmul.u32.u64.low %v4303_v63, %v1721_v20  ;;  %v4329_v24 = vmul.u32.u64.high %v4303_v63, %v1721_v20, %v4328_v6  ;;  %vm4335_vm1 = vcmp.le.f32.partialorder %v1574_v51, 0.7853982 }
 0x27d   :  { %v1642_v3 = vclz %v2497_v15  ;;  %v1661_v19 = vsel %vm1576_vm12, %v1660_v13, %v1636_v47  ;;  %vm1357_vm7 = vcmp.lt.s32.totalorder %v4305_v49, 2  ;;  %v1717_v58 = vsel %vm1711_vm5, %v1714_v41, %v1716_v29 }
 0x27e   :  { %v4345_v56 = vmul.u32.u64.low %v4303_v63, %v1725_v18  ;;  %v4346_v53 = vmul.u32.u64.high %v4303_v63, %v1725_v18, %v4345_v56  ;;  %vm1358_vm14 = vcmp.eq.s32.totalorder %v4305_v49, 0  ;;  %v4349_v51 = vadd.f32 1.5707964, %v723_v32 }
 0x27f   :  { %v2498_v52 = vadd.s32 4294967294, %v1642_v3  ;;  %v1993_v5 = vand.u32 2139095040, %v4321_v33  ;;  %vm1361_vm13 = vcmp.eq.s32.totalorder %v4305_v49, 2  ;;  %v1630_v45 = vadd.s32 %v4252_v44, %v4249_v9 }
 0x280   :  { %v2683_v48 = vpop.eup %2682  ;;  %v1663_v57 = vsel %vm4335_vm1, 0, %v1661_v19  ;;  %v1736_v17 = vadd.s32 1, %v4329_v24  ;;  %v1733_v34 = vmul.u32 %v4303_v63, %v1717_v58  ;;  %vm1735_vm15 = vc.u32 %v4346_v53, %v4328_v6 }
 0x281   :  { %v2685_v40 = vpop.eup %2684  ;;  %v1362_v30 = vxor.u32 2147483648, %v2683_v48  ;;  %vm2499_vm3 = vcmp.lt.s32.totalorder %v2498_v52, 0  ;;  %v1994_v26 = vshrl.u32 %v1993_v5, 23  ;;  %v1990_v8 = vand.u32 2147483647, %v4321_v33 }
 0x282   :  { %v1359_v37 = vxor.u32 2147483648, %v2685_v40  ;;  %v1645_v47 = vsel %vm2499_vm3, 0, %v2498_v52  ;;  %v2097_v31 = vand.u32 2139095040, %v4349_v51  ;;  %v1737_v55 = vsel %vm1735_vm15, %v1736_v17, %v4329_v24 }
 0x283   :  { %v1363_v27 = vsel %vm1361_vm13, %v1362_v30, %v2685_v40  ;;  %v1646_v9 = vsub.s32 32, %v1645_v47  ;;  %v1650_v44 = vsub.s32 4294967266, %v1645_v47  ;;  %v1647_v22 = vshll.u32 %v4310_v42, %v1645_v47 }
 0x284   :  { %v1360_v23 = vsel %vm1358_vm14, %v2683_v48, %v1359_v37  ;;  %v2512_v63 = vadd.s32 4294967169, %v1994_v26  ;;  %v1738_v50 = vadd.s32 %v1737_v55, %v1733_v34  ;;  %v1667_v35 = vadd.s32 3, %v1663_v57 }
 0x285   :  { %v1364_v36 = vsel %vm1357_vm7, %v1360_v23, %v1363_v27  ;;  %v1648_v7 = vshrl.u32 %v1630_v45, %v1646_v9  ;;  %v1651_v32 = vadd.s32 127, %v1650_v44  ;;  %v1997_v42 = vand.u32 8388607, %v1990_v8 }
 0x286   :  { %v1365_v16 = vsel %vm1354_vm10, nan, %v1364_v36  ;;  %v2000_v38 = vadd.s32 1, %v2512_v63  ;;  %v1739_v13 = vadd.s32 536870912, %v1738_v50  ;;  %v2098_v14 = vshrl.u32 %v2097_v31, 23 }
 0x287   :  { %2432 = vst.msk [vmem:[#allocation2 + $0x28] sm:$0xff] %vm2427_vm6, %v1365_v16  ;;  %v1649_v12 = vor.u32 %v1648_v7, %v1647_v22  ;;  %v1652_v28 = vshll.u32 %v1651_v32, 23  ;;  %v4377_v10 = vand.u32 3, %v1667_v35  ;;  %v1998_v19 = vor.u32 8388608, %v1997_v42 }
 0x288   :  { %vm2001_vm4 = vcmp.gt.s32.totalorder %v2000_v38, 0  ;;  %v4374_v49 = vshrl.u32 %v1739_v13, 30  ;;  %v2516_v58 = vadd.s32 4294967169, %v2098_v14  ;;  %v1734_v63 = vadd.s32 %v4328_v6, %v4346_v53 }
 0x289   :  { %v1653_v20 = vor.u32 4788187, %v1652_v28  ;;  %v2002_v46 = vsel %vm2001_vm4, %v2000_v38, 0  ;;  %v1656_v39 = vcvt.s32.f32 %v1649_v12  ;;  %v2038_v7 = vshll.u32 %v1998_v19, 8 }
 0x28a   :  { %v2004_v15 = vand.u32 31, %v2002_v46  ;;  %v1741_v29 = vshll.u32 %v4374_v49, 30  ;;  %v2003_v56 = vshrl.u32 %v2002_v46, 5  ;;  %v2104_v16 = vadd.s32 1, %v2516_v58 }
 0x28b   :  { %v1654_v41 = vand.u32 2147483647, %v1653_v20  ;;  %vm1666_vm10 = vweird.f32 %v4103_v61  ;;  %vm1669_vm7 = vcmp.lt.s32.totalorder %v4377_v10, 2  ;;  %vm1670_vm14 = vcmp.eq.s32.totalorder %v4377_v10, 0 }
 0x28c   :  { %v2005_v18 = vsub.s32 32, %v2004_v15  ;;  %v4379_v3 = vsub.s32 %v1738_v50, %v1741_v29  ;;  %v2007_v52 = vshll.u32 %v2737_v59, %v2004_v15  ;;  %v2010_v17 = vshll.u32 %v2738_v60, %v2004_v15 }
 0x28d   :  { %v1657_v24 = vmul.f32 %v1656_v39, %v1654_v41  ;;  %v2013_v34 = vshll.u32 %v2739_v62, %v2004_v15  ;;  %v2016_v26 = vshll.u32 %v2740_v11, %v2004_v15  ;;  %v2019_v44 = vshll.u32 %v2741_v2, %v2004_v15 }
 0x28e   :  { %v2008_v5 = vshrl.u32 %v2738_v60, %v2005_v18  ;;  %v2011_v48 = vshrl.u32 %v2739_v62, %v2005_v18  ;;  %v1744_v57 = vsub.s32 0, %v4379_v3  ;;  %v2014_v40 = vshrl.u32 %v2740_v11, %v2005_v18 }
 0x28f   :  { %v1658_v45 = vxor.u32 2147483648, %v1657_v24  ;;  %v2017_v37 = vshrl.u32 %v2741_v2, %v2005_v18  ;;  %v2020_v55 = vshrl.u32 %v2742_v25, %v2005_v18  ;;  %v2006_v32 = vshrl.u32 %v2737_v59, %v2005_v18 }
 0x290   :  { %v2009_v30 = vor.u32 %v2008_v5, %v2007_v52  ;;  %v2501_v27 = vmin.u32 %v1744_v57, %v4379_v3  ;;  %v2012_v9 = vor.u32 %v2011_v48, %v2010_v17  ;;  %v2015_v23 = vor.u32 %v2014_v40, %v2013_v34 }
 0x291   :  { %v1659_v47 = vsel %vm1576_vm12, %v1658_v45, %v1657_v24  ;;  %v2018_v22 = vor.u32 %v2017_v37, %v2016_v26  ;;  %v2021_v50 = vor.u32 %v2020_v55, %v2019_v44  ;;  %vm2022_vm0 = vcmp.lt.s32.totalorder %v2003_v56, 1 }
 0x292   :  { %v1662_v31 = vsel %vm4335_vm1, %v4103_v61, %v1659_v47  ;;  %v1746_v36 = vclz %v2501_v27  ;;  %vm2024_vm9 = vcmp.lt.s32.totalorder %v2003_v56, 3  ;;  %vm2025_vm11 = vcmp.lt.s32.totalorder %v2003_v56, 4 }
 0x293   :  { %2686 = vcosq.f32 %v1662_v31  ;;  %v2027_v0 = vsel %vm2025_vm11, %v2015_v23, 2102212464  ;;  %v2030_v12 = vsel %vm2022_vm0, %v2009_v30, %v2012_v9  ;;  %v2031_v28 = vsel %vm2025_vm11, %v2018_v22, 920167782 }
 0x294   :  { %2688 = vsinq.f32 %v1662_v31  ;;  %v2502_v38 = vadd.s32 4294967294, %v1746_v36  ;;  %v2034_v13 = vsel %vm2022_vm0, %v2012_v9, %v2015_v23  ;;  %vm2023_vm5 = vcmp.lt.s32.totalorder %v2003_v56, 2 }
 0x295   :  { %v2032_v35 = vsel %vm2024_vm9, %v2015_v23, %v2031_v28  ;;  %v2035_v6 = vsel %vm2025_vm11, %v2021_v50, 1326507024  ;;  %v2026_v42 = vsel %vm2022_vm0, %v2006_v32, %v2009_v30  ;;  %v2028_v41 = vsel %vm2024_vm9, %v2012_v9, %v2027_v0 }
 0x296   :  { %vm2503_vm8 = vcmp.lt.s32.totalorder %v2502_v38, 0  ;;  %v2033_v20 = vsel %vm2023_vm5, %v2030_v12, %v2032_v35  ;;  %v2036_v46 = vsel %vm2024_vm9, %v2018_v22, %v2035_v6  ;;  %vm2105_vm12 = vcmp.gt.s32.totalorder %v2104_v16, 0 }
 0x297   :  { %v1749_v53 = vsel %vm2503_vm8, 0, %v2502_v38  ;;  %v2037_v39 = vsel %vm2023_vm5, %v2034_v13, %v2036_v46  ;;  %v4409_v24 = vmul.u32.u64.low %v2038_v7, %v2033_v20  ;;  %v4410_v19 = vmul.u32.u64.high %v2038_v7, %v2033_v20, %v4409_v24 }
 0x298   :  { %v1750_v14 = vsub.s32 32, %v1749_v53  ;;  %v1754_v15 = vsub.s32 4294967266, %v1749_v53  ;;  %v4406_v29 = vmul.u32.u64.low %v2038_v7, %v2037_v39  ;;  %v4407_v18 = vmul.u32.u64.high %v2038_v7, %v2037_v39, %v4406_v29 }
 0x299   :  { %v1751_v58 = vshll.u32 %v4379_v3, %v1749_v53  ;;  %v1764_v48 = vsub.s32 4, %v4374_v49  ;;  %v2029_v45 = vsel %vm2023_vm5, %v2026_v42, %v2028_v41  ;;  %v2094_v57 = vand.u32 2147483647, %v4349_v51 }
 0x29a   :  { %v1752_v52 = vshrl.u32 %v1734_v63, %v1750_v14  ;;  %v1755_v5 = vadd.s32 127, %v1754_v15  ;;  %v2106_v17 = vsel %vm2105_vm12, %v2104_v16, 0  ;;  %vm1680_vm1 = vcmp.lt.s32.totalorder %v4178_v1, 0 }
 0x29b   :  { %v2108_v34 = vand.u32 31, %v2106_v17  ;;  %vm2047_vm13 = vc.u32 %v4407_v18, %v4409_v24  ;;  %v2048_v3 = vadd.s32 1, %v4410_v19  ;;  %vm1673_vm3 = vcmp.eq.s32.totalorder %v4377_v10, 2 }
 0x29c   :  { %v1753_v40 = vor.u32 %v1752_v52, %v1751_v58  ;;  %v1756_v30 = vshll.u32 %v1755_v5, 23  ;;  %vm4427_vm15 = vcmp.le.f32.partialorder %v1678_v43, 0.7853982  ;;  %v2045_v37 = vmul.u32 %v2038_v7, %v2029_v45 }
 0x29d   :  { %v2109_v47 = vsub.s32 32, %v2108_v34  ;;  %v1765_v9 = vsel %vm1680_vm1, %v1764_v48, %v4374_v49  ;;  %v2049_v44 = vsel %vm2047_vm13, %v2048_v3, %v4410_v19  ;;  %v2101_v31 = vand.u32 8388607, %v2094_v57 }
 0x29e   :  { %v1757_v26 = vor.u32 4788187, %v1756_v30  ;;  %v4437_v23 = vshrl.u32 %v2106_v17, 5  ;;  %v1760_v63 = vcvt.s32.f32 %v1753_v40  ;;  %v2050_v36 = vadd.s32 %v2049_v44, %v2045_v37 }
 0x29f   :  { %v2111_v7 = vshll.u32 %v2737_v59, %v2108_v34  ;;  %v2112_v50 = vshrl.u32 %v2738_v60, %v2109_v47  ;;  %v2114_v16 = vshll.u32 %v2738_v60, %v2108_v34  ;;  %v2115_v12 = vshrl.u32 %v2739_v62, %v2109_v47 }
 0x2a0   :  { %v2687_v27 = vpop.eup %2686  ;;  %v1758_v55 = vand.u32 2147483647, %v1757_v26  ;;  %v2051_v0 = vadd.s32 536870912, %v2050_v36  ;;  %v2117_v13 = vshll.u32 %v2739_v62, %v2108_v34  ;;  %v2118_v35 = vshrl.u32 %v2740_v11, %v2109_v47 }
 0x2a1   :  { %v2689_v22 = vpop.eup %2688  ;;  %v1674_v43 = vxor.u32 2147483648, %v2687_v27  ;;  %v2121_v6 = vshrl.u32 %v2741_v2, %v2109_v47  ;;  %v2120_v20 = vshll.u32 %v2740_v11, %v2108_v34  ;;  %v2113_v14 = vor.u32 %v2112_v50, %v2111_v7 }
 0x2a2   :  { %v1671_v32 = vxor.u32 2147483648, %v2689_v22  ;;  %v1761_v38 = vmul.f32 %v1760_v63, %v1758_v55  ;;  %v4452_v42 = vshrl.u32 %v2051_v0, 30  ;;  %v2123_v15 = vshll.u32 %v2741_v2, %v2108_v34 }
 0x2a3   :  { %v1675_v49 = vsel %vm1673_vm3, %v1674_v43, %v2689_v22  ;;  %v2124_v62 = vshrl.u32 %v2742_v25, %v2109_v47  ;;  %v2116_v29 = vor.u32 %v2115_v12, %v2114_v16  ;;  %v2119_v61 = vor.u32 %v2118_v35, %v2117_v13 }
 0x2a4   :  { %v1672_v28 = vsel %vm1670_vm14, %v2687_v27, %v1671_v32  ;;  %v1762_v60 = vxor.u32 2147483648, %v1761_v38  ;;  %v2053_v39 = vshll.u32 %v4452_v42, 30  ;;  %v2122_v19 = vor.u32 %v2121_v6, %v2120_v20 }
 0x2a5   :  { %v1676_v53 = vsel %vm1669_vm7, %v1672_v28, %v1675_v49  ;;  %v2125_v2 = vor.u32 %v2124_v62, %v2123_v15  ;;  %v2102_v58 = vor.u32 8388608, %v2101_v31  ;;  %v1767_v52 = vsel %vm4427_vm15, 0, %v1765_v9 }
 0x2a6   :  { %v1677_v46 = vsel %vm1666_vm10, nan, %v1676_v53  ;;  %v1763_v41 = vsel %vm1680_vm1, %v1762_v60, %v1761_v38  ;;  %v2054_v25 = vsub.s32 %v2050_v36, %v2053_v39  ;;  %vm2126_vm4 = vcmp.lt.s32.totalorder %v4437_v23, 1 }
 0x2a7   :  { %v2418_v10 = vsel %vm88_vm2, %v4052_v54, %v1677_v46  ;;  %v1766_v11 = vsel %vm4427_vm15, %v4178_v1, %v1763_v41  ;;  %v2110_v54 = vshrl.u32 %v2737_v59, %v2109_v47  ;;  %vm2128_vm0 = vcmp.lt.s32.totalorder %v4437_v23, 3 }
 0x2a8   :  { %2435 = vst [vmem:[#allocation2 + $0x40] sm:$0xff] %v2418_v10  ;;  %2690 = vcosq.f32 %v1766_v11  ;;  %v2056_v5 = vsub.s32 0, %v2054_v25  ;;  %vm2129_vm9 = vcmp.lt.s32.totalorder %v4437_v23, 4  ;;  %v2134_v48 = vsel %vm2126_vm4, %v2113_v14, %v2116_v29 }
 0x2a9   :  { %2692 = vsinq.f32 %v1766_v11  ;;  %v2131_v45 = vsel %vm2129_vm9, %v2119_v61, 2102212464  ;;  %v2135_v17 = vsel %vm2129_vm9, %v2122_v19, 920167782  ;;  %v2138_v40 = vsel %vm2126_vm4, %v2116_v29, %v2119_v61 }
 0x2aa   :  { %v2139_v30 = vsel %vm2129_vm9, %v2125_v2, 1326507024  ;;  %v2513_v34 = vmin.u32 %v2056_v5, %v2054_v25  ;;  %vm2127_vm11 = vcmp.lt.s32.totalorder %v4437_v23, 2  ;;  %v2136_v59 = vsel %vm2128_vm0, %v2119_v61, %v2135_v17 }
 0x2ab   :  { %v2140_v3 = vsel %vm2128_vm0, %v2122_v19, %v2139_v30  ;;  %v2137_v56 = vsel %vm2127_vm11, %v2134_v48, %v2136_v59  ;;  %v2142_v37 = vshll.u32 %v2102_v58, 8  ;;  %v1771_v47 = vadd.s32 3, %v1767_v52 }
 0x2ac   :  { %v2141_v26 = vsel %vm2127_vm11, %v2138_v40, %v2140_v3  ;;  %v2058_v27 = vclz %v2513_v34  ;;  %v2130_v9 = vsel %vm2126_vm4, %v2110_v54, %v2113_v14  ;;  %v2132_v44 = vsel %vm2128_vm0, %v2116_v29, %v2131_v45 }
 0x2ad   :  { %v4487_v31 = vmul.u32.u64.low %v2142_v37, %v2141_v26  ;;  %v4488_v22 = vmul.u32.u64.high %v2142_v37, %v2141_v26, %v4487_v31  ;;  %v4490_v43 = vmul.u32.u64.low %v2142_v37, %v2137_v56  ;;  %v4491_v55 = vmul.u32.u64.high %v2142_v37, %v2137_v56, %v4490_v43 }
 0x2ae   :  { %v2514_v63 = vadd.s32 4294967294, %v2058_v27  ;;  %v2133_v36 = vsel %vm2127_vm11, %v2130_v9, %v2132_v44  ;;  %v1772_v32 = vand.u32 3, %v1771_v47  ;;  %v2046_v16 = vadd.s32 %v4409_v24, %v4407_v18 }
 0x2af   :  { %vm2151_vm5 = vc.u32 %v4488_v22, %v4490_v43  ;;  %v2152_v50 = vadd.s32 1, %v4491_v55  ;;  %v2149_v38 = vmul.u32 %v2142_v37, %v2133_v36  ;;  %vm1770_vm7 = vweird.f32 %v4178_v1 }
 0x2b0   :  { %vm2515_vm8 = vcmp.lt.s32.totalorder %v2514_v63, 0  ;;  %vm1774_vm12 = vcmp.eq.s32.totalorder %v1772_v32, 0  ;;  %vm1777_vm10 = vcmp.eq.s32.totalorder %v1772_v32, 2  ;;  %vm1773_vm1 = vcmp.lt.s32.totalorder %v1772_v32, 2 }
 0x2b1   :  { %v2061_v7 = vsel %vm2515_vm8, 0, %v2514_v63  ;;  %v2153_v28 = vsel %vm2151_vm5, %v2152_v50, %v4491_v55  ;;  %vm1992_vm14 = vcmp.lt.s32.totalorder %v4321_v33, 0  ;;  %v2076_v52 = vsub.s32 4, %v4452_v42 }
 0x2b2   :  { %v2062_v23 = vsub.s32 32, %v2061_v7  ;;  %v2066_v49 = vsub.s32 4294967266, %v2061_v7  ;;  %v2063_v12 = vshll.u32 %v2054_v25, %v2061_v7  ;;  %v2154_v60 = vadd.s32 %v2153_v28, %v2149_v38 }
 0x2b3   :  { %vm1991_vm13 = vcmp.le.f32.partialorder %v1990_v8, 0.7853982  ;;  %v2077_v45 = vsel %vm1992_vm14, %v2076_v52, %v4452_v42  ;;  %v2150_v34 = vadd.s32 %v4490_v43, %v4488_v22  ;;  %vm2082_vm9 = vweird.f32 %v4321_v33 }
 0x2b4   :  { %v2064_v6 = vshrl.u32 %v2046_v16, %v2062_v23  ;;  %v2067_v53 = vadd.s32 127, %v2066_v49  ;;  %v2155_v62 = vadd.s32 536870912, %v2154_v60  ;;  %v2079_v40 = vsel %vm1991_vm13, 0, %v2077_v45 }
 0x2b5   :  { %v2691_v0 = vpop.eup %2690  ;;  %v2083_v56 = vadd.s32 3, %v2079_v40  ;;  %vm2096_vm11 = vcmp.lt.s32.totalorder %v4349_v51, 0  ;;  %vm2095_vm8 = vcmp.le.f32.partialorder %v2094_v57, 0.7853982 }
 0x2b6   :  { %v2693_v13 = vpop.eup %2692  ;;  %v1778_v35 = vxor.u32 2147483648, %v2691_v0  ;;  %v2065_v14 = vor.u32 %v2064_v6, %v2063_v12  ;;  %v2068_v15 = vshll.u32 %v2067_v53, 23  ;;  %v2156_v10 = vshrl.u32 %v2155_v62, 30 }
 0x2b7   :  { %v1775_v20 = vxor.u32 2147483648, %v2693_v13  ;;  %v2084_v9 = vand.u32 3, %v2083_v56 }
 0x2b8   :  { %v1779_v46 = vsel %vm1777_vm10, %v1778_v35, %v2693_v13  ;;  %v2069_v41 = vor.u32 4788187, %v2068_v15  ;;  %v2072_v11 = vcvt.s32.f32 %v2065_v14  ;;  %v2157_v61 = vshll.u32 %v2156_v10, 30 }
 0x2b9   :  { %v1776_v18 = vsel %vm1774_vm12, %v2691_v0, %v1775_v20  ;;  %vm2089_vm15 = vcmp.eq.s32.totalorder %v2084_v9, 2  ;;  %vm2086_vm4 = vcmp.eq.s32.totalorder %v2084_v9, 0  ;;  %vm2085_vm0 = vcmp.lt.s32.totalorder %v2084_v9, 2 }
 0x2ba   :  { %v1780_v24 = vsel %vm1773_vm1, %v1776_v18, %v1779_v46  ;;  %v2070_v29 = vand.u32 2147483647, %v2069_v41  ;;  %v2158_v2 = vsub.s32 %v2154_v60, %v2157_v61  ;;  %v2180_v49 = vsub.s32 4, %v2156_v10 }
 0x2bb   :  { %v1781_v39 = vsel %vm1770_vm7, nan, %v1780_v24 }
 0x2bc   :  { %2436 = vst.msk [vmem:[#allocation2 + $0x48] sm:$0xff] %vm2427_vm6, %v1781_v39  ;;  %v2073_v19 = vmul.f32 %v2072_v11, %v2070_v29  ;;  %v2160_v58 = vsub.s32 0, %v2158_v2  ;;  %v2181_v28 = vsel %vm2096_vm11, %v2180_v49, %v2156_v10 }
 0x2be   :  { %v2074_v25 = vxor.u32 2147483648, %v2073_v19  ;;  %v2517_v54 = vmin.u32 %v2160_v58, %v2158_v2 }
 0x2c0   :  { %v2075_v1 = vsel %vm1992_vm14, %v2074_v25, %v2073_v19  ;;  %v2162_v48 = vclz %v2517_v54 }
 0x2c1   :  { %v2078_v5 = vsel %vm1991_vm13, %v4321_v33, %v2075_v1  ;;  %v2183_v33 = vsel %vm2095_vm8, 0, %v2181_v28 }
 0x2c2   :  { %2694 = vcosq.f32 %v2078_v5  ;;  %v2518_v17 = vadd.s32 4294967294, %v2162_v48  ;;  %v2187_v13 = vadd.s32 3, %v2183_v33 }
 0x2c3   :  { %2696 = vsinq.f32 %v2078_v5 }
 0x2c4   :  { %vm2519_vm3 = vcmp.lt.s32.totalorder %v2518_v17, 0  ;;  %v2188_v35 = vand.u32 3, %v2187_v13 }
 0x2c5   :  { %v2165_v30 = vsel %vm2519_vm3, 0, %v2518_v17 }
 0x2c6   :  { %v2166_v59 = vsub.s32 32, %v2165_v30  ;;  %v2170_v3 = vsub.s32 4294967266, %v2165_v30  ;;  %v2167_v26 = vshll.u32 %v2158_v2, %v2165_v30  ;;  %vm2193_vm5 = vcmp.eq.s32.totalorder %v2188_v35, 2 }
 0x2c7   :  { %vm2190_vm12 = vcmp.eq.s32.totalorder %v2188_v35, 0  ;;  %vm2189_vm10 = vcmp.lt.s32.totalorder %v2188_v35, 2 }
 0x2c8   :  { %v2168_v8 = vshrl.u32 %v2150_v34, %v2166_v59  ;;  %v2171_v37 = vadd.s32 127, %v2170_v3 }
 0x2ca   :  { %v2169_v47 = vor.u32 %v2168_v8, %v2167_v26  ;;  %v2172_v27 = vshll.u32 %v2171_v37, 23 }
 0x2cc   :  { %v2173_v44 = vor.u32 4788187, %v2172_v27  ;;  %v2176_v36 = vcvt.s32.f32 %v2169_v47 }
 0x2ce   :  { %v2174_v63 = vand.u32 2147483647, %v2173_v44 }
 0x2cf   :  { %v2695_v31 = vpop.eup %2694 }
 0x2d0   :  { %v2697_v55 = vpop.eup %2696  ;;  %v2090_v42 = vxor.u32 2147483648, %v2695_v31  ;;  %v2177_v22 = vmul.f32 %v2176_v36, %v2174_v63 }
 0x2d1   :  { %v2087_v32 = vxor.u32 2147483648, %v2697_v55 }
 0x2d2   :  { %v2091_v7 = vsel %vm2089_vm15, %v2090_v42, %v2697_v55  ;;  %v2178_v16 = vxor.u32 2147483648, %v2177_v22 }
 0x2d3   :  { %v2088_v43 = vsel %vm2086_vm4, %v2695_v31, %v2087_v32 }
 0x2d4   :  { %v2092_v50 = vsel %vm2085_vm0, %v2088_v43, %v2091_v7  ;;  %v2179_v38 = vsel %vm2096_vm11, %v2178_v16, %v2177_v22 }
 0x2d5   :  { %v2093_v23 = vsel %vm2082_vm9, nan, %v2092_v50  ;;  %v2182_v12 = vsel %vm2095_vm8, %v4349_v51, %v2179_v38 }
 0x2d6   :  { %v2422_v0 = vsel %vm88_vm2, %v4272_v4, %v2093_v23  ;;  %2698 = vcosq.f32 %v2182_v12  ;;  %vm2186_vm2 = vweird.f32 %v4349_v51 }
 0x2d7   :  { %2439 = vst [vmem:[#allocation2 + $0x60] sm:$0xff] %v2422_v0  ;;  %2700 = vsinq.f32 %v2182_v12 }
 0x2e3   :  { %v2699_v6 = vpop.eup %2698 }
 0x2e4   :  { %v2701_v53 = vpop.eup %2700  ;;  %v2194_v60 = vxor.u32 2147483648, %v2699_v6 }
 0x2e5   :  { %v2191_v20 = vxor.u32 2147483648, %v2701_v53 }
 0x2e6   :  { %v2195_v57 = vsel %vm2193_vm5, %v2194_v60, %v2701_v53 }
 0x2e7   :  { %v2192_v21 = vsel %vm2190_vm12, %v2699_v6, %v2191_v20 }
 0x2e8   :  { %v2196_v4 = vsel %vm2189_vm10, %v2192_v21, %v2195_v57 }
 0x2e9   :  { %v2197_v46 = vsel %vm2186_vm2, nan, %v2196_v4 }
 0x2ea   :  { %2440 = vst.msk [vmem:[#allocation2 + $0x68] sm:$0xff] %vm2427_vm6, %v2197_v46 }
 0x2eb   :  { %2713 = shalt.err (!%p2710_p4)
}
 0x2ec   :  { %s2744_s24 = smov 256   ;;  %s2745_s25 = smov 16  }
 0x2ed   :  { %2454 = dma.vmem_to_hbm [thread:$0]  %s2449_s22, 2048, %s4521_s1, [#allocation3], %s2744_s24, %s2744_s24, %s2745_s25  }
 0x2ee   :  { %2722 = dma.done.wait [#allocation3], 2048  }
 0x2ef   :  { %2723 = vsyncadd [#allocation3], 4294965248 }
 0x2f0   :  { %2458 = vsyncpa [#allocation3], 1 }

</bundles_post_ra>
